<compile_context>
chip_gen: v5e
topology: v5e:2x2
jax: 0.10.0
libtpu: 0.0.40
codegen_flags: <defaults>
</compile_context>

<pallas_src>
import functools

import jax
import jax.numpy as jnp
from jax.experimental import pallas as pl
from jax.experimental.pallas import tpu as pltpu

CP = 128            # packed channel width (lane-dense minor dimension)
_EPS = 1e-5
_TEMPERATURE = 34.0


# --------------------------- tiling / sizing helpers ---------------------------

def _pick_rows_per_tile(H, W, Cin, *, force=None, budget_bytes=12 << 20):
    """Output rows computed per grid step along the H axis."""
    if force is not None:
        assert H % force == 0 and (force == H or (force * W) % 8 == 0), force
        return force
    cands = [d for d in range(1, H + 1)
             if H % d == 0 and (d == H or (d * W) % 8 == 0)]

    def step_bytes(r):   # im2col scratch + double-buffered output tile
        return r * W * 9 * Cin * 4 + 2 * r * W * CP * 4

    fit = [d for d in cands if step_bytes(d) <= budget_bytes]
    return max(fit) if fit else min(cands)


def _vmem_limit_bytes(H, W, R, Cin, K, x_bytes, y_bytes):
    hw = H * W
    est = 2 * hw * CP * x_bytes          # whole-sample x block (double buffered)
    est += 2 * R * W * CP * y_bytes      # y tile block
    est += 4 * 2 * CP * 4                # sum / sq blocks
    est += 2 * K * 9 * Cin * CP * 2      # bf16 weight banks
    est += 2 * K * CP * 4                # bias banks
    est += R * W * 9 * Cin * 4           # im2col scratch (f32)
    est += 9 * Cin * CP * 2 + CP * 4     # aggregated weight / bias scratch
    est += 2 * (Cin + K + 8) * CP * 4    # small attention fc blocks (overestimate)
    return int(min(max(2 * est, 32 << 20), 56 << 20))


# ----------------------------- Pallas kernels -----------------------------

def _dconv_kernel(x_ref, bnm_ref, bni_ref, w1_ref, w2_ref, b2_ref,
                  wbank_ref, bbank_ref,
                  y_ref, sum_ref, sq_ref,
                  patch_sc, aggw_sc, aggb_sc,
                  *, H, W, Cin, K, R, temperature, apply_bn):
    """Fused Dynamic_conv2d: one batch sample x one slab of R output rows.

    x_ref   : (1, H*W, CP)   packed input, whole sample, resident across tiles
    bnm/bni : (1, CP)        previous layer's BatchNorm mean / inv-std
    w1      : (Cin, hidden)  attention fc1 (no bias);  w2: (hidden, K);  b2: (1, K)
    wbank   : (K, 9*Cin, CP) bf16 conv banks, rows ordered (kh, kw, cin),
                             output channels zero-padded to CP (lane-dense)
    bbank   : (K, 1, CP)     conv bias banks
    y_ref   : (1, R*W, CP)   raw conv output tile (pre-BN), lane-dense store
    sum/sq  : (1, 1, CP)     per-sample channel sum / sum-of-squares (BN stats)
    patch_sc: VMEM (R, W, 9*Cin) f32 im2col scratch (fully rewritten each step)
    aggw_sc : VMEM (9*Cin, CP) bf16 per-sample aggregated weight (tile 0 -> all)
    aggb_sc : VMEM (1, CP)   f32 per-sample aggregated bias
    """
    t = pl.program_id(1)
    n_t = pl.num_programs(1)
    r0 = t * R

    def bn_relu(v):
        if apply_bn:   # previous layer's BatchNorm + ReLU fused into the load
            v = jnp.maximum((v - bnm_ref[...]) * bni_ref[...], 0.0)
        return v

    def load_rows(row_start, nrows):
        v = x_ref[:, pl.ds(row_start * W, nrows * W), :].astype(jnp.float32)
        return bn_relu(v)[0, :, :Cin].reshape(nrows, W, Cin)

    # --- attention2d + bank aggregation: once per sample (tile 0) ---
    @pl.when(t == 0)
    def _():
        xf = bn_relu(x_ref[0].astype(jnp.float32))                 # (H*W, CP)
        xs = xf[:, :Cin]
        pooled = jnp.mean(xs, axis=0, keepdims=True)               # (1, Cin)
        h = jnp.maximum(jnp.dot(pooled, w1_ref[...],
                                preferred_element_type=jnp.float32), 0.0)
        logits = (jnp.dot(h, w2_ref[...],
                          preferred_element_type=jnp.float32)
                  + b2_ref[...]) / temperature
        logits = logits - jnp.max(logits, axis=-1, keepdims=True)
        e = jnp.exp(logits)
        att = e / jnp.sum(e, axis=-1, keepdims=True)               # (1, K)
        aw = att[0:1, 0:1] * wbank_ref[0].astype(jnp.float32)      # (9*Cin, CP)
        ab = att[0:1, 0:1] * bbank_ref[0]                          # (1, CP)
        for k in range(1, K):
            a_k = att[0:1, k:k + 1]
            aw = aw + a_k * wbank_ref[k].astype(jnp.float32)
            ab = ab + a_k * bbank_ref[k]
        aggw_sc[...] = aw.astype(jnp.bfloat16)
        aggb_sc[...] = ab

    # --- im2col into VMEM scratch; halo rows/cols only, no bulk zeroing ---
    mid3 = load_rows(r0, R)                                        # (R, W, Cin)
    top3 = load_rows(jnp.maximum(r0 - 1, 0), 1)                    # (1, W, Cin)
    bot3 = load_rows(jnp.minimum(r0 + R, H - 1), 1)                # (1, W, Cin)
    top3 = top3 * (t > 0).astype(jnp.float32)          # zero pad at image top
    bot3 = bot3 * (t < n_t - 1).astype(jnp.float32)    # zero pad at image bottom
    zcol = jnp.zeros((R, 1, Cin), jnp.float32)

    ti = 0
    for dh in (-1, 0, 1):
        for dw in (-1, 0, 1):
            sw0, sw1 = max(0, dw), W + min(0, dw)        # source columns
            tw0, tw1 = max(0, -dw), W + min(0, -dw)      # destination columns
            ls = slice(ti * Cin, (ti + 1) * Cin)
            if dw == -1:                                 # zero column halo only
                patch_sc[:, 0:1, ls] = zcol
            elif dw == 1:
                patch_sc[:, W - 1:W, ls] = zcol
            if dh == 0:
                patch_sc[:, tw0:tw1, ls] = mid3[:, sw0:sw1, :]
            elif dh == -1:
                if R > 1:
                    patch_sc[1:R, tw0:tw1, ls] = mid3[0:R - 1, sw0:sw1, :]
                patch_sc[0:1, tw0:tw1, ls] = top3[:, sw0:sw1, :]
            else:
                if R > 1:
                    patch_sc[0:R - 1, tw0:tw1, ls] = mid3[1:R, sw0:sw1, :]
                patch_sc[R - 1:R, tw0:tw1, ls] = bot3[:, sw0:sw1, :]
            ti += 1

    # --- single bf16 MXU matmul (f32 accumulate), lane-dense epilogue ---
    patches = patch_sc[...].reshape(R * W, 9 * Cin).astype(jnp.bfloat16)
    acc = jnp.dot(patches, aggw_sc[...],
                  preferred_element_type=jnp.float32) + aggb_sc[...]
    y_ref[0] = acc.astype(y_ref.dtype)

    ps = jnp.sum(acc, axis=0, keepdims=True)                       # (1, CP) f32
    pq = jnp.sum(acc * acc, axis=0, keepdims=True)

    @pl.when(t == 0)
    def _():
        sum_ref[0] = ps
        sq_ref[0] = pq

    @pl.when(t > 0)
    def _():
        sum_ref[0] = sum_ref[0] + ps
        sq_ref[0] = sq_ref[0] + pq


def _bn_relu_kernel(y_ref, m_ref, i_ref, o_ref):
    # y_ref: (1, blk, CP); m/i: (1, CP) -> lane-dense elementwise epilogue.
    v = y_ref[...].astype(jnp.float32)
    o_ref[...] = jnp.maximum((v - m_ref[...]) * i_ref[...], 0.0).astype(o_ref.dtype)


# ----------------------------- Pallas wrappers -----------------------------

def _dynamic_conv_layer(x_packed, p, bn_mean, bn_inv, *, H, W, apply_bn,
                        temperature=_TEMPERATURE, out_dtype=jnp.bfloat16,
                        rows_per_tile=None):
    B = x_packed.shape[0]
    Cin, hidden = p["w1"].shape
    K = p["w2"].shape[1]
    HW = H * W
    R = _pick_rows_per_tile(H, W, Cin, force=rows_per_tile)
    T = H // R
    kern = functools.partial(_dconv_kernel, H=H, W=W, Cin=Cin, K=K, R=R,
                             temperature=float(temperature), apply_bn=apply_bn)
    vmem = _vmem_limit_bytes(H, W, R, Cin, K,
                             x_packed.dtype.itemsize,
                             jnp.dtype(out_dtype).itemsize)
    y, s, q = pl.pallas_call(
        kern,
        out_shape=(
            jax.ShapeDtypeStruct((B, HW, CP), out_dtype),
            jax.ShapeDtypeStruct((B, 1, CP), jnp.float32),
            jax.ShapeDtypeStruct((B, 1, CP), jnp.float32),
        ),
        grid=(B, T),
        in_specs=[
            pl.BlockSpec((1, HW, CP), lambda b, t: (b, 0, 0)),   # whole sample,
            pl.BlockSpec((1, CP), lambda b, t: (0, 0)),          # resident over t
            pl.BlockSpec((1, CP), lambda b, t: (0, 0)),
            pl.BlockSpec((Cin, hidden), lambda b, t: (0, 0)),
            pl.BlockSpec((hidden, K), lambda b, t: (0, 0)),
            pl.BlockSpec((1, K), lambda b, t: (0, 0)),
            pl.BlockSpec((K, 9 * Cin, CP), lambda b, t: (0, 0, 0)),
            pl.BlockSpec((K, 1, CP), lambda b, t: (0, 0, 0)),
        ],
        out_specs=(
            pl.BlockSpec((1, R * W, CP), lambda b, t: (b, t, 0)),
            pl.BlockSpec((1, 1, CP), lambda b, t: (b, 0, 0)),
            pl.BlockSpec((1, 1, CP), lambda b, t: (b, 0, 0)),
        ),
        scratch_shapes=[
            pltpu.VMEM((R, W, 9 * Cin), jnp.float32),
            pltpu.VMEM((9 * Cin, CP), jnp.bfloat16),
            pltpu.VMEM((1, CP), jnp.float32),
        ],
        compiler_params=pltpu.CompilerParams(
            dimension_semantics=("parallel", "arbitrary"),
            vmem_limit_bytes=vmem),
    )(x_packed, bn_mean, bn_inv, p["w1"], p["w2"], p["b2"],
      p["wbank"], p["bbank"])
    return y, s, q


def _bn_relu(y_packed, mean, inv, *, H, W):
    B, HW, _ = y_packed.shape
    R = _pick_rows_per_tile(H, W, 0, budget_bytes=8 << 20)
    blk = R * W
    T = HW // blk
    return pl.pallas_call(
        _bn_relu_kernel,
        out_shape=jax.ShapeDtypeStruct((B, HW, CP), y_packed.dtype),
        grid=(B, T),
        in_specs=[
            pl.BlockSpec((1, blk, CP), lambda b, t: (b, t, 0)),
            pl.BlockSpec((1, CP), lambda b, t: (0, 0)),
            pl.BlockSpec((1, CP), lambda b, t: (0, 0)),
        ],
        out_specs=pl.BlockSpec((1, blk, CP), lambda b, t: (b, t, 0)),
        input_output_aliases={0: 0},   # overwrite y in place: one less HBM buffer
        compiler_params=pltpu.CompilerParams(
            dimension_semantics=("parallel", "parallel")),
    )(y_packed, mean, inv)


def _batch_stats(s, q, count, eps=_EPS):
    # Finish train-mode BatchNorm statistics on tiny (B, 1, CP) f32 partials.
    # TODO(synk): E[y^2]-E[y]^2 can cancel badly if |mean| >> std.
    mean = jnp.sum(s, axis=0) / count                               # (1, CP)
    var = jnp.maximum(jnp.sum(q, axis=0) / count - mean * mean, 0.0)
    inv = jax.lax.rsqrt(var + eps)
    return mean, inv


def _pack_nchw(x_nchw):
    B, C, H, W = x_nchw.shape
    x = jnp.transpose(x_nchw, (0, 2, 3, 1)).reshape(B, H * W, C)
    return jnp.pad(x, ((0, 0), (0, 0), (0, CP - C))).astype(jnp.float32)


def _unpack_to_nchw(y_packed, C, H, W):
    B = y_packed.shape[0]
    y = y_packed[:, :, :C].reshape(B, H, W, C).astype(jnp.float32)
    return jnp.transpose(y, (0, 3, 1, 2))


# ----------------------------- model assembly -----------------------------

def _init_dynamic_conv(key, in_planes, out_planes, K=4, ratio=0.25, ksize=3):
    assert in_planes <= CP and out_planes <= CP
    hidden = K if in_planes == 3 else int(in_planes * ratio) + 1
    k1, k2, k3 = jax.random.split(key, 3)
    # attention2d: fc1 (hidden <- in, no bias), fc2 (K <- hidden, bias = 0)
    w1 = jax.random.normal(k1, (in_planes, hidden), jnp.float32) * jnp.sqrt(2.0 / in_planes)
    w2 = jax.random.normal(k2, (hidden, K), jnp.float32) * jnp.sqrt(2.0 / hidden)
    b2 = jnp.zeros((1, K), jnp.float32)
    # K conv weight banks, pre-flattened to (K, 9*in, out) with row order
    # (kh, kw, cin), output channels zero-padded to CP, stored in bf16
    # (MXU-native on v5e/v6e/v7x; f32 accumulation happens in the kernel).
    fan_in = in_planes * ksize * ksize
    w = jax.random.normal(k3, (K, ksize * ksize * in_planes, out_planes),
                          jnp.float32) * jnp.sqrt(2.0 / fan_in)
    wbank = jnp.pad(w, ((0, 0), (0, 0), (0, CP - out_planes))).astype(jnp.bfloat16)
    bbank = jnp.zeros((K, 1, CP), jnp.float32)          # PyTorch init: bias = 0
    return dict(w1=w1, w2=w2, b2=b2, wbank=wbank, bbank=bbank,
                out_planes=out_planes)


def init_conv_block_dconv(key, ch_in, ch_out):
    k1, k2 = jax.random.split(key)
    return dict(dc1=_init_dynamic_conv(k1, ch_in, ch_out),
                dc2=_init_dynamic_conv(k2, ch_out, ch_out))


def dynamic_conv2d_apply(x_nchw, p, temperature=_TEMPERATURE, rows_per_tile=None):
    """Standalone Dynamic_conv2d forward (3x3, stride 1, padding 1). NCHW f32."""
    B, C, H, W = x_nchw.shape
    x_packed = _pack_nchw(x_nchw)
    zeros = jnp.zeros((1, CP), jnp.float32)
    ones = jnp.ones((1, CP), jnp.float32)
    y, _, _ = _dynamic_conv_layer(x_packed, p, zeros, ones, H=H, W=W,
                                  apply_bn=False, temperature=temperature,
                                  out_dtype=jnp.float32,
                                  rows_per_tile=rows_per_tile)
    return _unpack_to_nchw(y, p["out_planes"], H, W)


def conv_block_dconv_apply(x_nchw, params, temperature=_TEMPERATURE, eps=_EPS,
                           rows_per_tile=None):
    """(Dynamic_conv2d -> BatchNorm2d -> ReLU) x 2, NCHW in / NCHW out."""
    B, C, H, W = x_nchw.shape
    n = float(B * H * W)
    x_packed = _pack_nchw(x_nchw)
    zeros = jnp.zeros((1, CP), jnp.float32)
    ones = jnp.ones((1, CP), jnp.float32)

    # layer 1: fused attention + conv (+ BN-stat epilogue), bf16 activation out
    y1, s1, q1 = _dynamic_conv_layer(x_packed, params["dc1"], zeros, ones,
                                     H=H, W=W, apply_bn=False,
                                     temperature=temperature,
                                     out_dtype=jnp.bfloat16,
                                     rows_per_tile=rows_per_tile)
    m1, i1 = _batch_stats(s1, q1, n, eps)
    # layer 2: BN1 + ReLU1 are applied on load inside this kernel
    y2, s2, q2 = _dynamic_conv_layer(y1, params["dc2"], m1, i1,
                                     H=H, W=W, apply_bn=True,
                                     temperature=temperature,
                                     out_dtype=jnp.bfloat16,
                                     rows_per_tile=rows_per_tile)
    m2, i2 = _batch_stats(s2, q2, n, eps)
    out = _bn_relu(y2, m2, i2, H=H, W=W)
    return _unpack_to_nchw(out, params["dc2"]["out_planes"], H, W)


# ------------------------------ pure-JAX reference ------------------------------

def _reference_dynamic_conv2d(x, p, temperature=_TEMPERATURE):
    """f32 reference for Dynamic_conv2d (3x3, stride 1, padding 1)."""
    B, C, H, W = x.shape
    Cout = p["out_planes"]
    K = p["w2"].shape[1]
    pooled = jnp.mean(x, axis=(2, 3))                                 # (B, C)
    h = jnp.maximum(pooled @ p["w1"], 0.0)
    att = jax.nn.softmax((h @ p["w2"] + p["b2"]) / temperature, axis=-1)
    wb = p["wbank"].astype(jnp.float32)[:, :, :Cout].reshape(K, 3, 3, C, Cout)
    agg_w = jnp.einsum("bk,kxyio->bxyio", att, wb)                    # (B,3,3,C,Cout)
    bb = p["bbank"].astype(jnp.float32)[:, 0, :Cout]                  # (K, Cout)
    agg_b = att @ bb                                                  # (B, Cout)

    def one(xi, wi, bi):
        out = jax.lax.conv_general_dilated(
            xi[None], wi, window_strides=(1, 1), padding=((1, 1), (1, 1)),
            dimension_numbers=("NCHW", "HWIO", "NCHW"),
            precision=jax.lax.Precision.HIGHEST)[0]
        return out + bi[:, None, None]

    return jax.vmap(one)(x, agg_w, agg_b)


# ----------------------------------- main -----------------------------------

if __name__ == "__main__":
    ch_in, ch_out = 4, 8
    B, H, W = 2, 16, 16

    key = jax.random.PRNGKey(0)
    kp, kx = jax.random.split(key)
    params = init_conv_block_dconv(kp, ch_in, ch_out)
    x = jax.random.normal(kx, (B, ch_in, H, W), jnp.float32)

    # standalone Dynamic_conv2d (the spec module), default single H-tile grid
    dconv = jax.jit(lambda xx: dynamic_conv2d_apply(xx, params["dc1"]))
    y = jax.block_until_ready(dconv(x))
    assert y.shape == (B, ch_out, H, W), y.shape

    # same layer with a forced 2-tile H split (exercises the halo exchange path)
    dconv_t = jax.jit(
        lambda xx: dynamic_conv2d_apply(xx, params["dc1"], rows_per_tile=8))
    y_t = jax.block_until_ready(dconv_t(x))

    # pure-JAX f32 reference; kernel uses bf16 MXU inputs -> loose tolerance
    y_ref = jax.jit(lambda xx: _reference_dynamic_conv2d(xx, params["dc1"]))(x)
    assert bool(jnp.allclose(y, y_ref, rtol=5e-2, atol=1e-1))
    assert bool(jnp.allclose(y_t, y_ref, rtol=5e-2, atol=1e-1))

    # full conv_block_DConv forward
    fwd = jax.jit(lambda xx: conv_block_dconv_apply(xx, params))
    out = jax.block_until_ready(fwd(x))
    assert out.shape == (B, ch_out, H, W), out.shape
    assert bool(jnp.all(jnp.isfinite(out)))
    print("KERNEL_OK")
</pallas_src>

<mosaic_0001>
module attributes {stable_mosaic.version = 11 : i64} {
  func.func @_dconv_kernel(%arg0: i32, %arg1: i32, %arg2: memref<1x256x128xf32, #tpu.memory_space<vmem>>, %arg3: memref<1x128xf32, #tpu.memory_space<vmem>>, %arg4: memref<1x128xf32, #tpu.memory_space<vmem>>, %arg5: memref<4x2xf32, #tpu.memory_space<vmem>>, %arg6: memref<2x4xf32, #tpu.memory_space<vmem>>, %arg7: memref<1x4xf32, #tpu.memory_space<vmem>>, %arg8: memref<4x36x128xbf16, #tpu.memory_space<vmem>>, %arg9: memref<4x1x128xf32, #tpu.memory_space<vmem>>, %arg10: memref<1x256x128xf32, #tpu.memory_space<vmem>>, %arg11: memref<1x1x128xf32, #tpu.memory_space<vmem>>, %arg12: memref<1x1x128xf32, #tpu.memory_space<vmem>>, %arg13: memref<16x16x36xf32, #tpu.memory_space<vmem>>, %arg14: memref<36x128xbf16, #tpu.memory_space<vmem>>, %arg15: memref<1x128xf32, #tpu.memory_space<vmem>>) attributes {dimension_semantics = [#tpu.dimension_semantics<parallel>, #tpu.dimension_semantics<arbitrary>], iteration_bounds = array<i64: 2, 1>, scalar_prefetch = 0 : i64, scratch_operands = 3 : i64, tpu.core_type = #tpu.core_type<tc>, window_params = [{transform_indices = @transform_0, window_bounds = array<i64: 1, 256, 128>}, {pipeline_mode = #tpu.pipeline_mode<synchronous>, transform_indices = @transform_1, window_bounds = array<i64: 1, 128>}, {pipeline_mode = #tpu.pipeline_mode<synchronous>, transform_indices = @transform_2, window_bounds = array<i64: 1, 128>}, {pipeline_mode = #tpu.pipeline_mode<synchronous>, transform_indices = @transform_3, window_bounds = array<i64: 4, 2>}, {pipeline_mode = #tpu.pipeline_mode<synchronous>, transform_indices = @transform_4, window_bounds = array<i64: 2, 4>}, {pipeline_mode = #tpu.pipeline_mode<synchronous>, transform_indices = @transform_5, window_bounds = array<i64: 1, 4>}, {pipeline_mode = #tpu.pipeline_mode<synchronous>, transform_indices = @transform_6, window_bounds = array<i64: 4, 36, 128>}, {pipeline_mode = #tpu.pipeline_mode<synchronous>, transform_indices = @transform_7, window_bounds = array<i64: 4, 1, 128>}, {transform_indices = @transform_8, window_bounds = array<i64: 1, 256, 128>}, {transform_indices = @transform_9, window_bounds = array<i64: 1, 1, 128>}, {transform_indices = @transform_10, window_bounds = array<i64: 1, 1, 128>}]} {
    %c16_i32 = arith.constant 16 : i32
    %0 = arith.muli %arg1, %c16_i32 : i32
    %c0_i32 = arith.constant 0 : i32
    %1 = arith.cmpi eq, %arg1, %c0_i32 : i32
    %2 = arith.extui %1 : i1 to i32
    %c0_i32_0 = arith.constant 0 : i32
    %3 = arith.cmpi ne, %2, %c0_i32_0 : i32
    scf.if %3 {
      %c0_83 = arith.constant 0 : index
      %c0_84 = arith.constant 0 : index
      %c0_85 = arith.constant 0 : index
      %92 = vector.load %arg2[%c0_83, %c0_84, %c0_85] : memref<1x256x128xf32, #tpu.memory_space<vmem>>, vector<1x256x128xf32>
      %93 = vector.shape_cast %92 : vector<1x256x128xf32> to vector<256x128xf32>
      %94 = vector.extract_strided_slice %93 {offsets = [0, 0], sizes = [256, 4], strides = [1, 1]} : vector<256x128xf32> to vector<256x4xf32>
      %cst_86 = arith.constant dense<0.000000e+00> : vector<4xf32>
      %95 = vector.multi_reduction <add>, %94, %cst_86 [0] : vector<256x4xf32> to vector<4xf32>
      %96 = vector.shape_cast %95 : vector<4xf32> to vector<1x4xf32>
      %cst_87 = arith.constant 2.560000e+02 : f32
      %97 = vector.broadcast %cst_87 : f32 to vector<1x4xf32>
      %98 = arith.divf %96, %97 : vector<1x4xf32>
      %c0_88 = arith.constant 0 : index
      %c0_89 = arith.constant 0 : index
      %99 = vector.load %arg5[%c0_88, %c0_89] : memref<4x2xf32, #tpu.memory_space<vmem>>, vector<4x2xf32>
      %cst_90 = arith.constant dense<0.000000e+00> : vector<1x2xf32>
      %100 = tpu.matmul %98, %99, %cst_90 {dimension_numbers = #tpu.dot_dimension_numbers<[1], [0], [0], [1], [0, 0, 1, 1], [], []>} : vector<1x4xf32>, vector<4x2xf32>, vector<1x2xf32> -> vector<1x2xf32>
      %cst_91 = arith.constant 0.000000e+00 : f32
      %101 = vector.broadcast %cst_91 : f32 to vector<1x2xf32>
      %102 = arith.maximumf %100, %101 : vector<1x2xf32>
      %c0_92 = arith.constant 0 : index
      %c0_93 = arith.constant 0 : index
      %103 = vector.load %arg6[%c0_92, %c0_93] : memref<2x4xf32, #tpu.memory_space<vmem>>, vector<2x4xf32>
      %cst_94 = arith.constant dense<0.000000e+00> : vector<1x4xf32>
      %104 = tpu.matmul %102, %103, %cst_94 {dimension_numbers = #tpu.dot_dimension_numbers<[1], [0], [0], [1], [0, 0, 1, 1], [], []>} : vector<1x2xf32>, vector<2x4xf32>, vector<1x4xf32> -> vector<1x4xf32>
      %c0_95 = arith.constant 0 : index
      %c0_96 = arith.constant 0 : index
      %105 = vector.load %arg7[%c0_95, %c0_96] : memref<1x4xf32, #tpu.memory_space<vmem>>, vector<1x4xf32>
      %106 = arith.addf %104, %105 : vector<1x4xf32>
      %cst_97 = arith.constant 3.400000e+01 : f32
      %107 = vector.broadcast %cst_97 : f32 to vector<1x4xf32>
      %108 = arith.divf %106, %107 : vector<1x4xf32>
      %cst_98 = arith.constant dense<0xFF800000> : vector<1xf32>
      %109 = vector.multi_reduction <maximumf>, %108, %cst_98 [1] : vector<1x4xf32> to vector<1xf32>
      %110 = vector.shape_cast %109 : vector<1xf32> to vector<1x1xf32>
      %111 = vector.broadcast %110 : vector<1x1xf32> to vector<1x4xf32>
      %112 = arith.subf %108, %111 : vector<1x4xf32>
      %113 = math.exp %112 : vector<1x4xf32>
      %cst_99 = arith.constant dense<0.000000e+00> : vector<1xf32>
      %114 = vector.multi_reduction <add>, %113, %cst_99 [1] : vector<1x4xf32> to vector<1xf32>
      %115 = vector.shape_cast %114 : vector<1xf32> to vector<1x1xf32>
      %116 = vector.broadcast %115 : vector<1x1xf32> to vector<1x4xf32>
      %117 = arith.divf %113, %116 : vector<1x4xf32>
      %118 = vector.extract_strided_slice %117 {offsets = [0, 0], sizes = [1, 1], strides = [1, 1]} : vector<1x4xf32> to vector<1x1xf32>
      %c0_100 = arith.constant 0 : index
      %c0_101 = arith.constant 0 : index
      %c0_102 = arith.constant 0 : index
      %119 = vector.load %arg8[%c0_100, %c0_101, %c0_102] : memref<4x36x128xbf16, #tpu.memory_space<vmem>>, vector<1x36x128xbf16>
      %120 = vector.shape_cast %119 : vector<1x36x128xbf16> to vector<36x128xbf16>
      %121 = arith.extf %120 : vector<36x128xbf16> to vector<36x128xf32>
      %122 = vector.broadcast %118 : vector<1x1xf32> to vector<36x128xf32>
      %123 = arith.mulf %122, %121 : vector<36x128xf32>
      %124 = vector.extract_strided_slice %117 {offsets = [0, 0], sizes = [1, 1], strides = [1, 1]} : vector<1x4xf32> to vector<1x1xf32>
      %c0_103 = arith.constant 0 : index
      %c0_104 = arith.constant 0 : index
      %c0_105 = arith.constant 0 : index
      %125 = vector.load %arg9[%c0_103, %c0_104, %c0_105] : memref<4x1x128xf32, #tpu.memory_space<vmem>>, vector<1x1x128xf32>
      %126 = vector.shape_cast %125 : vector<1x1x128xf32> to vector<1x128xf32>
      %127 = vector.broadcast %124 : vector<1x1xf32> to vector<1x128xf32>
      %128 = arith.mulf %127, %126 : vector<1x128xf32>
      %129 = vector.extract_strided_slice %117 {offsets = [0, 1], sizes = [1, 1], strides = [1, 1]} : vector<1x4xf32> to vector<1x1xf32>
      %c1_106 = arith.constant 1 : index
      %c0_107 = arith.constant 0 : index
      %c0_108 = arith.constant 0 : index
      %130 = vector.load %arg8[%c1_106, %c0_107, %c0_108] : memref<4x36x128xbf16, #tpu.memory_space<vmem>>, vector<1x36x128xbf16>
      %131 = vector.shape_cast %130 : vector<1x36x128xbf16> to vector<36x128xbf16>
      %132 = arith.extf %131 : vector<36x128xbf16> to vector<36x128xf32>
      %133 = vector.broadcast %129 : vector<1x1xf32> to vector<36x128xf32>
      %134 = arith.mulf %133, %132 : vector<36x128xf32>
      %135 = arith.addf %123, %134 : vector<36x128xf32>
      %c1_109 = arith.constant 1 : index
      %c0_110 = arith.constant 0 : index
      %c0_111 = arith.constant 0 : index
      %136 = vector.load %arg9[%c1_109, %c0_110, %c0_111] : memref<4x1x128xf32, #tpu.memory_space<vmem>>, vector<1x1x128xf32>
      %137 = vector.shape_cast %136 : vector<1x1x128xf32> to vector<1x128xf32>
      %138 = vector.broadcast %129 : vector<1x1xf32> to vector<1x128xf32>
      %139 = arith.mulf %138, %137 : vector<1x128xf32>
      %140 = arith.addf %128, %139 : vector<1x128xf32>
      %141 = vector.extract_strided_slice %117 {offsets = [0, 2], sizes = [1, 1], strides = [1, 1]} : vector<1x4xf32> to vector<1x1xf32>
      %c2 = arith.constant 2 : index
      %c0_112 = arith.constant 0 : index
      %c0_113 = arith.constant 0 : index
      %142 = vector.load %arg8[%c2, %c0_112, %c0_113] : memref<4x36x128xbf16, #tpu.memory_space<vmem>>, vector<1x36x128xbf16>
      %143 = vector.shape_cast %142 : vector<1x36x128xbf16> to vector<36x128xbf16>
      %144 = arith.extf %143 : vector<36x128xbf16> to vector<36x128xf32>
      %145 = vector.broadcast %141 : vector<1x1xf32> to vector<36x128xf32>
      %146 = arith.mulf %145, %144 : vector<36x128xf32>
      %147 = arith.addf %135, %146 : vector<36x128xf32>
      %c2_114 = arith.constant 2 : index
      %c0_115 = arith.constant 0 : index
      %c0_116 = arith.constant 0 : index
      %148 = vector.load %arg9[%c2_114, %c0_115, %c0_116] : memref<4x1x128xf32, #tpu.memory_space<vmem>>, vector<1x1x128xf32>
      %149 = vector.shape_cast %148 : vector<1x1x128xf32> to vector<1x128xf32>
      %150 = vector.broadcast %141 : vector<1x1xf32> to vector<1x128xf32>
      %151 = arith.mulf %150, %149 : vector<1x128xf32>
      %152 = arith.addf %140, %151 : vector<1x128xf32>
      %153 = vector.extract_strided_slice %117 {offsets = [0, 3], sizes = [1, 1], strides = [1, 1]} : vector<1x4xf32> to vector<1x1xf32>
      %c3 = arith.constant 3 : index
      %c0_117 = arith.constant 0 : index
      %c0_118 = arith.constant 0 : index
      %154 = vector.load %arg8[%c3, %c0_117, %c0_118] : memref<4x36x128xbf16, #tpu.memory_space<vmem>>, vector<1x36x128xbf16>
      %155 = vector.shape_cast %154 : vector<1x36x128xbf16> to vector<36x128xbf16>
      %156 = arith.extf %155 : vector<36x128xbf16> to vector<36x128xf32>
      %157 = vector.broadcast %153 : vector<1x1xf32> to vector<36x128xf32>
      %158 = arith.mulf %157, %156 : vector<36x128xf32>
      %159 = arith.addf %147, %158 : vector<36x128xf32>
      %c3_119 = arith.constant 3 : index
      %c0_120 = arith.constant 0 : index
      %c0_121 = arith.constant 0 : index
      %160 = vector.load %arg9[%c3_119, %c0_120, %c0_121] : memref<4x1x128xf32, #tpu.memory_space<vmem>>, vector<1x1x128xf32>
      %161 = vector.shape_cast %160 : vector<1x1x128xf32> to vector<1x128xf32>
      %162 = vector.broadcast %153 : vector<1x1xf32> to vector<1x128xf32>
      %163 = arith.mulf %162, %161 : vector<1x128xf32>
      %164 = arith.addf %152, %163 : vector<1x128xf32>
      %165 = arith.truncf %159 : vector<36x128xf32> to vector<36x128xbf16>
      %c0_122 = arith.constant 0 : index
      %c0_123 = arith.constant 0 : index
      %166 = vector.load %arg14[%c0_122, %c0_123] : memref<36x128xbf16, #tpu.memory_space<vmem>>, vector<36x128xbf16>
      tpu.vector_store %arg14[%c0_122, %c0_123], %165 {strides = array<i32>} : memref<36x128xbf16, #tpu.memory_space<vmem>>, vector<36x128xbf16>,
      %c0_124 = arith.constant 0 : index
      %c0_125 = arith.constant 0 : index
      %167 = vector.load %arg15[%c0_124, %c0_125] : memref<1x128xf32, #tpu.memory_space<vmem>>, vector<1x128xf32>
      tpu.vector_store %arg15[%c0_124, %c0_125], %164 {strides = array<i32>} : memref<1x128xf32, #tpu.memory_space<vmem>>, vector<1x128xf32>,
    } else {
    }
    %c16_i32_1 = arith.constant 16 : i32
    %4 = arith.muli %0, %c16_i32_1 : i32
    %c0 = arith.constant 0 : index
    %5 = arith.index_cast %4 : i32 to index
    %c0_2 = arith.constant 0 : index
    %6 = vector.load %arg2[%c0, %5, %c0_2] : memref<1x256x128xf32, #tpu.memory_space<vmem>>, vector<1x256x128xf32>
    %7 = vector.extract_strided_slice %6 {offsets = [0, 0, 0], sizes = [1, 256, 4], strides = [1, 1, 1]} : vector<1x256x128xf32> to vector<1x256x4xf32>
    %8 = vector.shape_cast %7 : vector<1x256x4xf32> to vector<256x4xf32>
    %9 = vector.shape_cast %8 : vector<256x4xf32> to vector<16x16x4xf32>
    %c1_i32 = arith.constant 1 : i32
    %10 = arith.subi %0, %c1_i32 : i32
    %c0_i32_3 = arith.constant 0 : i32
    %11 = arith.maxsi %10, %c0_i32_3 : i32
    %c16_i32_4 = arith.constant 16 : i32
    %12 = arith.muli %11, %c16_i32_4 : i32
    %c0_5 = arith.constant 0 : index
    %13 = arith.index_cast %12 : i32 to index
    %c0_6 = arith.constant 0 : index
    %14 = vector.load %arg2[%c0_5, %13, %c0_6] : memref<1x256x128xf32, #tpu.memory_space<vmem>>, vector<1x16x128xf32>
    %15 = vector.extract_strided_slice %14 {offsets = [0, 0, 0], sizes = [1, 16, 4], strides = [1, 1, 1]} : vector<1x16x128xf32> to vector<1x16x4xf32>
    %16 = vector.shape_cast %15 : vector<1x16x4xf32> to vector<16x4xf32>
    %17 = vector.shape_cast %16 : vector<16x4xf32> to vector<1x16x4xf32>
    %c16_i32_7 = arith.constant 16 : i32
    %18 = arith.addi %0, %c16_i32_7 : i32
    %c15_i32 = arith.constant 15 : i32
    %19 = arith.minsi %18, %c15_i32 : i32
    %c16_i32_8 = arith.constant 16 : i32
    %20 = arith.muli %19, %c16_i32_8 : i32
    %c0_9 = arith.constant 0 : index
    %21 = arith.index_cast %20 : i32 to index
    %c0_10 = arith.constant 0 : index
    %22 = vector.load %arg2[%c0_9, %21, %c0_10] : memref<1x256x128xf32, #tpu.memory_space<vmem>>, vector<1x16x128xf32>
    %23 = vector.extract_strided_slice %22 {offsets = [0, 0, 0], sizes = [1, 16, 4], strides = [1, 1, 1]} : vector<1x16x128xf32> to vector<1x16x4xf32>
    %24 = vector.shape_cast %23 : vector<1x16x4xf32> to vector<16x4xf32>
    %25 = vector.shape_cast %24 : vector<16x4xf32> to vector<1x16x4xf32>
    %c0_i32_11 = arith.constant 0 : i32
    %26 = arith.cmpi sgt, %arg1, %c0_i32_11 : i32
    %27 = arith.extui %26 : i1 to i32
    %28 = arith.sitofp %27 : i32 to f32
    %29 = vector.broadcast %28 : f32 to vector<1x16x4xf32>
    %30 = arith.mulf %17, %29 : vector<1x16x4xf32>
    %c0_i32_12 = arith.constant 0 : i32
    %31 = arith.cmpi slt, %arg1, %c0_i32_12 : i32
    %32 = arith.extui %31 : i1 to i32
    %33 = arith.sitofp %32 : i32 to f32
    %34 = vector.broadcast %33 : f32 to vector<1x16x4xf32>
    %35 = arith.mulf %25, %34 : vector<1x16x4xf32>
    %cst = arith.constant 0.000000e+00 : f32
    %36 = vector.broadcast %cst : f32 to vector<16x1x4xf32>
    %c0_13 = arith.constant 0 : index
    %c0_14 = arith.constant 0 : index
    %c0_15 = arith.constant 0 : index
    %37 = vector.load %arg13[%c0_13, %c0_14, %c0_15] : memref<16x16x36xf32, #tpu.memory_space<vmem>>, vector<16x1x4xf32>
    tpu.vector_store %arg13[%c0_13, %c0_14, %c0_15], %36 {strides = array<i32>} : memref<16x16x36xf32, #tpu.memory_space<vmem>>, vector<16x1x4xf32>,
    %38 = vector.extract_strided_slice %9 {offsets = [0, 0, 0], sizes = [15, 15, 4], strides = [1, 1, 1]} : vector<16x16x4xf32> to vector<15x15x4xf32>
    %c1 = arith.constant 1 : index
    %c1_16 = arith.constant 1 : index
    %c0_17 = arith.constant 0 : index
    %39 = vector.load %arg13[%c1, %c1_16, %c0_17] : memref<16x16x36xf32, #tpu.memory_space<vmem>>, vector<15x15x4xf32>
    tpu.vector_store %arg13[%c1, %c1_16, %c0_17], %38 {strides = array<i32>} : memref<16x16x36xf32, #tpu.memory_space<vmem>>, vector<15x15x4xf32>,
    %40 = vector.extract_strided_slice %30 {offsets = [0, 0, 0], sizes = [1, 15, 4], strides = [1, 1, 1]} : vector<1x16x4xf32> to vector<1x15x4xf32>
    %c0_18 = arith.constant 0 : index
    %c1_19 = arith.constant 1 : index
    %c0_20 = arith.constant 0 : index
    %41 = vector.load %arg13[%c0_18, %c1_19, %c0_20] : memref<16x16x36xf32, #tpu.memory_space<vmem>>, vector<1x15x4xf32>
    tpu.vector_store %arg13[%c0_18, %c1_19, %c0_20], %40 {strides = array<i32>} : memref<16x16x36xf32, #tpu.memory_space<vmem>>, vector<1x15x4xf32>,
    %42 = vector.extract_strided_slice %9 {offsets = [0, 0, 0], sizes = [15, 16, 4], strides = [1, 1, 1]} : vector<16x16x4xf32> to vector<15x16x4xf32>
    %c1_21 = arith.constant 1 : index
    %c0_22 = arith.constant 0 : index
    %c4 = arith.constant 4 : index
    %43 = vector.load %arg13[%c1_21, %c0_22, %c4] : memref<16x16x36xf32, #tpu.memory_space<vmem>>, vector<15x16x4xf32>
    tpu.vector_store %arg13[%c1_21, %c0_22, %c4], %42 {strides = array<i32>} : memref<16x16x36xf32, #tpu.memory_space<vmem>>, vector<15x16x4xf32>,
    %c0_23 = arith.constant 0 : index
    %c0_24 = arith.constant 0 : index
    %c4_25 = arith.constant 4 : index
    %44 = vector.load %arg13[%c0_23, %c0_24, %c4_25] : memref<16x16x36xf32, #tpu.memory_space<vmem>>, vector<1x16x4xf32>
    tpu.vector_store %arg13[%c0_23, %c0_24, %c4_25], %30 {strides = array<i32>} : memref<16x16x36xf32, #tpu.memory_space<vmem>>, vector<1x16x4xf32>,
    %c0_26 = arith.constant 0 : index
    %c15 = arith.constant 15 : index
    %c8 = arith.constant 8 : index
    %45 = vector.load %arg13[%c0_26, %c15, %c8] : memref<16x16x36xf32, #tpu.memory_space<vmem>>, vector<16x1x4xf32>
    tpu.vector_store %arg13[%c0_26, %c15, %c8], %36 {strides = array<i32>} : memref<16x16x36xf32, #tpu.memory_space<vmem>>, vector<16x1x4xf32>,
    %46 = vector.extract_strided_slice %9 {offsets = [0, 1, 0], sizes = [15, 15, 4], strides = [1, 1, 1]} : vector<16x16x4xf32> to vector<15x15x4xf32>
    %c1_27 = arith.constant 1 : index
    %c0_28 = arith.constant 0 : index
    %c8_29 = arith.constant 8 : index
    %47 = vector.load %arg13[%c1_27, %c0_28, %c8_29] : memref<16x16x36xf32, #tpu.memory_space<vmem>>, vector<15x15x4xf32>
    tpu.vector_store %arg13[%c1_27, %c0_28, %c8_29], %46 {strides = array<i32>} : memref<16x16x36xf32, #tpu.memory_space<vmem>>, vector<15x15x4xf32>,
    %48 = vector.extract_strided_slice %30 {offsets = [0, 1, 0], sizes = [1, 15, 4], strides = [1, 1, 1]} : vector<1x16x4xf32> to vector<1x15x4xf32>
    %c0_30 = arith.constant 0 : index
    %c0_31 = arith.constant 0 : index
    %c8_32 = arith.constant 8 : index
    %49 = vector.load %arg13[%c0_30, %c0_31, %c8_32] : memref<16x16x36xf32, #tpu.memory_space<vmem>>, vector<1x15x4xf32>
    tpu.vector_store %arg13[%c0_30, %c0_31, %c8_32], %48 {strides = array<i32>} : memref<16x16x36xf32, #tpu.memory_space<vmem>>, vector<1x15x4xf32>,
    %c0_33 = arith.constant 0 : index
    %c0_34 = arith.constant 0 : index
    %c12 = arith.constant 12 : index
    %50 = vector.load %arg13[%c0_33, %c0_34, %c12] : memref<16x16x36xf32, #tpu.memory_space<vmem>>, vector<16x1x4xf32>
    tpu.vector_store %arg13[%c0_33, %c0_34, %c12], %36 {strides = array<i32>} : memref<16x16x36xf32, #tpu.memory_space<vmem>>, vector<16x1x4xf32>,
    %51 = vector.extract_strided_slice %9 {offsets = [0, 0, 0], sizes = [16, 15, 4], strides = [1, 1, 1]} : vector<16x16x4xf32> to vector<16x15x4xf32>
    %c0_35 = arith.constant 0 : index
    %c1_36 = arith.constant 1 : index
    %c12_37 = arith.constant 12 : index
    %52 = vector.load %arg13[%c0_35, %c1_36, %c12_37] : memref<16x16x36xf32, #tpu.memory_space<vmem>>, vector<16x15x4xf32>
    tpu.vector_store %arg13[%c0_35, %c1_36, %c12_37], %51 {strides = array<i32>} : memref<16x16x36xf32, #tpu.memory_space<vmem>>, vector<16x15x4xf32>,
    %c0_38 = arith.constant 0 : index
    %c0_39 = arith.constant 0 : index
    %c16 = arith.constant 16 : index
    %53 = vector.load %arg13[%c0_38, %c0_39, %c16] : memref<16x16x36xf32, #tpu.memory_space<vmem>>, vector<16x16x4xf32>
    tpu.vector_store %arg13[%c0_38, %c0_39, %c16], %9 {strides = array<i32>} : memref<16x16x36xf32, #tpu.memory_space<vmem>>, vector<16x16x4xf32>,
    %c0_40 = arith.constant 0 : index
    %c15_41 = arith.constant 15 : index
    %c20 = arith.constant 20 : index
    %54 = vector.load %arg13[%c0_40, %c15_41, %c20] : memref<16x16x36xf32, #tpu.memory_space<vmem>>, vector<16x1x4xf32>
    tpu.vector_store %arg13[%c0_40, %c15_41, %c20], %36 {strides = array<i32>} : memref<16x16x36xf32, #tpu.memory_space<vmem>>, vector<16x1x4xf32>,
    %55 = vector.extract_strided_slice %9 {offsets = [0, 1, 0], sizes = [16, 15, 4], strides = [1, 1, 1]} : vector<16x16x4xf32> to vector<16x15x4xf32>
    %c0_42 = arith.constant 0 : index
    %c0_43 = arith.constant 0 : index
    %c20_44 = arith.constant 20 : index
    %56 = vector.load %arg13[%c0_42, %c0_43, %c20_44] : memref<16x16x36xf32, #tpu.memory_space<vmem>>, vector<16x15x4xf32>
    tpu.vector_store %arg13[%c0_42, %c0_43, %c20_44], %55 {strides = array<i32>} : memref<16x16x36xf32, #tpu.memory_space<vmem>>, vector<16x15x4xf32>,
    %c0_45 = arith.constant 0 : index
    %c0_46 = arith.constant 0 : index
    %c24 = arith.constant 24 : index
    %57 = vector.load %arg13[%c0_45, %c0_46, %c24] : memref<16x16x36xf32, #tpu.memory_space<vmem>>, vector<16x1x4xf32>
    tpu.vector_store %arg13[%c0_45, %c0_46, %c24], %36 {strides = array<i32>} : memref<16x16x36xf32, #tpu.memory_space<vmem>>, vector<16x1x4xf32>,
    %58 = vector.extract_strided_slice %9 {offsets = [1, 0, 0], sizes = [15, 15, 4], strides = [1, 1, 1]} : vector<16x16x4xf32> to vector<15x15x4xf32>
    %c0_47 = arith.constant 0 : index
    %c1_48 = arith.constant 1 : index
    %c24_49 = arith.constant 24 : index
    %59 = vector.load %arg13[%c0_47, %c1_48, %c24_49] : memref<16x16x36xf32, #tpu.memory_space<vmem>>, vector<15x15x4xf32>
    tpu.vector_store %arg13[%c0_47, %c1_48, %c24_49], %58 {strides = array<i32>} : memref<16x16x36xf32, #tpu.memory_space<vmem>>, vector<15x15x4xf32>,
    %60 = vector.extract_strided_slice %35 {offsets = [0, 0, 0], sizes = [1, 15, 4], strides = [1, 1, 1]} : vector<1x16x4xf32> to vector<1x15x4xf32>
    %c15_50 = arith.constant 15 : index
    %c1_51 = arith.constant 1 : index
    %c24_52 = arith.constant 24 : index
    %61 = vector.load %arg13[%c15_50, %c1_51, %c24_52] : memref<16x16x36xf32, #tpu.memory_space<vmem>>, vector<1x15x4xf32>
    tpu.vector_store %arg13[%c15_50, %c1_51, %c24_52], %60 {strides = array<i32>} : memref<16x16x36xf32, #tpu.memory_space<vmem>>, vector<1x15x4xf32>,
    %62 = vector.extract_strided_slice %9 {offsets = [1, 0, 0], sizes = [15, 16, 4], strides = [1, 1, 1]} : vector<16x16x4xf32> to vector<15x16x4xf32>
    %c0_53 = arith.constant 0 : index
    %c0_54 = arith.constant 0 : index
    %c28 = arith.constant 28 : index
    %63 = vector.load %arg13[%c0_53, %c0_54, %c28] : memref<16x16x36xf32, #tpu.memory_space<vmem>>, vector<15x16x4xf32>
    tpu.vector_store %arg13[%c0_53, %c0_54, %c28], %62 {strides = array<i32>} : memref<16x16x36xf32, #tpu.memory_space<vmem>>, vector<15x16x4xf32>,
    %c15_55 = arith.constant 15 : index
    %c0_56 = arith.constant 0 : index
    %c28_57 = arith.constant 28 : index
    %64 = vector.load %arg13[%c15_55, %c0_56, %c28_57] : memref<16x16x36xf32, #tpu.memory_space<vmem>>, vector<1x16x4xf32>
    tpu.vector_store %arg13[%c15_55, %c0_56, %c28_57], %35 {strides = array<i32>} : memref<16x16x36xf32, #tpu.memory_space<vmem>>, vector<1x16x4xf32>,
    %c0_58 = arith.constant 0 : index
    %c15_59 = arith.constant 15 : index
    %c32 = arith.constant 32 : index
    %65 = vector.load %arg13[%c0_58, %c15_59, %c32] : memref<16x16x36xf32, #tpu.memory_space<vmem>>, vector<16x1x4xf32>
    tpu.vector_store %arg13[%c0_58, %c15_59, %c32], %36 {strides = array<i32>} : memref<16x16x36xf32, #tpu.memory_space<vmem>>, vector<16x1x4xf32>,
    %66 = vector.extract_strided_slice %9 {offsets = [1, 1, 0], sizes = [15, 15, 4], strides = [1, 1, 1]} : vector<16x16x4xf32> to vector<15x15x4xf32>
    %c0_60 = arith.constant 0 : index
    %c0_61 = arith.constant 0 : index
    %c32_62 = arith.constant 32 : index
    %67 = vector.load %arg13[%c0_60, %c0_61, %c32_62] : memref<16x16x36xf32, #tpu.memory_space<vmem>>, vector<15x15x4xf32>
    tpu.vector_store %arg13[%c0_60, %c0_61, %c32_62], %66 {strides = array<i32>} : memref<16x16x36xf32, #tpu.memory_space<vmem>>, vector<15x15x4xf32>,
    %68 = vector.extract_strided_slice %35 {offsets = [0, 1, 0], sizes = [1, 15, 4], strides = [1, 1, 1]} : vector<1x16x4xf32> to vector<1x15x4xf32>
    %c15_63 = arith.constant 15 : index
    %c0_64 = arith.constant 0 : index
    %c32_65 = arith.constant 32 : index
    %69 = vector.load %arg13[%c15_63, %c0_64, %c32_65] : memref<16x16x36xf32, #tpu.memory_space<vmem>>, vector<1x15x4xf32>
    tpu.vector_store %arg13[%c15_63, %c0_64, %c32_65], %68 {strides = array<i32>} : memref<16x16x36xf32, #tpu.memory_space<vmem>>, vector<1x15x4xf32>,
    %c0_66 = arith.constant 0 : index
    %c0_67 = arith.constant 0 : index
    %c0_68 = arith.constant 0 : index
    %70 = vector.load %arg13[%c0_66, %c0_67, %c0_68] : memref<16x16x36xf32, #tpu.memory_space<vmem>>, vector<16x16x36xf32>
    %71 = vector.shape_cast %70 : vector<16x16x36xf32> to vector<256x36xf32>
    %72 = arith.truncf %71 : vector<256x36xf32> to vector<256x36xbf16>
    %c0_69 = arith.constant 0 : index
    %c0_70 = arith.constant 0 : index
    %73 = vector.load %arg14[%c0_69, %c0_70] : memref<36x128xbf16, #tpu.memory_space<vmem>>, vector<36x128xbf16>
    %cst_71 = arith.constant dense<0.000000e+00> : vector<256x128xf32>
    %74 = tpu.matmul %72, %73, %cst_71 {dimension_numbers = #tpu.dot_dimension_numbers<[1], [0], [0], [1], [0, 0, 1, 1], [], []>} : vector<256x36xbf16>, vector<36x128xbf16>, vector<256x128xf32> -> vector<256x128xf32>
    %c0_72 = arith.constant 0 : index
    %c0_73 = arith.constant 0 : index
    %75 = vector.load %arg15[%c0_72, %c0_73] : memref<1x128xf32, #tpu.memory_space<vmem>>, vector<1x128xf32>
    %76 = vector.broadcast %75 : vector<1x128xf32> to vector<256x128xf32>
    %77 = arith.addf %74, %76 : vector<256x128xf32>
    %c0_74 = arith.constant 0 : index
    %c0_75 = arith.constant 0 : index
    %c0_76 = arith.constant 0 : index
    %78 = vector.load %arg10[%c0_74, %c0_75, %c0_76] : memref<1x256x128xf32, #tpu.memory_space<vmem>>, vector<1x256x128xf32>
    %79 = vector.shape_cast %78 : vector<1x256x128xf32> to vector<256x128xf32>
    %80 = vector.shape_cast %77 : vector<256x128xf32> to vector<1x256x128xf32>
    tpu.vector_store %arg10[%c0_74, %c0_75, %c0_76], %80 {strides = array<i32>} : memref<1x256x128xf32, #tpu.memory_space<vmem>>, vector<1x256x128xf32>,
    %cst_77 = arith.constant dense<0.000000e+00> : vector<128xf32>
    %81 = vector.multi_reduction <add>, %77, %cst_77 [0] : vector<256x128xf32> to vector<128xf32>
    %82 = vector.shape_cast %81 : vector<128xf32> to vector<1x128xf32>
    %83 = arith.mulf %77, %77 : vector<256x128xf32>
    %cst_78 = arith.constant dense<0.000000e+00> : vector<128xf32>
    %84 = vector.multi_reduction <add>, %83, %cst_78 [0] : vector<256x128xf32> to vector<128xf32>
    %85 = vector.shape_cast %84 : vector<128xf32> to vector<1x128xf32>
    %c0_i32_79 = arith.constant 0 : i32
    %86 = arith.cmpi eq, %arg1, %c0_i32_79 : i32
    %87 = arith.extui %86 : i1 to i32
    %c0_i32_80 = arith.constant 0 : i32
    %88 = arith.cmpi ne, %87, %c0_i32_80 : i32
    scf.if %88 {
      %c0_83 = arith.constant 0 : index
      %c0_84 = arith.constant 0 : index
      %c0_85 = arith.constant 0 : index
      %92 = vector.load %arg11[%c0_83, %c0_84, %c0_85] : memref<1x1x128xf32, #tpu.memory_space<vmem>>, vector<1x1x128xf32>
      %93 = vector.shape_cast %92 : vector<1x1x128xf32> to vector<1x128xf32>
      %94 = vector.shape_cast %82 : vector<1x128xf32> to vector<1x1x128xf32>
      tpu.vector_store %arg11[%c0_83, %c0_84, %c0_85], %94 {strides = array<i32>} : memref<1x1x128xf32, #tpu.memory_space<vmem>>, vector<1x1x128xf32>,
      %c0_86 = arith.constant 0 : index
      %c0_87 = arith.constant 0 : index
      %c0_88 = arith.constant 0 : index
      %95 = vector.load %arg12[%c0_86, %c0_87, %c0_88] : memref<1x1x128xf32, #tpu.memory_space<vmem>>, vector<1x1x128xf32>
      %96 = vector.shape_cast %95 : vector<1x1x128xf32> to vector<1x128xf32>
      %97 = vector.shape_cast %85 : vector<1x128xf32> to vector<1x1x128xf32>
      tpu.vector_store %arg12[%c0_86, %c0_87, %c0_88], %97 {strides = array<i32>} : memref<1x1x128xf32, #tpu.memory_space<vmem>>, vector<1x1x128xf32>,
    } else {
    }
    %c0_i32_81 = arith.constant 0 : i32
    %89 = arith.cmpi sgt, %arg1, %c0_i32_81 : i32
    %90 = arith.extui %89 : i1 to i32
    %c0_i32_82 = arith.constant 0 : i32
    %91 = arith.cmpi ne, %90, %c0_i32_82 : i32
    scf.if %91 {
      %c0_83 = arith.constant 0 : index
      %c0_84 = arith.constant 0 : index
      %c0_85 = arith.constant 0 : index
      %92 = vector.load %arg11[%c0_83, %c0_84, %c0_85] : memref<1x1x128xf32, #tpu.memory_space<vmem>>, vector<1x1x128xf32>
      %93 = vector.shape_cast %92 : vector<1x1x128xf32> to vector<1x128xf32>
      %94 = arith.addf %93, %82 : vector<1x128xf32>
      %c0_86 = arith.constant 0 : index
      %c0_87 = arith.constant 0 : index
      %c0_88 = arith.constant 0 : index
      %95 = vector.load %arg11[%c0_86, %c0_87, %c0_88] : memref<1x1x128xf32, #tpu.memory_space<vmem>>, vector<1x1x128xf32>
      %96 = vector.shape_cast %95 : vector<1x1x128xf32> to vector<1x128xf32>
      %97 = vector.shape_cast %94 : vector<1x128xf32> to vector<1x1x128xf32>
      tpu.vector_store %arg11[%c0_86, %c0_87, %c0_88], %97 {strides = array<i32>} : memref<1x1x128xf32, #tpu.memory_space<vmem>>, vector<1x1x128xf32>,
      %c0_89 = arith.constant 0 : index
      %c0_90 = arith.constant 0 : index
      %c0_91 = arith.constant 0 : index
      %98 = vector.load %arg12[%c0_89, %c0_90, %c0_91] : memref<1x1x128xf32, #tpu.memory_space<vmem>>, vector<1x1x128xf32>
      %99 = vector.shape_cast %98 : vector<1x1x128xf32> to vector<1x128xf32>
      %100 = arith.addf %99, %85 : vector<1x128xf32>
      %c0_92 = arith.constant 0 : index
      %c0_93 = arith.constant 0 : index
      %c0_94 = arith.constant 0 : index
      %101 = vector.load %arg12[%c0_92, %c0_93, %c0_94] : memref<1x1x128xf32, #tpu.memory_space<vmem>>, vector<1x1x128xf32>
      %102 = vector.shape_cast %101 : vector<1x1x128xf32> to vector<1x128xf32>
      %103 = vector.shape_cast %100 : vector<1x128xf32> to vector<1x1x128xf32>
      tpu.vector_store %arg12[%c0_92, %c0_93, %c0_94], %103 {strides = array<i32>} : memref<1x1x128xf32, #tpu.memory_space<vmem>>, vector<1x1x128xf32>,
    } else {
    }
    return
  }
  func.func @transform_0(%arg0: i32, %arg1: i32) -> (i32, i32, i32) {
    %c0_i32 = arith.constant 0 : i32
    %c0_i32_0 = arith.constant 0 : i32
    %c0_i32_1 = arith.constant 0 : i32
    return %arg0, %c0_i32, %c0_i32_0 : i32, i32, i32
  }
  func.func @transform_1(%arg0: i32, %arg1: i32) -> (i32, i32) {
    %c0_i32 = arith.constant 0 : i32
    %c0_i32_0 = arith.constant 0 : i32
    %c0_i32_1 = arith.constant 0 : i32
    return %c0_i32, %c0_i32_0 : i32, i32
  }
  func.func @transform_2(%arg0: i32, %arg1: i32) -> (i32, i32) {
    %c0_i32 = arith.constant 0 : i32
    %c0_i32_0 = arith.constant 0 : i32
    %c0_i32_1 = arith.constant 0 : i32
    return %c0_i32, %c0_i32_0 : i32, i32
  }
  func.func @transform_3(%arg0: i32, %arg1: i32) -> (i32, i32) {
    %c0_i32 = arith.constant 0 : i32
    %c0_i32_0 = arith.constant 0 : i32
    %c0_i32_1 = arith.constant 0 : i32
    return %c0_i32, %c0_i32_0 : i32, i32
  }
  func.func @transform_4(%arg0: i32, %arg1: i32) -> (i32, i32) {
    %c0_i32 = arith.constant 0 : i32
    %c0_i32_0 = arith.constant 0 : i32
    %c0_i32_1 = arith.constant 0 : i32
    return %c0_i32, %c0_i32_0 : i32, i32
  }
  func.func @transform_5(%arg0: i32, %arg1: i32) -> (i32, i32) {
    %c0_i32 = arith.constant 0 : i32
    %c0_i32_0 = arith.constant 0 : i32
    %c0_i32_1 = arith.constant 0 : i32
    return %c0_i32, %c0_i32_0 : i32, i32
  }
  func.func @transform_6(%arg0: i32, %arg1: i32) -> (i32, i32, i32) {
    %c0_i32 = arith.constant 0 : i32
    %c0_i32_0 = arith.constant 0 : i32
    %c0_i32_1 = arith.constant 0 : i32
    %c0_i32_2 = arith.constant 0 : i32
    return %c0_i32, %c0_i32_0, %c0_i32_1 : i32, i32, i32
  }
  func.func @transform_7(%arg0: i32, %arg1: i32) -> (i32, i32, i32) {
    %c0_i32 = arith.constant 0 : i32
    %c0_i32_0 = arith.constant 0 : i32
    %c0_i32_1 = arith.constant 0 : i32
    %c0_i32_2 = arith.constant 0 : i32
    return %c0_i32, %c0_i32_0, %c0_i32_1 : i32, i32, i32
  }
  func.func @transform_8(%arg0: i32, %arg1: i32) -> (i32, i32, i32) {
    %c0_i32 = arith.constant 0 : i32
    %c0_i32_0 = arith.constant 0 : i32
    return %arg0, %arg1, %c0_i32 : i32, i32, i32
  }
  func.func @transform_9(%arg0: i32, %arg1: i32) -> (i32, i32, i32) {
    %c0_i32 = arith.constant 0 : i32
    %c0_i32_0 = arith.constant 0 : i32
    %c0_i32_1 = arith.constant 0 : i32
    return %arg0, %c0_i32, %c0_i32_0 : i32, i32, i32
  }
  func.func @transform_10(%arg0: i32, %arg1: i32) -> (i32, i32, i32) {
    %c0_i32 = arith.constant 0 : i32
    %c0_i32_0 = arith.constant 0 : i32
    %c0_i32_1 = arith.constant 0 : i32
    return %arg0, %c0_i32, %c0_i32_0 : i32, i32, i32
  }
}

</mosaic_0001>

<bundles_post_ra>
// kernel: _lambda_.1
= control target key start
LH: loop header
LB: loop body
LE: loop exit
PB: predicated region body
PF: predicated region fallthrough
CT: control target
= control target key end

     0   :  { %s4582_s0 = inlined_call_operand.vmem [shape: f32[2,256,128], index: 0, kind: input, shape index: {}]   ;;  %s4583_s1 = inlined_call_operand.vmem [shape: f32[1,128], index: 1, kind: input, shape index: {}]   ;;  %s4584_s2 = inlined_call_operand.vmem [shape: f32[1,128], index: 2, kind: input, shape index: {}]   ;;  %s4585_s3 = inlined_call_operand.vmem [shape: f32[4,2], index: 3, kind: input, shape index: {}]   ;;  %s4586_s4 = inlined_call_operand.vmem [shape: f32[2,4], index: 4, kind: input, shape index: {}]   ;;  %s4587_s5 = inlined_call_operand.vmem [shape: f32[1,4], index: 5, kind: input, shape index: {}]   ;;  %s4588_s6 = inlined_call_operand.vmem [shape: bf16[4,36,128], index: 6, kind: input, shape index: {}]   ;;  %s4589_s7 = inlined_call_operand.vmem [shape: f32[4,1,128], index: 7, kind: input, shape index: {}]   ;;  %s4590_s8 = inlined_call_operand.vmem [shape: f32[2,256,128], index: 8, kind: output, shape index: {0}]   ;;  %s4591_s9 = inlined_call_operand.hbm [shape: f32[2,1,128], index: 9, kind: output, shape index: {1}]   ;;  %s4592_s10 = inlined_call_operand.hbm [shape: f32[2,1,128], index: 10, kind: output, shape index: {2}]  }
   0x1   :  { %4598 = sst [smem:[#allocation12_spill]] %s4582_s0 }
   0x2   :  { %4599 = sst [smem:[#allocation13_spill]] %s4585_s3 }
   0x3   :  { %16 = vsyncpa [#allocation6], 0 }
   0x4   :  { %18 = vsyncpa [#allocation6 + $0x1], 0 }
   0x5   :  { %19 = vsyncpa [#allocation8], 0 }
   0x6   :  { %21 = vsyncpa [#allocation8 + $0x1], 0  ;;  %s2961_s11 = smov 0   ;;  %s2963_s12 = smov 0  }
   0x7   :  { %s2965_s13 = smov 0   ;;  %s2967_s14 = smov 0  }
   0x8   :  { %s2969_s15 = smov 0   ;;  %s2971_s16 = smov 0  }
   0x9 LB: > { %s2562_s17 = sadd.s32 4294967295, %s2886_s16   ;;  %s2563_s18 = sadd.s32 4294967294, %s2886_s16   ;;  %s2886_s16 = sphi %s2971_s16, %s27_s16   ;;  %s2882_s15 = sphi %s2969_s15, %s4614_s15   ;;  %s2878_s14 = sphi %s2967_s14, %s4613_s14   ;;  %s2874_s13 = sphi %s2965_s13, %s4612_s13   ;;  %s2870_s12 = sphi %s2963_s12, %s4611_s12   ;;  %s2866_s11 = sphi %s2961_s11, %s4610_s11  }
   0xa   : > { %s39_s19 = sadd.s32 1, %s2882_s15  ;;  %s247_s20 = sadd.s32 1, %s2874_s13 }
   0xb   : > { %p41_p0 = scmp.ge.s32.totalorder %s39_s19, 2  ;;  %p257_p1 = scmp.ne.s32.totalorder %s2874_s13, %s2870_s12 }
   0xc   : > { %p258_p2 = scmp.eq.s32.totalorder %s2562_s17, 1  ;;  %p263_p3 = scmp.ne.s32.totalorder %s2870_s12, %s2866_s11 }
   0xd   : > { %s4616_s19 = smov (%p41_p0, %s39_s19), 0  ;;  %p264_p5 = scmp.eq.s32.totalorder %s2563_s18, 1 }
   0xe   : > { %p3001_p4 = por %p258_p2, %p257_p1  ;;  %s244_s22 = ssub.s32 %s2882_s15, %s4616_s19 }
   0xf   : > { %p2566_p6 = scmp.ge.s32.totalorder %s2886_s16, 1  ;;  %p245_p7 = scmp.eq.s32.totalorder %s244_s22, 0 }
  0x10   : > { %p3008_p8 = por %p264_p5, %p263_p3  ;;  %p337_p9 = scmp.lt.s32.totalorder %s2886_s16, 3 }
  0x11   : > { %s3014_s24 = scalar_select %p245_p7, %s2874_s13, %s247_s20  }
  0x12   : > { %p338_p10 = pnand %p2566_p6, %p337_p9 }
  0x14   : > { %341 = sbr.rel (%p338_p10) target bundleno = 1200 (0x4b0), region = 52 }
  0x19   : > { %p387_p11 = scmp.lt.s32.totalorder %s2878_s14, 1  ;;  %s4602_s0 = sld [smem:[#allocation12_spill]]  ;;  %vm440_vm0 = vcmask 31744   ;;  %vm522_vm1 = vcmask 1043456   ;;  %vm585_vm3 = vcmask 24576   ;;  %vm828_vm4 = vcmask 30720  }
  0x1a   : > { %s2888_s2 = smov 4   ;;  %s2890_s29 = smov 8   ;;  %vm980_vm5 = vcmask 64544   ;;  %vm1021_vm6 = vcmask 90176   ;;  %vm1128_vm7 = vcmask 97345   ;;  %vm1168_vm8 = vcmask 122976  }
  0x1b   : > { %s3018_s25 = scalar_select %p387_p11, %s2878_s14, 1  ;;  %vm1130_vm9 = vcmask 97344   ;;  %vm553_vm10 = vcmask 1041408   ;;  %vm549_vm11 = vcmask 15360   ;;  %vm1283_vm12 = vcmask 130144  }
  0x1c   : > { %s4603_s3 = sld [smem:[#allocation13_spill]]  ;;  %s2892_s18 = smov 12   ;;  %vm1285_vm13 = vcmask 129120   ;;  %vm1413_vm14 = vcmask 162944  }
  0x1d   : > { %s4593_s26 = sshll.u32 %s3018_s25, 8  ;;  %s2893_s27 = smov 16  }
  0x1e   : > { %s2894_s1 = smov 20   ;;  %s2896_s30 = smov 24  }
  0x1f   : > { %s3026_s28 = scalar_lea.vmem %s4602_s0, %s4593_s26  ;;  %s4595_s17 = smov 28  }
  0x20   : > { %v3029_v0 = vld [vmem:[%s3026_s28 + $0x40] sm:$0xff]  ;;  %v3039_v2 = vld [vmem:[%s3026_s28 + $0x10] sm:$0xff]  ;;  %v3049_v5 = vld [vmem:[%s3026_s28 + $0x8] sm:$0xff]  ;;  %s2902_s20 = smov 126   ;;  %s2903_s22 = smov 127  }
  0x21   : > { %v3032_v1 = vld [vmem:[%s3026_s28] sm:$0xff]  ;;  %906 = vrot.lane.b32.xlu0 %v3029_v0, %s2888_s2  ;;  %830 = vst.msk [vmem:[#allocation2 + $0x21] sm:$0xff] %vm440_vm0, %v3039_v2  ;;  %v3054_v6 = vld [vmem:[%s3026_s28 + $0x30] sm:$0xff]  ;;  %892 = vrot.lane.b32.xlu2 %v3049_v5, %s2888_s2  ;;  %v442_v7 = vsel %vm440_vm0, %v3049_v5, 0.0  ;;  %v444_v8 = vsel %vm440_vm0, %v3039_v2, 0.0  ;;  %v456_v28 = vsel %vm440_vm0, %v3029_v0, 0.0 }
  0x22   : > { %890 = vrot.lane.b32.xlu1 %v3032_v1, %s2888_s2  ;;  %v441_v3 = vsel %vm440_vm0, %v3032_v1, 0.0  ;;  %827 = vst.msk [vmem:[#allocation2 + $0x11] sm:$0xff] %vm440_vm0, %v3032_v1  ;;  %v3046_v4 = vld [vmem:[%s3026_s28 + $0x20] sm:$0xff]  ;;  %v3065_v9 = vld [vmem:[%s3026_s28 + $0x58] sm:$0xff]  ;;  %v3073_v12 = vld [vmem:[%s3026_s28 + $0x70] sm:$0xff]  ;;  %v452_v23 = vsel %vm440_vm0, %v3054_v6, 0.0 }
  0x23   : > { %832 = vst.msk [vmem:[#allocation2 + $0x31] sm:$0xff] %vm440_vm0, %v3046_v4  ;;  %v3068_v10 = vld [vmem:[%s3026_s28 + $0x18] sm:$0xff]  ;;  %v443_v11 = vadd.f32 %v442_v7, %v441_v3  ;;  %v3080_v14 = vld [vmem:[%s3026_s28 + $0x60] sm:$0xff]  ;;  %v448_v17 = vsel %vm440_vm0, %v3046_v4, 0.0  ;;  %v3096_v18 = vld [vmem:[%s3026_s28 + $0xd0] sm:$0xff]  ;;  %v462_v37 = vsel %vm440_vm0, %v3065_v9, 0.0 }
  0x24   : > { %834 = vst.msk [vmem:[#allocation2 + $0x41] sm:$0xff] %vm440_vm0, %v3054_v6  ;;  %v446_v13 = vsel %vm440_vm0, %v3068_v10, 0.0  ;;  %v3089_v16 = vld [vmem:[%s3026_s28 + $0xa0] sm:$0xff]  ;;  %v3099_v19 = vld [vmem:[%s3026_s28 + $0x28] sm:$0xff]  ;;  %v3112_v24 = vld [vmem:[%s3026_s28 + $0x38] sm:$0xff]  ;;  %v464_v40 = vsel %vm440_vm0, %v3080_v14, 0.0 }
  0x25   : > { %836 = vst.msk [vmem:[#allocation2 + $0x51] sm:$0xff] %vm440_vm0, %v3029_v0  ;;  %v445_v15 = vadd.f32 %v444_v8, %v443_v11  ;;  %v450_v21 = vsel %vm440_vm0, %v3099_v19, 0.0  ;;  %v454_v26 = vsel %vm440_vm0, %v3112_v24, 0.0  ;;  %v3123_v29 = vld [vmem:[%s3026_s28 + $0x48] sm:$0xff]  ;;  %v3128_v32 = vld [vmem:[%s3026_s28 + $0x50] sm:$0xff]  ;;  %v468_v45 = vsel %vm440_vm0, %v3073_v12, 0.0 }
  0x26   : > { %842 = vst.msk [vmem:[#allocation2 + $0x81] sm:$0xff] %vm440_vm0, %v3073_v12  ;;  %v458_v31 = vsel %vm440_vm0, %v3123_v29, 0.0  ;;  %v460_v34 = vsel %vm440_vm0, %v3128_v32, 0.0  ;;  %v3137_v35 = vld [vmem:[%s3026_s28 + $0x88] sm:$0xff]  ;;  %v3142_v38 = vld [vmem:[%s3026_s28 + $0x90] sm:$0xff]  ;;  %v3162_v46 = vld [vmem:[%s3026_s28 + $0x78] sm:$0xff] }
  0x27   : > { %840 = vst.msk [vmem:[#allocation2 + $0x71] sm:$0xff] %vm440_vm0, %v3080_v14  ;;  %v447_v20 = vadd.f32 %v446_v13, %v445_v15  ;;  %v3153_v41 = vld [vmem:[%s3026_s28 + $0x68] sm:$0xff]  ;;  %v470_v48 = vsel %vm440_vm0, %v3162_v46, 0.0  ;;  %v3167_v49 = vld [vmem:[%s3026_s28 + $0x80] sm:$0xff]  ;;  %v474_v53 = vsel %vm440_vm0, %v3137_v35, 0.0  ;;  %v476_v55 = vsel %vm440_vm0, %v3142_v38, 0.0 }
  0x28   : > { %848 = vst.msk [vmem:[#allocation2 + $0xb1] sm:$0xff] %vm440_vm0, %v3089_v16  ;;  %v466_v43 = vsel %vm440_vm0, %v3153_v41, 0.0  ;;  %v472_v51 = vsel %vm440_vm0, %v3167_v49, 0.0  ;;  %v3184_v56 = vld [vmem:[%s3026_s28 + $0xb8] sm:$0xff]  ;;  %v3192_v60 = vld [vmem:[%s3026_s28 + $0xc0] sm:$0xff]  ;;  %v480_v62 = vsel %vm440_vm0, %v3089_v16, 0.0 }
  0x29   : > { %912 = vrot.lane.b32.xlu0 %v3065_v9, %s2888_s2  ;;  %854 = vst.msk [vmem:[#allocation2 + $0xe1] sm:$0xff] %vm440_vm0, %v3096_v18  ;;  %v449_v22 = vadd.f32 %v448_v17, %v447_v20  ;;  %896 = vrot.lane.b32.xlu2 %v3068_v10, %s2888_s2  ;;  %v3187_v57 = vld [vmem:[%s3026_s28 + $0x98] sm:$0xff]  ;;  %v3203_v63 = vld [vmem:[%s3026_s28 + $0xa8] sm:$0xff]  ;;  %v486_v17 = vsel %vm440_vm0, %v3184_v56, 0.0 }
  0x2a   : > { %894 = vrot.lane.b32.xlu1 %v3039_v2, %s2888_s2  ;;  %838 = vst.msk [vmem:[#allocation2 + $0x61] sm:$0xff] %vm440_vm0, %v3128_v32  ;;  %v478_v59 = vsel %vm440_vm0, %v3187_v57, 0.0  ;;  %v482_v7 = vsel %vm440_vm0, %v3203_v63, 0.0  ;;  %v3208_v8 = vld [vmem:[%s3026_s28 + $0xb0] sm:$0xff] }
  0x2b   : > { %v451_v25 = vadd.f32 %v450_v21, %v449_v22  ;;  %846 = vst.msk [vmem:[#allocation2 + $0xa1] sm:$0xff] %vm440_vm0, %v3142_v38  ;;  %v484_v13 = vsel %vm440_vm0, %v3208_v8, 0.0  ;;  %v488_v21 = vsel %vm440_vm0, %v3192_v60, 0.0  ;;  %v3225_v22 = vld [vmem:[%s3026_s28 + $0xc8] sm:$0xff] }
  0x2c   : > { %844 = vst.msk [vmem:[#allocation2 + $0x91] sm:$0xff] %vm440_vm0, %v3167_v49 }
  0x2d   : > { %v453_v27 = vadd.f32 %v452_v23, %v451_v25  ;;  %852 = vst.msk [vmem:[#allocation2 + $0xd1] sm:$0xff] %vm440_vm0, %v3192_v60  ;;  %v490_v25 = vsel %vm440_vm0, %v3225_v22, 0.0 }
  0x2e   : > { %850 = vst.msk [vmem:[#allocation2 + $0xc1] sm:$0xff] %vm440_vm0, %v3208_v8 }
  0x2f   : > { %v455_v30 = vadd.f32 %v454_v26, %v453_v27  ;;  %v492_v27 = vsel %vm440_vm0, %v3096_v18, 0.0  ;;  %839 = vst.msk [vmem:[#allocation2 + $0x69] sm:$0x7f] %vm828_vm4, %v3065_v9 }
  0x30   : > { %829 = vst.msk [vmem:[#allocation2 + $0x19] sm:$0x7f] %vm828_vm4, %v3049_v5 }
  0x31   : > { %918 = vrot.lane.b32.xlu0 %v3073_v12, %s2888_s2  ;;  %v457_v33 = vadd.f32 %v456_v28, %v455_v30  ;;  %900 = vrot.lane.b32.xlu2 %v3099_v19, %s2888_s2  ;;  %v3234_v28 = vld [vmem:[%s3026_s28 + $0xe8] sm:$0xff]  ;;  %v3237_v30 = vld [vmem:[%s3026_s28 + $0xd8] sm:$0xff]  ;;  %831 = vst.msk [vmem:[#allocation2 + $0x29] sm:$0x7f] %vm828_vm4, %v3068_v10 }
  0x32   : > { %898 = vrot.lane.b32.xlu1 %v3046_v4, %s2888_s2  ;;  %833 = vst.msk [vmem:[#allocation2 + $0x39] sm:$0x7f] %vm828_vm4, %v3099_v19 }
  0x33   : > { %v459_v36 = vadd.f32 %v458_v31, %v457_v33  ;;  %v3240_v33 = vmul.f32 0.0, %v3032_v1  ;;  %835 = vst.msk [vmem:[#allocation2 + $0x49] sm:$0x7f] %vm828_vm4, %v3112_v24 }
  0x34   : > { %837 = vst.msk [vmem:[#allocation2 + $0x59] sm:$0x7f] %vm828_vm4, %v3123_v29 }
  0x35   : > { %v461_v39 = vadd.f32 %v460_v34, %v459_v36  ;;  %v494_v34 = vsel %vm440_vm0, %v3237_v30, 0.0  ;;  %v3245_v36 = vld [vmem:[%s3026_s28 + $0xe0] sm:$0xff]  ;;  %858 = vst.msk [vmem:[#allocation2 + $0x1] sm:$0xff] %vm440_vm0, %v3240_v33 }
  0x36   : > { %856 = vst.msk [vmem:[#allocation2 + $0xf1] sm:$0xff] %vm440_vm0, %v3245_v36 }
  0x37   : > { %v463_v42 = vadd.f32 %v462_v37, %v461_v39  ;;  %v496_v39 = vsel %vm440_vm0, %v3245_v36, 0.0  ;;  %841 = vst.msk [vmem:[#allocation2 + $0x79] sm:$0x7f] %vm828_vm4, %v3153_v41 }
  0x38   : > { %843 = vst.msk [vmem:[#allocation2 + $0x89] sm:$0x7f] %vm828_vm4, %v3162_v46 }
  0x39   : > { %924 = vrot.lane.b32.xlu0 %v3137_v35, %s2888_s2  ;;  %v465_v44 = vadd.f32 %v464_v40, %v463_v42  ;;  %904 = vrot.lane.b32.xlu2 %v3112_v24, %s2888_s2  ;;  %v498_v42 = vsel %vm440_vm0, %v3234_v28, 0.0  ;;  %845 = vst.msk [vmem:[#allocation2 + $0x99] sm:$0x7f] %vm828_vm4, %v3137_v35 }
  0x3a   : > { %902 = vrot.lane.b32.xlu1 %v3054_v6, %s2888_s2  ;;  %847 = vst.msk [vmem:[#allocation2 + $0xa9] sm:$0x7f] %vm828_vm4, %v3187_v57 }
  0x3b   : > { %v467_v47 = vadd.f32 %v466_v43, %v465_v44  ;;  %v3260_v43 = vld [vmem:[%s3026_s28 + $0xf0] sm:$0xff]  ;;  %849 = vst.msk [vmem:[#allocation2 + $0xb9] sm:$0x7f] %vm828_vm4, %v3203_v63 }
  0x3c   : > { %851 = vst.msk [vmem:[#allocation2 + $0xc9] sm:$0x7f] %vm828_vm4, %v3184_v56 }
  0x3d   : > { %v469_v50 = vadd.f32 %v468_v45, %v467_v47  ;;  %v500_v45 = vsel %vm440_vm0, %v3260_v43, 0.0  ;;  %v3267_v47 = vld [vmem:[%s3026_s28 + $0xf8] sm:$0xff]  ;;  %855 = vst.msk [vmem:[#allocation2 + $0xe9] sm:$0x7f] %vm828_vm4, %v3237_v30 }
  0x3e   : > { %857 = vst.msk [vmem:[#allocation2 + $0xf9] sm:$0x7f] %vm828_vm4, %v3234_v28 }
  0x3f   : > { %v471_v52 = vadd.f32 %v470_v48, %v469_v50  ;;  %v2889_v50 = vmov 256.0   ;;  %853 = vst.msk [vmem:[#allocation2 + $0xd9] sm:$0x7f] %vm828_vm4, %v3225_v22 }
  0x40   : > { %2766 = vrcp.f32 %v2889_v50 }
  0x41   : > { %930 = vrot.lane.b32.xlu0 %v3089_v16, %s2888_s2  ;;  %v473_v54 = vadd.f32 %v472_v51, %v471_v52  ;;  %910 = vrot.lane.b32.xlu2 %v3128_v32, %s2888_s2  ;;  %v502_v51 = vsel %vm440_vm0, %v3267_v47, 0.0 }
  0x42   : > { %908 = vrot.lane.b32.xlu1 %v3123_v29, %s2888_s2 }
  0x43   : > { %v475_v58 = vadd.f32 %v474_v53, %v473_v54 }
  0x45   : > { %v477_v61 = vadd.f32 %v476_v55, %v475_v58 }
  0x46   : > { %v2767_v54 = vpop.eup %2766 }
  0x47   : > { %v479_v3 = vadd.f32 %v478_v59, %v477_v61  ;;  %v511_v58 = vmul.f32 256.0, %v2767_v54  ;;  %vm515_vm2 = vweird.f32 %v2767_v54 }
  0x49   : > { %936 = vrot.lane.b32.xlu0 %v3184_v56, %s2888_s2  ;;  %v481_v11 = vadd.f32 %v480_v62, %v479_v3  ;;  %916 = vrot.lane.b32.xlu2 %v3153_v41, %s2888_s2  ;;  %v512_v61 = vsub.f32 1.0, %v511_v58  ;;  %v518_v3 = vld [vmem:[%s4603_s3] sm:$0xf] }
  0x4a   : > { %914 = vrot.lane.b32.xlu1 %v3080_v14, %s2888_s2  ;;  %2571 = vmatpush.msk.msra.mxu0 %vm522_vm1, %v518_v3  ;;  %vm1559_vm1 = vcmask 195745  }
  0x4b   : > { %v483_v15 = vadd.f32 %v482_v7, %v481_v11  ;;  %v513_v7 = vmul.f32 %v2767_v54, %v512_v61 }
  0x4d   : > { %v485_v20 = vadd.f32 %v484_v13, %v483_v15  ;;  %v514_v13 = vadd.f32 %v2767_v54, %v513_v7 }
  0x4f   : > { %v487_v23 = vadd.f32 %v486_v17, %v485_v20  ;;  %v516_v17 = vsel %vm515_vm2, %v2767_v54, %v514_v13  ;;  %vm1593_vm2 = vcmask 221376  }
  0x51   : > { %942 = vrot.lane.b32.xlu0 %v3096_v18, %s2888_s2  ;;  %v489_v26 = vadd.f32 %v488_v21, %v487_v23  ;;  %922 = vrot.lane.b32.xlu2 %v3167_v49, %s2888_s2  ;;  %v2891_v23 = vmov 0.0  }
  0x52   : > { %920 = vrot.lane.b32.xlu1 %v3162_v46, %s2888_s2  ;;  %814 = vst.msk [vmem:[#allocation2 + $0x50] sm:$0x1] %vm585_vm3, %v2891_v23 }
  0x53   : > { %v491_v31 = vadd.f32 %v490_v25, %v489_v26  ;;  %809 = vst.msk [vmem:[#allocation2] sm:$0x1] %vm585_vm3, %v2891_v23  ;;  %v3362_v25 = vmul.f32 0.0, %v3049_v5 }
  0x54   : > { %810 = vst.msk [vmem:[#allocation2 + $0x10] sm:$0x1] %vm585_vm3, %v2891_v23 }
  0x55   : > { %v493_v37 = vadd.f32 %v492_v27, %v491_v31  ;;  %811 = vst.msk [vmem:[#allocation2 + $0x20] sm:$0x1] %vm585_vm3, %v2891_v23 }
  0x56   : > { %812 = vst.msk [vmem:[#allocation2 + $0x30] sm:$0x1] %vm585_vm3, %v2891_v23 }
  0x57   : > { %v495_v40 = vadd.f32 %v494_v34, %v493_v37  ;;  %813 = vst.msk [vmem:[#allocation2 + $0x40] sm:$0x1] %vm585_vm3, %v2891_v23 }
  0x58   : > { %815 = vst.msk [vmem:[#allocation2 + $0x60] sm:$0x1] %vm585_vm3, %v2891_v23 }
  0x59   : > { %948 = vrot.lane.b32.xlu0 %v3234_v28, %s2888_s2  ;;  %v497_v44 = vadd.f32 %v496_v39, %v495_v40  ;;  %928 = vrot.lane.b32.xlu2 %v3187_v57, %s2888_s2  ;;  %816 = vst.msk [vmem:[#allocation2 + $0x70] sm:$0x1] %vm585_vm3, %v2891_v23 }
  0x5a   : > { %926 = vrot.lane.b32.xlu1 %v3142_v38, %s2888_s2  ;;  %817 = vst.msk [vmem:[#allocation2 + $0x80] sm:$0x1] %vm585_vm3, %v2891_v23 }
  0x5b   : > { %v499_v48 = vadd.f32 %v498_v42, %v497_v44  ;;  %818 = vst.msk [vmem:[#allocation2 + $0x90] sm:$0x1] %vm585_vm3, %v2891_v23 }
  0x5c   : > { %819 = vst.msk [vmem:[#allocation2 + $0xa0] sm:$0x1] %vm585_vm3, %v2891_v23 }
  0x5d   : > { %v501_v52 = vadd.f32 %v500_v45, %v499_v48  ;;  %820 = vst.msk [vmem:[#allocation2 + $0xb0] sm:$0x1] %vm585_vm3, %v2891_v23 }
  0x5e   : > { %821 = vst.msk [vmem:[#allocation2 + $0xc0] sm:$0x1] %vm585_vm3, %v2891_v23 }
  0x5f   : > { %v503_v53 = vadd.f32 %v502_v51, %v501_v52  ;;  %822 = vst.msk [vmem:[#allocation2 + $0xd0] sm:$0x1] %vm585_vm3, %v2891_v23 }
  0x60   : > { %823 = vst.msk [vmem:[#allocation2 + $0xe0] sm:$0x1] %vm585_vm3, %v2891_v23 }
  0x61   : > { %1038 = vrot.lane.b32.xlu0 %v3032_v1, %s2890_s29  ;;  %v504_v55 = vrot.slane %v503_v53, 4  ;;  %934 = vrot.lane.b32.xlu2 %v3208_v8, %s2888_s2  ;;  %824 = vst.msk [vmem:[#allocation2 + $0xf0] sm:$0x1] %vm585_vm3, %v2891_v23 }
  0x62   : > { %932 = vrot.lane.b32.xlu1 %v3203_v63, %s2888_s2  ;;  %859 = vst.msk [vmem:[#allocation2 + $0x9] sm:$0x7f] %vm828_vm4, %v3362_v25  ;;  %vm1561_vm4 = vcmask 195744  }
  0x63   : > { %v505_v59 = vadd.f32 %v504_v55, %v503_v53 }
  0x65   : > { %v506_v62 = vrot.slane %v505_v59, 2 }
  0x67   : > { %v507_v11 = vadd.f32 %v506_v62, %v505_v59 }
  0x69   : > { %1044 = vrot.lane.b32.xlu0 %v3068_v10, %s2890_s29  ;;  %v508_v15 = vrot.slane %v507_v11, 1  ;;  %940 = vrot.lane.b32.xlu2 %v3225_v22, %s2888_s2 }
  0x6a   : > { %938 = vrot.lane.b32.xlu1 %v3192_v60, %s2888_s2 }
  0x6b   : > { %v509_v20 = vadd.f32 %v508_v15, %v507_v11 }
  0x6d   : > { %v517_v21 = vmul.f32 %v516_v17, %v509_v20 }
  0x6f   : > { %2572 = vmatmul.msk.f32.vlgmr.msra.gmra.mxu0 %vm440_vm0, %v517_v21  ;;  %vm1446_vm0 = vcmask 188576  }
  0x71   : > { %1050 = vrot.lane.b32.xlu0 %v3054_v6, %s2890_s29  ;;  %946 = vrot.lane.b32.xlu2 %v3245_v36, %s2888_s2 }
  0x72   : > { %944 = vrot.lane.b32.xlu1 %v3237_v30, %s2888_s2 }
  0x79   : > { %1056 = vrot.lane.b32.xlu0 %v3123_v29, %s2890_s29  ;;  %1015 = vrot.lane.b32.xlu2 %v3362_v25, %s2888_s2 }
  0x7a   : > { %1013 = vrot.lane.b32.xlu1 %v3240_v33, %s2888_s2 }
  0x7b   : > { %v893_v26 = vpop.permute.xlu2 %892 }
  0x7c   : > { %982 = vst.msk [vmem:[#allocation2 + $0x18] sm:$0xff] %vm980_vm5, %v893_v26 }
  0x7d   : > { %1023 = vst.msk [vmem:[#allocation2 + $0x1f] sm:$0x1] %vm1021_vm6, %v2891_v23 }
  0x81   : > { %1062 = vrot.lane.b32.xlu0 %v3080_v14, %s2890_s29  ;;  %1042 = vrot.lane.b32.xlu2 %v3039_v2, %s2890_s29 }
  0x82   : > { %1040 = vrot.lane.b32.xlu1 %v3049_v5, %s2890_s29 }
  0x83   : > { %v897_v34 = vpop.permute.xlu2 %896 }
  0x84   : > { %984 = vst.msk [vmem:[#allocation2 + $0x28] sm:$0xff] %vm980_vm5, %v897_v34 }
  0x85   : > { %1024 = vst.msk [vmem:[#allocation2 + $0x2f] sm:$0x1] %vm1021_vm6, %v2891_v23 }
  0x89   : > { %1068 = vrot.lane.b32.xlu0 %v3162_v46, %s2890_s29  ;;  %1048 = vrot.lane.b32.xlu2 %v3099_v19, %s2890_s29 }
  0x8a   : > { %1046 = vrot.lane.b32.xlu1 %v3046_v4, %s2890_s29 }
  0x8b   : > { %v901_v40 = vpop.permute.xlu2 %900 }
  0x8c   : > { %986 = vst.msk [vmem:[#allocation2 + $0x38] sm:$0xff] %vm980_vm5, %v901_v40 }
  0x8d   : > { %1025 = vst.msk [vmem:[#allocation2 + $0x3f] sm:$0x1] %vm1021_vm6, %v2891_v23 }
  0x91   : > { %1074 = vrot.lane.b32.xlu0 %v3142_v38, %s2890_s29  ;;  %1054 = vrot.lane.b32.xlu2 %v3029_v0, %s2890_s29 }
  0x92   : > { %1052 = vrot.lane.b32.xlu1 %v3112_v24, %s2890_s29 }
  0x93   : > { %v907_v27 = vpop.permute.xlu0 %906  ;;  %v905_v45 = vpop.permute.xlu2 %904 }
  0x94   : > { %v891_v31 = vpop.permute.xlu1 %890  ;;  %989 = vst.msk [vmem:[#allocation2 + $0x50] sm:$0xff] %vm980_vm5, %v907_v27 }
  0x95   : > { %981 = vst.msk [vmem:[#allocation2 + $0x10] sm:$0xff] %vm980_vm5, %v891_v31 }
  0x96   : > { %988 = vst.msk [vmem:[#allocation2 + $0x48] sm:$0xff] %vm980_vm5, %v905_v45 }
  0x97   : > { %1026 = vst.msk [vmem:[#allocation2 + $0x4f] sm:$0x1] %vm1021_vm6, %v2891_v23 }
  0x99   : > { %1080 = vrot.lane.b32.xlu0 %v3203_v63, %s2890_s29  ;;  %1060 = vrot.lane.b32.xlu2 %v3065_v9, %s2890_s29 }
  0x9a   : > { %1058 = vrot.lane.b32.xlu1 %v3128_v32, %s2890_s29 }
  0x9b   : > { %v913_v37 = vpop.permute.xlu0 %912  ;;  %v911_v51 = vpop.permute.xlu2 %910 }
  0x9c   : > { %v895_v39 = vpop.permute.xlu1 %894  ;;  %992 = vst.msk [vmem:[#allocation2 + $0x68] sm:$0xff] %vm980_vm5, %v913_v37 }
  0x9d   : > { %1028 = vst.msk [vmem:[#allocation2 + $0x6f] sm:$0x1] %vm1021_vm6, %v2891_v23 }
  0x9e   : > { %983 = vst.msk [vmem:[#allocation2 + $0x20] sm:$0xff] %vm980_vm5, %v895_v39  ;;  %v547_v39 = vld [vmem:[%s4586_s4] sm:$0x3] }
  0x9f   : > { %991 = vst.msk [vmem:[#allocation2 + $0x60] sm:$0xff] %vm980_vm5, %v911_v51  ;;  %2573 = vmatpush.msk.msra.mxu1 %vm553_vm10, %v547_v39 }
  0xa1   : > { %1086 = vrot.lane.b32.xlu0 %v3192_v60, %s2890_s29  ;;  %1066 = vrot.lane.b32.xlu2 %v3073_v12, %s2890_s29 }
  0xa2   : > { %1064 = vrot.lane.b32.xlu1 %v3153_v41, %s2890_s29 }
  0xa3   : > { %v919_v42 = vpop.permute.xlu0 %918  ;;  %v917_v54 = vpop.permute.xlu2 %916 }
  0xa4   : > { %v899_v44 = vpop.permute.xlu1 %898  ;;  %995 = vst.msk [vmem:[#allocation2 + $0x80] sm:$0xff] %vm980_vm5, %v919_v42 }
  0xa5   : > { %985 = vst.msk [vmem:[#allocation2 + $0x30] sm:$0xff] %vm980_vm5, %v899_v44 }
  0xa6   : > { %994 = vst.msk [vmem:[#allocation2 + $0x78] sm:$0xff] %vm980_vm5, %v917_v54 }
  0xa7   : > { %1029 = vst.msk [vmem:[#allocation2 + $0x7f] sm:$0x1] %vm1021_vm6, %v2891_v23 }
  0xa9   : > { %1092 = vrot.lane.b32.xlu0 %v3237_v30, %s2890_s29  ;;  %1072 = vrot.lane.b32.xlu2 %v3137_v35, %s2890_s29 }
  0xaa   : > { %1070 = vrot.lane.b32.xlu1 %v3167_v49, %s2890_s29 }
  0xab   : > { %v925_v48 = vpop.permute.xlu0 %924  ;;  %v923_v58 = vpop.permute.xlu2 %922 }
  0xac   : > { %v903_v50 = vpop.permute.xlu1 %902  ;;  %998 = vst.msk [vmem:[#allocation2 + $0x98] sm:$0xff] %vm980_vm5, %v925_v48 }
  0xad   : > { %1031 = vst.msk [vmem:[#allocation2 + $0x9f] sm:$0x1] %vm1021_vm6, %v2891_v23 }
  0xae   : > { %987 = vst.msk [vmem:[#allocation2 + $0x40] sm:$0xff] %vm980_vm5, %v903_v50 }
  0xaf   : > { %997 = vst.msk [vmem:[#allocation2 + $0x90] sm:$0xff] %vm980_vm5, %v923_v58 }
  0xb1   : > { %1160 = vrot.lane.b32.xlu0 %v3240_v33, %s2890_s29  ;;  %1078 = vrot.lane.b32.xlu2 %v3089_v16, %s2890_s29 }
  0xb2   : > { %1076 = vrot.lane.b32.xlu1 %v3187_v57, %s2890_s29 }
  0xb3   : > { %v931_v52 = vpop.permute.xlu0 %930  ;;  %v929_v62 = vpop.permute.xlu2 %928 }
  0xb4   : > { %v909_v53 = vpop.permute.xlu1 %908  ;;  %1001 = vst.msk [vmem:[#allocation2 + $0xb0] sm:$0xff] %vm980_vm5, %v931_v52 }
  0xb5   : > { %990 = vst.msk [vmem:[#allocation2 + $0x58] sm:$0xff] %vm980_vm5, %v909_v53 }
  0xb6   : > { %1027 = vst.msk [vmem:[#allocation2 + $0x5f] sm:$0x1] %vm1021_vm6, %v2891_v23 }
  0xb7   : > { %1000 = vst.msk [vmem:[#allocation2 + $0xa8] sm:$0xff] %vm980_vm5, %v929_v62 }
  0xb8   : > { %1032 = vst.msk [vmem:[#allocation2 + $0xaf] sm:$0x1] %vm1021_vm6, %v2891_v23 }
  0xb9   : > { %1189 = vrot.lane.b32.xlu0 %v3049_v5, %s2892_s18  ;;  %1084 = vrot.lane.b32.xlu2 %v3184_v56, %s2890_s29 }
  0xba   : > { %1082 = vrot.lane.b32.xlu1 %v3208_v8, %s2890_s29 }
  0xbb   : > { %v937_v33 = vpop.permute.xlu0 %936  ;;  %v935_v11 = vpop.permute.xlu2 %934 }
  0xbc   : > { %v915_v55 = vpop.permute.xlu1 %914  ;;  %1004 = vst.msk [vmem:[#allocation2 + $0xc8] sm:$0xff] %vm980_vm5, %v937_v33 }
  0xbd   : > { %1034 = vst.msk [vmem:[#allocation2 + $0xcf] sm:$0x1] %vm1021_vm6, %v2891_v23 }
  0xbe   : > { %993 = vst.msk [vmem:[#allocation2 + $0x70] sm:$0xff] %vm980_vm5, %v915_v55 }
  0xbf   : > { %1003 = vst.msk [vmem:[#allocation2 + $0xc0] sm:$0xff] %vm980_vm5, %v935_v11 }
  0xc1   : > { %1195 = vrot.lane.b32.xlu0 %v3046_v4, %s2892_s18  ;;  %1090 = vrot.lane.b32.xlu2 %v3096_v18, %s2890_s29 }
  0xc2   : > { %1088 = vrot.lane.b32.xlu1 %v3225_v22, %s2890_s29 }
  0xc3   : > { %v943_v59 = vpop.permute.xlu0 %942  ;;  %v941_v17 = vpop.permute.xlu2 %940 }
  0xc4   : > { %v921_v61 = vpop.permute.xlu1 %920  ;;  %1007 = vst.msk [vmem:[#allocation2 + $0xe0] sm:$0xff] %vm980_vm5, %v943_v59 }
  0xc5   : > { %996 = vst.msk [vmem:[#allocation2 + $0x88] sm:$0xff] %vm980_vm5, %v921_v61 }
  0xc6   : > { %1030 = vst.msk [vmem:[#allocation2 + $0x8f] sm:$0x1] %vm1021_vm6, %v2891_v23 }
  0xc7   : > { %1006 = vst.msk [vmem:[#allocation2 + $0xd8] sm:$0xff] %vm980_vm5, %v941_v17 }
  0xc8   : > { %1035 = vst.msk [vmem:[#allocation2 + $0xdf] sm:$0x1] %vm1021_vm6, %v2891_v23 }
  0xc9   : > { %1201 = vrot.lane.b32.xlu0 %v3112_v24, %s2892_s18  ;;  %1096 = vrot.lane.b32.xlu2 %v3234_v28, %s2890_s29 }
  0xca   : > { %1094 = vrot.lane.b32.xlu1 %v3245_v36, %s2890_s29 }
  0xcb   : > { %v949_v3 = vpop.permute.xlu0 %948 }
  0xcc   : > { %v927_v7 = vpop.permute.xlu1 %926  ;;  %1010 = vst.msk [vmem:[#allocation2 + $0xf8] sm:$0xff] %vm980_vm5, %v949_v3 }
  0xcd   : > { %1037 = vst.msk [vmem:[#allocation2 + $0xff] sm:$0x1] %vm1021_vm6, %v2891_v23 }
  0xce   : > { %999 = vst.msk [vmem:[#allocation2 + $0xa0] sm:$0xff] %vm980_vm5, %v927_v7 }
  0xd1   : > { %1207 = vrot.lane.b32.xlu0 %v3128_v32, %s2892_s18  ;;  %1187 = vrot.lane.b32.xlu2 %v3032_v1, %s2892_s18 }
  0xd2   : > { %1162 = vrot.lane.b32.xlu1 %v3362_v25, %s2890_s29  ;;  %v947_v25 = vpop.permute.xlu2 %946 }
  0xd3   : > { %v1039_v13 = vpop.permute.xlu0 %1038  ;;  %1009 = vst.msk [vmem:[#allocation2 + $0xf0] sm:$0xff] %vm980_vm5, %v947_v25 }
  0xd4   : > { %v933_v15 = vpop.permute.xlu1 %932  ;;  %1129 = vst.msk [vmem:[#allocation2 + $0xf] sm:$0xfe] %vm1128_vm7, %v1039_v13 }
  0xd5   : > { %1170 = vst.msk [vmem:[#allocation2 + $0x10] sm:$0x1] %vm1168_vm8, %v2891_v23 }
  0xd6   : > { %1002 = vst.msk [vmem:[#allocation2 + $0xb8] sm:$0xff] %vm980_vm5, %v933_v15 }
  0xd7   : > { %1033 = vst.msk [vmem:[#allocation2 + $0xbf] sm:$0x1] %vm1021_vm6, %v2891_v23 }
  0xd9   : > { %1213 = vrot.lane.b32.xlu0 %v3153_v41, %s2892_s18  ;;  %1193 = vrot.lane.b32.xlu2 %v3068_v10, %s2892_s18 }
  0xda   : > { %1191 = vrot.lane.b32.xlu1 %v3039_v2, %s2892_s18  ;;  %v1016_v31 = vpop.permute.xlu2 %1015 }
  0xdb   : > { %v1045_v20 = vpop.permute.xlu0 %1044  ;;  %1020 = vst.msk [vmem:[#allocation2 + $0x8] sm:$0xff] %vm980_vm5, %v1016_v31 }
  0xdc   : > { %v939_v21 = vpop.permute.xlu1 %938  ;;  %1133 = vst.msk [vmem:[#allocation2 + $0x27] sm:$0xff] %vm1130_vm9, %v1045_v20 }
  0xdd   : > { %1005 = vst.msk [vmem:[#allocation2 + $0xd0] sm:$0xff] %vm980_vm5, %v939_v21 }
  0xde   : > { %1022 = vst.msk [vmem:[#allocation2 + $0xf] sm:$0x1] %vm1021_vm6, %v2891_v23 }
  0xe1   : > { %1219 = vrot.lane.b32.xlu0 %v3167_v49, %s2892_s18  ;;  %1199 = vrot.lane.b32.xlu2 %v3054_v6, %s2892_s18 }
  0xe2   : > { %1197 = vrot.lane.b32.xlu1 %v3099_v19, %s2892_s18  ;;  %v1043_v44 = vpop.permute.xlu2 %1042 }
  0xe3   : > { %v1051_v26 = vpop.permute.xlu0 %1050  ;;  %1132 = vst.msk [vmem:[#allocation2 + $0x1f] sm:$0xfe] %vm1128_vm7, %v1043_v44 }
  0xe4   : > { %v945_v27 = vpop.permute.xlu1 %944  ;;  %1136 = vst.msk [vmem:[#allocation2 + $0x3f] sm:$0xfe] %vm1128_vm7, %v1051_v26 }
  0xe5   : > { %1173 = vst.msk [vmem:[#allocation2 + $0x40] sm:$0x1] %vm1168_vm8, %v2891_v23 }
  0xe6   : > { %1008 = vst.msk [vmem:[#allocation2 + $0xe8] sm:$0xff] %vm980_vm5, %v945_v27 }
  0xe7   : > { %1036 = vst.msk [vmem:[#allocation2 + $0xef] sm:$0x1] %vm1021_vm6, %v2891_v23  ;;  %vm1702_vm6 = vcmask 227520  }
  0xe8   : > { %1171 = vst.msk [vmem:[#allocation2 + $0x20] sm:$0x1] %vm1168_vm8, %v2891_v23 }
  0xe9   : > { %1225 = vrot.lane.b32.xlu0 %v3187_v57, %s2892_s18  ;;  %1205 = vrot.lane.b32.xlu2 %v3123_v29, %s2892_s18 }
  0xea   : > { %1203 = vrot.lane.b32.xlu1 %v3029_v0, %s2892_s18  ;;  %v1049_v50 = vpop.permute.xlu2 %1048 }
  0xeb   : > { %v1057_v34 = vpop.permute.xlu0 %1056  ;;  %1135 = vst.msk [vmem:[#allocation2 + $0x37] sm:$0xff] %vm1130_vm9, %v1049_v50 }
  0xec   : > { %v1014_v37 = vpop.permute.xlu1 %1013  ;;  %1139 = vst.msk [vmem:[#allocation2 + $0x57] sm:$0xff] %vm1130_vm9, %v1057_v34  ;;  %v543_v40 = vpop.f32.mrf.mxu0 }
  0xed   : > { %1019 = vst.msk [vmem:[#allocation2] sm:$0xff] %vm980_vm5, %v1014_v37  ;;  %v546_v42 = vmax.f32 %v543_v40, 0.0  ;;  %vm1700_vm5 = vcmask 228544  }
  0xef   : > { %2574 = vmatmul.msk.f32.vlgmr.msra.gmra.mxu1 %vm549_vm11, %v546_v42 }
  0xf1   : > { %1231 = vrot.lane.b32.xlu0 %v3208_v8, %s2892_s18  ;;  %1211 = vrot.lane.b32.xlu2 %v3080_v14, %s2892_s18 }
  0xf2   : > { %1209 = vrot.lane.b32.xlu1 %v3065_v9, %s2892_s18  ;;  %v1055_v53 = vpop.permute.xlu2 %1054 }
  0xf3   : > { %v1063_v45 = vpop.permute.xlu0 %1062  ;;  %1138 = vst.msk [vmem:[#allocation2 + $0x4f] sm:$0xfe] %vm1128_vm7, %v1055_v53 }
  0xf4   : > { %v1041_v48 = vpop.permute.xlu1 %1040  ;;  %1142 = vst.msk [vmem:[#allocation2 + $0x6f] sm:$0xfe] %vm1128_vm7, %v1063_v45 }
  0xf5   : > { %1176 = vst.msk [vmem:[#allocation2 + $0x70] sm:$0x1] %vm1168_vm8, %v2891_v23 }
  0xf6   : > { %1131 = vst.msk [vmem:[#allocation2 + $0x17] sm:$0xff] %vm1130_vm9, %v1041_v48 }
  0xf7   : > { %1174 = vst.msk [vmem:[#allocation2 + $0x50] sm:$0x1] %vm1168_vm8, %v2891_v23 }
  0xf9   : > { %1237 = vrot.lane.b32.xlu0 %v3225_v22, %s2892_s18  ;;  %1217 = vrot.lane.b32.xlu2 %v3162_v46, %s2892_s18 }
  0xfa   : > { %1215 = vrot.lane.b32.xlu1 %v3073_v12, %s2892_s18  ;;  %v1061_v55 = vpop.permute.xlu2 %1060 }
  0xfb   : > { %v1069_v51 = vpop.permute.xlu0 %1068  ;;  %1141 = vst.msk [vmem:[#allocation2 + $0x67] sm:$0xff] %vm1130_vm9, %v1061_v55 }
  0xfc   : > { %v1047_v52 = vpop.permute.xlu1 %1046  ;;  %1145 = vst.msk [vmem:[#allocation2 + $0x87] sm:$0xff] %vm1130_vm9, %v1069_v51 }
  0xfd   : > { %1134 = vst.msk [vmem:[#allocation2 + $0x2f] sm:$0xfe] %vm1128_vm7, %v1047_v52 }
  0xfe   : > { %1172 = vst.msk [vmem:[#allocation2 + $0x30] sm:$0x1] %vm1168_vm8, %v2891_v23 }
 0x101   : > { %1243 = vrot.lane.b32.xlu0 %v3245_v36, %s2892_s18  ;;  %1223 = vrot.lane.b32.xlu2 %v3142_v38, %s2892_s18 }
 0x102   : > { %1221 = vrot.lane.b32.xlu1 %v3137_v35, %s2892_s18  ;;  %v1067_v61 = vpop.permute.xlu2 %1066 }
 0x103   : > { %v1075_v54 = vpop.permute.xlu0 %1074  ;;  %1144 = vst.msk [vmem:[#allocation2 + $0x7f] sm:$0xfe] %vm1128_vm7, %v1067_v61 }
 0x104   : > { %v1053_v33 = vpop.permute.xlu1 %1052  ;;  %1148 = vst.msk [vmem:[#allocation2 + $0x9f] sm:$0xfe] %vm1128_vm7, %v1075_v54 }
 0x105   : > { %1179 = vst.msk [vmem:[#allocation2 + $0xa0] sm:$0x1] %vm1168_vm8, %v2891_v23 }
 0x106   : > { %1137 = vst.msk [vmem:[#allocation2 + $0x47] sm:$0xff] %vm1130_vm9, %v1053_v33 }
 0x107   : > { %1177 = vst.msk [vmem:[#allocation2 + $0x80] sm:$0x1] %vm1168_vm8, %v2891_v23 }
 0x109   : > { %1249 = vrot.lane.b32.xlu0 %v3267_v47, %s2892_s18  ;;  %1229 = vrot.lane.b32.xlu2 %v3203_v63, %s2892_s18 }
 0x10a   : > { %1227 = vrot.lane.b32.xlu1 %v3089_v16, %s2892_s18  ;;  %v1073_v7 = vpop.permute.xlu2 %1072 }
 0x10b   : > { %v1081_v58 = vpop.permute.xlu0 %1080  ;;  %1147 = vst.msk [vmem:[#allocation2 + $0x97] sm:$0xff] %vm1130_vm9, %v1073_v7 }
 0x10c   : > { %v1059_v59 = vpop.permute.xlu1 %1058  ;;  %1151 = vst.msk [vmem:[#allocation2 + $0xb7] sm:$0xff] %vm1130_vm9, %v1081_v58 }
 0x10d   : > { %1140 = vst.msk [vmem:[#allocation2 + $0x5f] sm:$0xfe] %vm1128_vm7, %v1059_v59 }
 0x10e   : > { %1175 = vst.msk [vmem:[#allocation2 + $0x60] sm:$0x1] %vm1168_vm8, %v2891_v23 }
 0x111   : > { %1321 = vrot.lane.b32.xlu0 %v3039_v2, %s2893_s27  ;;  %1235 = vrot.lane.b32.xlu2 %v3192_v60, %s2892_s18 }
 0x112   : > { %1233 = vrot.lane.b32.xlu1 %v3184_v56, %s2892_s18  ;;  %v1079_v15 = vpop.permute.xlu2 %1078 }
 0x113   : > { %v1087_v62 = vpop.permute.xlu0 %1086  ;;  %1150 = vst.msk [vmem:[#allocation2 + $0xaf] sm:$0xfe] %vm1128_vm7, %v1079_v15 }
 0x114   : > { %v1065_v3 = vpop.permute.xlu1 %1064  ;;  %1154 = vst.msk [vmem:[#allocation2 + $0xcf] sm:$0xfe] %vm1128_vm7, %v1087_v62 }
 0x115   : > { %1182 = vst.msk [vmem:[#allocation2 + $0xd0] sm:$0x1] %vm1168_vm8, %v2891_v23 }
 0x116   : > { %1143 = vst.msk [vmem:[#allocation2 + $0x77] sm:$0xff] %vm1130_vm9, %v1065_v3 }
 0x117   : > { %1180 = vst.msk [vmem:[#allocation2 + $0xb0] sm:$0x1] %vm1168_vm8, %v2891_v23 }
 0x119   : > { %1327 = vrot.lane.b32.xlu0 %v3099_v19, %s2893_s27  ;;  %1241 = vrot.lane.b32.xlu2 %v3237_v30, %s2892_s18 }
 0x11a   : > { %1239 = vrot.lane.b32.xlu1 %v3096_v18, %s2892_s18  ;;  %v1085_v21 = vpop.permute.xlu2 %1084 }
 0x11b   : > { %v1093_v11 = vpop.permute.xlu0 %1092  ;;  %1153 = vst.msk [vmem:[#allocation2 + $0xc7] sm:$0xff] %vm1130_vm9, %v1085_v21 }
 0x11c   : > { %v1071_v13 = vpop.permute.xlu1 %1070  ;;  %1157 = vst.msk [vmem:[#allocation2 + $0xe7] sm:$0xff] %vm1130_vm9, %v1093_v11  ;;  %v2895_v11 = vmov 34.0  }
 0x11d   : > { %1146 = vst.msk [vmem:[#allocation2 + $0x8f] sm:$0xfe] %vm1128_vm7, %v1071_v13  ;;  %2768 = vrcp.f32 %v2895_v11 }
 0x11e   : > { %1178 = vst.msk [vmem:[#allocation2 + $0x90] sm:$0x1] %vm1168_vm8, %v2891_v23 }
 0x121   : > { %1333 = vrot.lane.b32.xlu0 %v3029_v0, %s2893_s27  ;;  %1247 = vrot.lane.b32.xlu2 %v3260_v43, %s2892_s18 }
 0x122   : > { %1245 = vrot.lane.b32.xlu1 %v3234_v28, %s2892_s18  ;;  %v1091_v27 = vpop.permute.xlu2 %1090  ;;  %s4594_s18 = smov 32  }
 0x123   : > { %v1161_v17 = vpop.permute.xlu0 %1160  ;;  %1156 = vst.msk [vmem:[#allocation2 + $0xdf] sm:$0xfe] %vm1128_vm7, %v1091_v27 }
 0x124   : > { %v1077_v20 = vpop.permute.xlu1 %1076  ;;  %1166 = vst.msk [vmem:[#allocation2 - $0x1] sm:$0xfe] %vm1128_vm7, %v1161_v17 }
 0x125   : > { %1169 = vst.msk [vmem:[#allocation2] sm:$0x1] %vm1168_vm8, %v2891_v23 }
 0x126   : > { %1149 = vst.msk [vmem:[#allocation2 + $0xa7] sm:$0xff] %vm1130_vm9, %v1077_v20  ;;  %v2769_v20 = vpop.eup %2768 }
 0x127   : > { %1183 = vst.msk [vmem:[#allocation2 + $0xe0] sm:$0x1] %vm1168_vm8, %v2891_v23  ;;  %v578_v21 = vmul.f32 34.0, %v2769_v20  ;;  %vm582_vm15 = vweird.f32 %v2769_v20 }
 0x129   : > { %1339 = vrot.lane.b32.xlu0 %v3065_v9, %s2893_s27  ;;  %1319 = vrot.lane.b32.xlu2 %v3049_v5, %s2893_s27 }
 0x12a   : > { %1317 = vrot.lane.b32.xlu1 %v3032_v1, %s2893_s27  ;;  %v1097_v37 = vpop.permute.xlu2 %1096 }
 0x12b   : > { %v1190_v25 = vpop.permute.xlu0 %1189  ;;  %1159 = vst.msk [vmem:[#allocation2 + $0xf7] sm:$0xff] %vm1130_vm9, %v1097_v37 }
 0x12c   : > { %v1083_v26 = vpop.permute.xlu1 %1082 }
 0x12d   : > { %1152 = vst.msk [vmem:[#allocation2 + $0xbf] sm:$0xfe] %vm1128_vm7, %v1083_v26 }
 0x12e   : > { %1181 = vst.msk [vmem:[#allocation2 + $0xc0] sm:$0x1] %vm1168_vm8, %v2891_v23 }
 0x131   : > { %1345 = vrot.lane.b32.xlu0 %v3073_v12, %s2893_s27  ;;  %1325 = vrot.lane.b32.xlu2 %v3046_v4, %s2893_s27 }
 0x132   : > { %1323 = vrot.lane.b32.xlu1 %v3068_v10, %s2893_s27  ;;  %v1188_v42 = vpop.permute.xlu2 %1187 }
 0x133   : > { %v1196_v31 = vpop.permute.xlu0 %1195 }
 0x134   : > { %v1089_v34 = vpop.permute.xlu1 %1088  ;;  %1289 = vst.msk [vmem:[#allocation2 + $0x21] sm:$0xff] %vm1283_vm12, %v1196_v31  ;;  %v579_v31 = vsub.f32 1.0, %v578_v21 }
 0x135   : > { %1155 = vst.msk [vmem:[#allocation2 + $0xd7] sm:$0xff] %vm1130_vm9, %v1089_v34 }
 0x136   : > { %v580_v34 = vmul.f32 %v2769_v20, %v579_v31 }
 0x139   : > { %1351 = vrot.lane.b32.xlu0 %v3137_v35, %s2893_s27  ;;  %1331 = vrot.lane.b32.xlu2 %v3112_v24, %s2893_s27 }
 0x13a   : > { %1329 = vrot.lane.b32.xlu1 %v3054_v6, %s2893_s27  ;;  %v1194_v48 = vpop.permute.xlu2 %1193 }
 0x13b   : > { %v1202_v39 = vpop.permute.xlu0 %1201  ;;  %1288 = vst.msk [vmem:[#allocation2 + $0x19] sm:$0x7f] %vm1285_vm13, %v1194_v48 }
 0x13c   : > { %v1095_v40 = vpop.permute.xlu1 %1094  ;;  %1292 = vst.msk [vmem:[#allocation2 + $0x39] sm:$0x7f] %vm1285_vm13, %v1202_v39 }
 0x13d   : > { %1158 = vst.msk [vmem:[#allocation2 + $0xef] sm:$0xfe] %vm1128_vm7, %v1095_v40  ;;  %v548_v40 = vld [vmem:[%s4587_s5] sm:$0x1]  ;;  %vm1872_vm7 = vcmask 286976  }
 0x13e   : > { %1184 = vst.msk [vmem:[#allocation2 + $0xf0] sm:$0x1] %vm1168_vm8, %v2891_v23  ;;  %vm1833_vm8 = vcmask 261344  }
 0x141   : > { %1357 = vrot.lane.b32.xlu0 %v3089_v16, %s2893_s27  ;;  %1337 = vrot.lane.b32.xlu2 %v3128_v32, %s2893_s27 }
 0x142   : > { %1335 = vrot.lane.b32.xlu1 %v3123_v29, %s2893_s27  ;;  %v1200_v52 = vpop.permute.xlu2 %1199 }
 0x143   : > { %v1208_v44 = vpop.permute.xlu0 %1207  ;;  %1291 = vst.msk [vmem:[#allocation2 + $0x31] sm:$0xff] %vm1283_vm12, %v1200_v52 }
 0x144   : > { %v1163_v45 = vpop.permute.xlu1 %1162  ;;  %1295 = vst.msk [vmem:[#allocation2 + $0x51] sm:$0xff] %vm1283_vm12, %v1208_v44  ;;  %v581_v44 = vadd.f32 %v2769_v20, %v580_v34 }
 0x145   : > { %1167 = vst.msk [vmem:[#allocation2 + $0x7] sm:$0xff] %vm1130_vm9, %v1163_v45  ;;  %vm1981_vm9 = vcmask 294144  }
 0x146   : > { %1286 = vst.msk [vmem:[#allocation2 + $0x9] sm:$0x7f] %vm1285_vm13, %v1190_v25  ;;  %v583_v45 = vsel %vm582_vm15, %v2769_v20, %v581_v44 }
 0x147   : > { %1284 = vst.msk [vmem:[#allocation2 + $0x1] sm:$0xff] %vm1283_vm12, %v1188_v42 }
 0x149   : > { %1363 = vrot.lane.b32.xlu0 %v3184_v56, %s2893_s27  ;;  %1343 = vrot.lane.b32.xlu2 %v3153_v41, %s2893_s27 }
 0x14a   : > { %1341 = vrot.lane.b32.xlu1 %v3080_v14, %s2893_s27  ;;  %v1206_v33 = vpop.permute.xlu2 %1205 }
 0x14b   : > { %v1214_v50 = vpop.permute.xlu0 %1213  ;;  %1294 = vst.msk [vmem:[#allocation2 + $0x49] sm:$0x7f] %vm1285_vm13, %v1206_v33 }
 0x14c   : > { %v1192_v51 = vpop.permute.xlu1 %1191  ;;  %1298 = vst.msk [vmem:[#allocation2 + $0x69] sm:$0x7f] %vm1285_vm13, %v1214_v50 }
 0x14d   : > { %1287 = vst.msk [vmem:[#allocation2 + $0x11] sm:$0xff] %vm1283_vm12, %v1192_v51 }
 0x151   : > { %1369 = vrot.lane.b32.xlu0 %v3096_v18, %s2893_s27  ;;  %1349 = vrot.lane.b32.xlu2 %v3167_v49, %s2893_s27 }
 0x152   : > { %1347 = vrot.lane.b32.xlu1 %v3162_v46, %s2893_s27  ;;  %v1212_v59 = vpop.permute.xlu2 %1211 }
 0x153   : > { %v1220_v53 = vpop.permute.xlu0 %1219  ;;  %1297 = vst.msk [vmem:[#allocation2 + $0x61] sm:$0xff] %vm1283_vm12, %v1212_v59 }
 0x154   : > { %v1198_v54 = vpop.permute.xlu1 %1197  ;;  %1301 = vst.msk [vmem:[#allocation2 + $0x81] sm:$0xff] %vm1283_vm12, %v1220_v53 }
 0x155   : > { %1290 = vst.msk [vmem:[#allocation2 + $0x29] sm:$0x7f] %vm1285_vm13, %v1198_v54 }
 0x159   : > { %1375 = vrot.lane.b32.xlu0 %v3234_v28, %s2893_s27  ;;  %1355 = vrot.lane.b32.xlu2 %v3187_v57, %s2893_s27 }
 0x15a   : > { %1353 = vrot.lane.b32.xlu1 %v3142_v38, %s2893_s27 }
 0x15b   : > { %v1226_v55 = vpop.permute.xlu0 %1225 }
 0x15c   : > { %v1204_v58 = vpop.permute.xlu1 %1203  ;;  %1304 = vst.msk [vmem:[#allocation2 + $0x99] sm:$0x7f] %vm1285_vm13, %v1226_v55 }
 0x15d   : > { %1293 = vst.msk [vmem:[#allocation2 + $0x41] sm:$0xff] %vm1283_vm12, %v1204_v58 }
 0x161   : > { %1463 = vrot.lane.b32.xlu0 %v3032_v1, %s2894_s1  ;;  %v1218_v1 = vpop.permute.xlu2 %1217  ;;  %1361 = vrot.lane.b32.xlu2 %v3208_v8, %s2893_s27 }
 0x162   : > { %1359 = vrot.lane.b32.xlu1 %v3203_v63, %s2893_s27  ;;  %1300 = vst.msk [vmem:[#allocation2 + $0x79] sm:$0x7f] %vm1285_vm13, %v1218_v1 }
 0x163   : > { %v1232_v61 = vpop.permute.xlu0 %1231 }
 0x164   : > { %v1210_v62 = vpop.permute.xlu1 %1209  ;;  %1307 = vst.msk [vmem:[#allocation2 + $0xb1] sm:$0xff] %vm1283_vm12, %v1232_v61 }
 0x165   : > { %1296 = vst.msk [vmem:[#allocation2 + $0x59] sm:$0x7f] %vm1285_vm13, %v1210_v62 }
 0x169   : > { %1469 = vrot.lane.b32.xlu0 %v3068_v10, %s2894_s1  ;;  %v1224_v13 = vpop.permute.xlu2 %1223  ;;  %1367 = vrot.lane.b32.xlu2 %v3225_v22, %s2893_s27 }
 0x16a   : > { %1365 = vrot.lane.b32.xlu1 %v3192_v60, %s2893_s27  ;;  %1303 = vst.msk [vmem:[#allocation2 + $0x91] sm:$0xff] %vm1283_vm12, %v1224_v13 }
 0x16b   : > { %v1238_v3 = vpop.permute.xlu0 %1237 }
 0x16c   : > { %v1216_v7 = vpop.permute.xlu1 %1215  ;;  %1310 = vst.msk [vmem:[#allocation2 + $0xc9] sm:$0x7f] %vm1285_vm13, %v1238_v3  ;;  %v574_v42 = vpop.f32.mrf.mxu1 }
 0x16d   : > { %1299 = vst.msk [vmem:[#allocation2 + $0x71] sm:$0xff] %vm1283_vm12, %v1216_v7 }
 0x171   : > { %v1230_v25 = vpop.permute.xlu2 %1229  ;;  %1373 = vrot.lane.b32.xlu2 %v3245_v36, %s2893_s27 }
 0x172   : > { %1371 = vrot.lane.b32.xlu1 %v3237_v30, %s2893_s27  ;;  %1306 = vst.msk [vmem:[#allocation2 + $0xa9] sm:$0x7f] %vm1285_vm13, %v1230_v25 }
 0x173   : > { %v1244_v15 = vpop.permute.xlu0 %1243 }
 0x174   : > { %v1222_v17 = vpop.permute.xlu1 %1221  ;;  %1313 = vst.msk [vmem:[#allocation2 + $0xe1] sm:$0xff] %vm1283_vm12, %v1244_v15 }
 0x175   : > { %1302 = vst.msk [vmem:[#allocation2 + $0x89] sm:$0x7f] %vm1285_vm13, %v1222_v17 }
 0x179   : > { %1379 = vrot.lane.b32.xlu2 %v3267_v47, %s2893_s27 }
 0x17a   : > { %1377 = vrot.lane.b32.xlu1 %v3260_v43, %s2893_s27  ;;  %v1236_v43 = vpop.permute.xlu2 %1235  ;;  %s2904_s27 = smov 125  }
 0x17b   : > { %v1250_v26 = vpop.permute.xlu0 %1249  ;;  %1309 = vst.msk [vmem:[#allocation2 + $0xc1] sm:$0xff] %vm1283_vm12, %v1236_v43 }
 0x17c   : > { %v1228_v27 = vpop.permute.xlu1 %1227  ;;  %1316 = vst.msk [vmem:[#allocation2 + $0xf9] sm:$0x7f] %vm1285_vm13, %v1250_v26 }
 0x17d   : > { %1305 = vst.msk [vmem:[#allocation2 + $0xa1] sm:$0xff] %vm1283_vm12, %v1228_v27 }
 0x181   : > { %1467 = vrot.lane.b32.xlu2 %v3039_v2, %s2894_s1 }
 0x182   : > { %1465 = vrot.lane.b32.xlu1 %v3049_v5, %s2894_s1  ;;  %v575_v5 = vadd.f32 %v574_v42, %v548_v40  ;;  %v1242_v48 = vpop.permute.xlu2 %1241 }
 0x183   : > { %v1322_v37 = vpop.permute.xlu0 %1321  ;;  %1312 = vst.msk [vmem:[#allocation2 + $0xd9] sm:$0x7f] %vm1285_vm13, %v1242_v48 }
 0x184   : > { %v1234_v39 = vpop.permute.xlu1 %1233  ;;  %1416 = vst.msk [vmem:[#allocation2 + $0x10] sm:$0xff] %vm1413_vm14, %v1322_v37  ;;  %v3722_v52 = vmul.f32 %v583_v45, %v575_v5 }
 0x185   : > { %1308 = vst.msk [vmem:[#allocation2 + $0xb9] sm:$0x7f] %vm1285_vm13, %v1234_v39 }
 0x186   : > { %v586_v53 = vsel %vm585_vm3, %v3722_v52, -inf }
 0x189   : > { %1473 = vrot.lane.b32.xlu2 %v3099_v19, %s2894_s1 }
 0x18a   : > { %1471 = vrot.lane.b32.xlu1 %v3046_v4, %s2894_s1  ;;  %v1248_v54 = vpop.permute.xlu2 %1247 }
 0x18b   : > { %v1328_v50 = vpop.permute.xlu0 %1327  ;;  %1315 = vst.msk [vmem:[#allocation2 + $0xf1] sm:$0xff] %vm1283_vm12, %v1248_v54 }
 0x18c   : > { %v1240_v51 = vpop.permute.xlu1 %1239  ;;  %1419 = vst.msk [vmem:[#allocation2 + $0x28] sm:$0xff] %vm1413_vm14, %v1328_v50 }
 0x18d   : > { %1449 = vst.msk [vmem:[#allocation2 + $0x2f] sm:$0x1] %vm1446_vm0, %v2891_v23 }
 0x18e   : > { %1311 = vst.msk [vmem:[#allocation2 + $0xd1] sm:$0xff] %vm1283_vm12, %v1240_v51 }
 0x191   : > { %1479 = vrot.lane.b32.xlu2 %v3029_v0, %s2894_s1 }
 0x192   : > { %1477 = vrot.lane.b32.xlu1 %v3112_v24, %s2894_s1  ;;  %v1320_v47 = vpop.permute.xlu2 %1319 }
 0x193   : > { %v1334_v33 = vpop.permute.xlu0 %1333  ;;  %587 = vmax.xlane.f32.xlu0 %v586_v53  ;;  %1415 = vst.msk [vmem:[#allocation2 + $0x8] sm:$0xff] %vm1413_vm14, %v1320_v47 }
 0x194   : > { %v1246_v55 = vpop.permute.xlu1 %1245  ;;  %1422 = vst.msk [vmem:[#allocation2 + $0x40] sm:$0xff] %vm1413_vm14, %v1334_v33 }
 0x195   : > { %1314 = vst.msk [vmem:[#allocation2 + $0xe9] sm:$0x7f] %vm1285_vm13, %v1246_v55 }
 0x196   : > { %1447 = vst.msk [vmem:[#allocation2 + $0xf] sm:$0x1] %vm1446_vm0, %v2891_v23 }
 0x199   : > { %1485 = vrot.lane.b32.xlu2 %v3065_v9, %s2894_s1 }
 0x19a   : > { %1483 = vrot.lane.b32.xlu1 %v3128_v32, %s2894_s1  ;;  %v1326_v61 = vpop.permute.xlu2 %1325 }
 0x19b   : > { %v1340_v58 = vpop.permute.xlu0 %1339  ;;  %1418 = vst.msk [vmem:[#allocation2 + $0x20] sm:$0xff] %vm1413_vm14, %v1326_v61 }
 0x19c   : > { %v1318_v59 = vpop.permute.xlu1 %1317  ;;  %1425 = vst.msk [vmem:[#allocation2 + $0x58] sm:$0xff] %vm1413_vm14, %v1340_v58 }
 0x19d   : > { %1452 = vst.msk [vmem:[#allocation2 + $0x5f] sm:$0x1] %vm1446_vm0, %v2891_v23 }
 0x19e   : > { %1414 = vst.msk [vmem:[#allocation2] sm:$0xff] %vm1413_vm14, %v1318_v59 }
 0x1a1   : > { %1491 = vrot.lane.b32.xlu2 %v3073_v12, %s2894_s1 }
 0x1a2   : > { %1489 = vrot.lane.b32.xlu1 %v3153_v41, %s2894_s1  ;;  %v1332_v3 = vpop.permute.xlu2 %1331 }
 0x1a3   : > { %v1346_v62 = vpop.permute.xlu0 %1345  ;;  %1421 = vst.msk [vmem:[#allocation2 + $0x38] sm:$0xff] %vm1413_vm14, %v1332_v3 }
 0x1a4   : > { %v1324_v1 = vpop.permute.xlu1 %1323  ;;  %1428 = vst.msk [vmem:[#allocation2 + $0x70] sm:$0xff] %vm1413_vm14, %v1346_v62 }
 0x1a5   : > { %1417 = vst.msk [vmem:[#allocation2 + $0x18] sm:$0xff] %vm1413_vm14, %v1324_v1 }
 0x1a6   : > { %1448 = vst.msk [vmem:[#allocation2 + $0x1f] sm:$0x1] %vm1446_vm0, %v2891_v23 }
 0x1a7   : > { %1475 = vrot.lane.b32.xlu0 %v3054_v6, %s2894_s1  ;;  %1450 = vst.msk [vmem:[#allocation2 + $0x3f] sm:$0x1] %vm1446_vm0, %v2891_v23 }
 0x1a9   : > { %1497 = vrot.lane.b32.xlu2 %v3137_v35, %s2894_s1 }
 0x1aa   : > { %1495 = vrot.lane.b32.xlu1 %v3167_v49, %s2894_s1  ;;  %v1338_v13 = vpop.permute.xlu2 %1337 }
 0x1ab   : > { %v1352_v7 = vpop.permute.xlu0 %1351  ;;  %1424 = vst.msk [vmem:[#allocation2 + $0x50] sm:$0xff] %vm1413_vm14, %v1338_v13 }
 0x1ac   : > { %v1330_v11 = vpop.permute.xlu1 %1329  ;;  %1431 = vst.msk [vmem:[#allocation2 + $0x88] sm:$0xff] %vm1413_vm14, %v1352_v7 }
 0x1ad   : > { %1455 = vst.msk [vmem:[#allocation2 + $0x8f] sm:$0x1] %vm1446_vm0, %v2891_v23 }
 0x1ae   : > { %1420 = vst.msk [vmem:[#allocation2 + $0x30] sm:$0xff] %vm1413_vm14, %v1330_v11 }
 0x1af   : > { %1481 = vrot.lane.b32.xlu0 %v3123_v29, %s2894_s1 }
 0x1b1   : > { %1503 = vrot.lane.b32.xlu2 %v3089_v16, %s2894_s1 }
 0x1b2   : > { %1501 = vrot.lane.b32.xlu1 %v3187_v57, %s2894_s1  ;;  %v1344_v20 = vpop.permute.xlu2 %1343 }
 0x1b3   : > { %v1358_v15 = vpop.permute.xlu0 %1357  ;;  %1427 = vst.msk [vmem:[#allocation2 + $0x68] sm:$0xff] %vm1413_vm14, %v1344_v20 }
 0x1b4   : > { %v1336_v17 = vpop.permute.xlu1 %1335  ;;  %1434 = vst.msk [vmem:[#allocation2 + $0xa0] sm:$0xff] %vm1413_vm14, %v1358_v15 }
 0x1b5   : > { %1423 = vst.msk [vmem:[#allocation2 + $0x48] sm:$0xff] %vm1413_vm14, %v1336_v17 }
 0x1b6   : > { %1451 = vst.msk [vmem:[#allocation2 + $0x4f] sm:$0x1] %vm1446_vm0, %v2891_v23 }
 0x1b7   : > { %1487 = vrot.lane.b32.xlu0 %v3080_v14, %s2894_s1  ;;  %1453 = vst.msk [vmem:[#allocation2 + $0x6f] sm:$0x1] %vm1446_vm0, %v2891_v23 }
 0x1b9   : > { %1509 = vrot.lane.b32.xlu2 %v3184_v56, %s2894_s1 }
 0x1ba   : > { %1507 = vrot.lane.b32.xlu1 %v3208_v8, %s2894_s1  ;;  %v1350_v26 = vpop.permute.xlu2 %1349 }
 0x1bb   : > { %v1364_v21 = vpop.permute.xlu0 %1363  ;;  %1430 = vst.msk [vmem:[#allocation2 + $0x80] sm:$0xff] %vm1413_vm14, %v1350_v26 }
 0x1bc   : > { %v1342_v25 = vpop.permute.xlu1 %1341  ;;  %1437 = vst.msk [vmem:[#allocation2 + $0xb8] sm:$0xff] %vm1413_vm14, %v1364_v21 }
 0x1bd   : > { %1458 = vst.msk [vmem:[#allocation2 + $0xbf] sm:$0x1] %vm1446_vm0, %v2891_v23 }
 0x1be   : > { %1426 = vst.msk [vmem:[#allocation2 + $0x60] sm:$0xff] %vm1413_vm14, %v1342_v25 }
 0x1bf   : > { %1493 = vrot.lane.b32.xlu0 %v3162_v46, %s2894_s1 }
 0x1c1   : > { %1515 = vrot.lane.b32.xlu2 %v3096_v18, %s2894_s1 }
 0x1c2   : > { %1513 = vrot.lane.b32.xlu1 %v3225_v22, %s2894_s1  ;;  %v1356_v34 = vpop.permute.xlu2 %1355 }
 0x1c3   : > { %v1370_v27 = vpop.permute.xlu0 %1369  ;;  %1433 = vst.msk [vmem:[#allocation2 + $0x98] sm:$0xff] %vm1413_vm14, %v1356_v34 }
 0x1c4   : > { %v1348_v31 = vpop.permute.xlu1 %1347  ;;  %1440 = vst.msk [vmem:[#allocation2 + $0xd0] sm:$0xff] %vm1413_vm14, %v1370_v27 }
 0x1c5   : > { %1429 = vst.msk [vmem:[#allocation2 + $0x78] sm:$0xff] %vm1413_vm14, %v1348_v31 }
 0x1c6   : > { %1454 = vst.msk [vmem:[#allocation2 + $0x7f] sm:$0x1] %vm1446_vm0, %v2891_v23 }
 0x1c7   : > { %1499 = vrot.lane.b32.xlu0 %v3142_v38, %s2894_s1  ;;  %1456 = vst.msk [vmem:[#allocation2 + $0x9f] sm:$0x1] %vm1446_vm0, %v2891_v23 }
 0x1c9   : > { %1612 = vrot.lane.b32.xlu2 %v3068_v10, %s2896_s30 }
 0x1ca   : > { %1610 = vrot.lane.b32.xlu1 %v3039_v2, %s2896_s30  ;;  %v1362_v39 = vpop.permute.xlu2 %1361 }
 0x1cb   : > { %v1376_v43 = vpop.permute.xlu0 %1375  ;;  %1436 = vst.msk [vmem:[#allocation2 + $0xb0] sm:$0xff] %vm1413_vm14, %v1362_v39 }
 0x1cc   : > { %v1354_v37 = vpop.permute.xlu1 %1353  ;;  %1443 = vst.msk [vmem:[#allocation2 + $0xe8] sm:$0xff] %vm1413_vm14, %v1376_v43 }
 0x1cd   : > { %1461 = vst.msk [vmem:[#allocation2 + $0xef] sm:$0x1] %vm1446_vm0, %v2891_v23 }
 0x1ce   : > { %1432 = vst.msk [vmem:[#allocation2 + $0x90] sm:$0xff] %vm1413_vm14, %v1354_v37 }
 0x1cf   : > { %1505 = vrot.lane.b32.xlu0 %v3203_v63, %s2894_s1 }
 0x1d1   : > { %1889 = vrot.lane.b32.xlu2 %v3039_v2, %s4594_s18 }
 0x1d2   : > { %1745 = vrot.lane.b32.xlu1 %v3068_v10, %s4595_s17  ;;  %v1368_v44 = vpop.permute.xlu2 %1367 }
 0x1d3   : > { %v1464_v40 = vpop.permute.xlu0 %1463  ;;  %1439 = vst.msk [vmem:[#allocation2 + $0xc8] sm:$0xff] %vm1413_vm14, %v1368_v44 }
 0x1d4   : > { %v1360_v42 = vpop.permute.xlu1 %1359  ;;  %1560 = vst.msk [vmem:[#allocation2 - $0x1] sm:$0xfe] %vm1559_vm1, %v1464_v40 }
 0x1d5   : > { %1594 = vst.msk [vmem:[#allocation2] sm:$0x1] %vm1593_vm2, %v2891_v23 }
 0x1d6   : > { %1435 = vst.msk [vmem:[#allocation2 + $0xa8] sm:$0xff] %vm1413_vm14, %v1360_v42 }
 0x1d7   : > { %1511 = vrot.lane.b32.xlu0 %v3192_v60, %s2894_s1  ;;  %1457 = vst.msk [vmem:[#allocation2 + $0xaf] sm:$0x1] %vm1446_vm0, %v2891_v23 }
 0x1d8   : > { %1459 = vst.msk [vmem:[#allocation2 + $0xcf] sm:$0x1] %vm1446_vm0, %v2891_v23 }
 0x1d9   : > { %1616 = vrot.lane.b32.xlu2 %v3099_v19, %s2896_s30 }
 0x1da   : > { %1614 = vrot.lane.b32.xlu1 %v3046_v4, %s2896_s30  ;;  %v1374_v48 = vpop.permute.xlu2 %1373 }
 0x1db   : > { %v1470_v5 = vpop.permute.xlu0 %1469  ;;  %1442 = vst.msk [vmem:[#allocation2 + $0xe0] sm:$0xff] %vm1413_vm14, %v1374_v48 }
 0x1dc   : > { %v1366_v45 = vpop.permute.xlu1 %1365  ;;  %1564 = vst.msk [vmem:[#allocation2 + $0x17] sm:$0xff] %vm1561_vm4, %v1470_v5 }
 0x1dd   : > { %1438 = vst.msk [vmem:[#allocation2 + $0xc0] sm:$0xff] %vm1413_vm14, %v1366_v45 }
 0x1df   : > { %1517 = vrot.lane.b32.xlu0 %v3237_v30, %s2894_s1 }
 0x1e1   : > { %1747 = vrot.lane.b32.xlu2 %v3046_v4, %s4595_s17 }
 0x1e2   : > { %1628 = vrot.lane.b32.xlu1 %v3065_v9, %s2896_s30  ;;  %v1380_v51 = vpop.permute.xlu2 %1379 }
 0x1e3   : > { %1445 = vst.msk [vmem:[#allocation2 + $0xf8] sm:$0xff] %vm1413_vm14, %v1380_v51 }
 0x1e4   : > { %v1372_v50 = vpop.permute.xlu1 %1371  ;;  %1462 = vst.msk [vmem:[#allocation2 + $0xff] sm:$0x1] %vm1446_vm0, %v2891_v23 }
 0x1e5   : > { %1441 = vst.msk [vmem:[#allocation2 + $0xd8] sm:$0xff] %vm1413_vm14, %v1372_v50 }
 0x1e6   : > { %1460 = vst.msk [vmem:[#allocation2 + $0xdf] sm:$0x1] %vm1446_vm0, %v2891_v23 }
 0x1e7   : > { %1743 = vrot.lane.b32.xlu0 %v3039_v2, %s4595_s17 }
 0x1e9   : > { %1761 = vrot.lane.b32.xlu2 %v3065_v9, %s4595_s17 }
 0x1ea   : > { %1759 = vrot.lane.b32.xlu1 %v3128_v32, %s4595_s17  ;;  %v1468_v2 = vpop.permute.xlu2 %1467 }
 0x1eb   : > { %1563 = vst.msk [vmem:[#allocation2 + $0xf] sm:$0xfe] %vm1559_vm1, %v1468_v2 }
 0x1ec   : > { %v1378_v53 = vpop.permute.xlu1 %1377  ;;  %1595 = vst.msk [vmem:[#allocation2 + $0x10] sm:$0x1] %vm1593_vm2, %v2891_v23 }
 0x1ed   : > { %1444 = vst.msk [vmem:[#allocation2 + $0xf0] sm:$0xff] %vm1413_vm14, %v1378_v53 }
 0x1ef   : > { %1891 = vrot.lane.b32.xlu0 %v3068_v10, %s4594_s18 }
 0x1f1   : > { %1905 = vrot.lane.b32.xlu2 %v3128_v32, %s4594_s18 }
 0x1f2   : > { %1895 = vrot.lane.b32.xlu1 %v3099_v19, %s4594_s18  ;;  %v1474_v10 = vpop.permute.xlu2 %1473 }
 0x1f3   : > { %1566 = vst.msk [vmem:[#allocation2 + $0x27] sm:$0xff] %vm1561_vm4, %v1474_v10 }
 0x1f4   : > { %v1466_v54 = vpop.permute.xlu1 %1465 }
 0x1f5   : > { %1562 = vst.msk [vmem:[#allocation2 + $0x7] sm:$0xff] %vm1561_vm4, %v1466_v54 }
 0x1f7   : > { %1626 = vrot.lane.b32.xlu0 %v3128_v32, %s2896_s30 }
 0x1f9   : > { %1644 = vrot.lane.b32.xlu2 %v3187_v57, %s2896_s30 }
 0x1fa   : > { %1642 = vrot.lane.b32.xlu1 %v3142_v38, %s2896_s30  ;;  %v1480_v55 = vpop.permute.xlu2 %1479 }
 0x1fb   : > { %1569 = vst.msk [vmem:[#allocation2 + $0x3f] sm:$0xfe] %vm1559_vm1, %v1480_v55 }
 0x1fc   : > { %v1472_v33 = vpop.permute.xlu1 %1471  ;;  %1598 = vst.msk [vmem:[#allocation2 + $0x40] sm:$0x1] %vm1593_vm2, %v2891_v23 }
 0x1fd   : > { %1565 = vst.msk [vmem:[#allocation2 + $0x1f] sm:$0xfe] %vm1559_vm1, %v1472_v33 }
 0x1fe   : > { %1596 = vst.msk [vmem:[#allocation2 + $0x20] sm:$0x1] %vm1593_vm2, %v2891_v23 }
 0x1ff   : > { %1749 = vrot.lane.b32.xlu0 %v3099_v19, %s4595_s17 }
 0x201   : > { %1921 = vrot.lane.b32.xlu2 %v3142_v38, %s4594_s18 }
 0x202   : > { %1777 = vrot.lane.b32.xlu1 %v3187_v57, %s4595_s17  ;;  %v1486_v19 = vpop.permute.xlu2 %1485 }
 0x203   : > { %1572 = vst.msk [vmem:[#allocation2 + $0x57] sm:$0xff] %vm1561_vm4, %v1486_v19  ;;  %v2900_v19 = vmov 1  }
 0x204   : > { %v1478_v47 = vpop.permute.xlu1 %1477  ;;  %2761 = vset.pattern.permute.xlu2 %v2900_v19  ;;  %v2593_v19 = vld [vmem:[%s3026_s28 + $0xf0] sm:$0xff] }
 0x205   : > { %1568 = vst.msk [vmem:[#allocation2 + $0x37] sm:$0xff] %vm1561_vm4, %v1478_v47  ;;  %v2899_v47 = vmov 2  }
 0x206   : > { %2762 = vset.pattern.permute.xlu0 %v2899_v47 }
 0x207   : > { %1893 = vrot.lane.b32.xlu0 %v3046_v4, %s4594_s18  ;;  %v588_v4 = vpop.xlane.xlu0 %587 }
 0x208   : > { %v589_v15 = vsub.f32 %v3722_v52, %v588_v4 }
 0x209   : > { %1620 = vrot.lane.b32.xlu2 %v3112_v24, %s2896_s30 }
 0x20a   : > { %1618 = vrot.lane.b32.xlu1 %v3054_v6, %s2896_s30  ;;  %v1492_v32 = vpop.permute.xlu2 %1491  ;;  %v590_v21 = vmul.f32 1.442695, %v589_v15 }
 0x20b   : > { %1575 = vst.msk [vmem:[#allocation2 + $0x6f] sm:$0xfe] %vm1559_vm1, %v1492_v32 }
 0x20c   : > { %v1484_v58 = vpop.permute.xlu1 %1483  ;;  %1601 = vst.msk [vmem:[#allocation2 + $0x70] sm:$0x1] %vm1593_vm2, %v2891_v23  ;;  %2770 = vpow2.f32 %v590_v21 }
 0x20d   : > { %1571 = vst.msk [vmem:[#allocation2 + $0x4f] sm:$0xfe] %vm1559_vm1, %v1484_v58  ;;  %v2901_v58 = vmov 0  }
 0x20e   : > { %1599 = vst.msk [vmem:[#allocation2 + $0x50] sm:$0x1] %vm1593_vm2, %v2891_v23  ;;  %2760 = vset.pattern.permute.xlu1 %v2901_v58  ;;  %v2586_v58 = vld [vmem:[%s4589_s7 + $0x2] sm:$0x1] }
 0x20f   : > { %1907 = vrot.lane.b32.xlu0 %v3065_v9, %s4594_s18 }
 0x211   : > { %1751 = vrot.lane.b32.xlu2 %v3054_v6, %s4595_s17 }
 0x212   : > { %1632 = vrot.lane.b32.xlu1 %v3153_v41, %s2896_s30  ;;  %v1498_v61 = vpop.permute.xlu2 %1497  ;;  %v3958_v31 = vpop.eup %2770 }
 0x213   : > { %1578 = vst.msk [vmem:[#allocation2 + $0x87] sm:$0xff] %vm1561_vm4, %v1498_v61  ;;  %v592_v34 = vsel %vm585_vm3, %v3958_v31, 0.0  ;;  %vm1979_vm3 = vcmask 294145  }
 0x214   : > { %v1490_v59 = vpop.permute.xlu1 %1489 }
 0x215   : > { %1574 = vst.msk [vmem:[#allocation2 + $0x67] sm:$0xff] %vm1561_vm4, %v1490_v59 }
 0x217   : > { %1775 = vrot.lane.b32.xlu0 %v3142_v38, %s4595_s17 }
 0x219   : > { %v1476_v9 = vpop.permute.xlu0 %1475  ;;  %1765 = vrot.lane.b32.xlu2 %v3153_v41, %s4595_s17 }
 0x21a   : > { %1763 = vrot.lane.b32.xlu1 %v3080_v14, %s4595_s17  ;;  %1567 = vst.msk [vmem:[#allocation2 + $0x2f] sm:$0xfe] %vm1559_vm1, %v1476_v9  ;;  %v1504_v1 = vpop.permute.xlu2 %1503 }
 0x21b   : > { %1597 = vst.msk [vmem:[#allocation2 + $0x30] sm:$0x1] %vm1593_vm2, %v2891_v23 }
 0x21c   : > { %v1496_v62 = vpop.permute.xlu1 %1495  ;;  %1581 = vst.msk [vmem:[#allocation2 + $0x9f] sm:$0xfe] %vm1559_vm1, %v1504_v1 }
 0x21d   : > { %1577 = vst.msk [vmem:[#allocation2 + $0x7f] sm:$0xfe] %vm1559_vm1, %v1496_v62 }
 0x21e   : > { %1602 = vst.msk [vmem:[#allocation2 + $0x80] sm:$0x1] %vm1593_vm2, %v2891_v23 }
 0x21f   : > { %1604 = vst.msk [vmem:[#allocation2 + $0xa0] sm:$0x1] %vm1593_vm2, %v2891_v23 }
 0x221   : > { %v1482_v38 = vpop.permute.xlu0 %1481  ;;  %1909 = vrot.lane.b32.xlu2 %v3080_v14, %s4594_s18 }
 0x222   : > { %1899 = vrot.lane.b32.xlu1 %v3112_v24, %s4594_s18  ;;  %1570 = vst.msk [vmem:[#allocation2 + $0x47] sm:$0xff] %vm1561_vm4, %v1482_v38  ;;  %v1510_v11 = vpop.permute.xlu2 %1509 }
 0x223   : > { %1584 = vst.msk [vmem:[#allocation2 + $0xb7] sm:$0xff] %vm1561_vm4, %v1510_v11 }
 0x224   : > { %v1502_v3 = vpop.permute.xlu1 %1501 }
 0x225   : > { %1580 = vst.msk [vmem:[#allocation2 + $0x97] sm:$0xff] %vm1561_vm4, %v1502_v3 }
 0x229   : > { %v1488_v7 = vpop.permute.xlu0 %1487  ;;  %1648 = vrot.lane.b32.xlu2 %v3203_v63, %s2896_s30 }
 0x22a   : > { %1646 = vrot.lane.b32.xlu1 %v3089_v16, %s2896_s30  ;;  %1573 = vst.msk [vmem:[#allocation2 + $0x5f] sm:$0xfe] %vm1559_vm1, %v1488_v7  ;;  %v1516_v20 = vpop.permute.xlu2 %1515 }
 0x22b   : > { %1600 = vst.msk [vmem:[#allocation2 + $0x60] sm:$0x1] %vm1593_vm2, %v2891_v23 }
 0x22c   : > { %v1508_v13 = vpop.permute.xlu1 %1507  ;;  %1587 = vst.msk [vmem:[#allocation2 + $0xcf] sm:$0xfe] %vm1559_vm1, %v1516_v20 }
 0x22d   : > { %1583 = vst.msk [vmem:[#allocation2 + $0xaf] sm:$0xfe] %vm1559_vm1, %v1508_v13 }
 0x22e   : > { %1605 = vst.msk [vmem:[#allocation2 + $0xb0] sm:$0x1] %vm1593_vm2, %v2891_v23 }
 0x22f   : > { %1607 = vst.msk [vmem:[#allocation2 + $0xd0] sm:$0x1] %vm1593_vm2, %v2891_v23 }
 0x231   : > { %v1494_v17 = vpop.permute.xlu0 %1493 }
 0x232   : > { %1576 = vst.msk [vmem:[#allocation2 + $0x77] sm:$0xff] %vm1561_vm4, %v1494_v17  ;;  %v1613_v26 = vpop.permute.xlu2 %1612 }
 0x233   : > { %1703 = vst.msk [vmem:[#allocation2 + $0x9] sm:$0x7f] %vm1702_vm6, %v1613_v26 }
 0x234   : > { %v1514_v25 = vpop.permute.xlu1 %1513 }
 0x235   : > { %1586 = vst.msk [vmem:[#allocation2 + $0xc7] sm:$0xff] %vm1561_vm4, %v1514_v25  ;;  %v2905_v25 = vmov 3  }
 0x239   : > { %v1500_v52 = vpop.permute.xlu0 %1499 }
 0x23a   : > { %1579 = vst.msk [vmem:[#allocation2 + $0x8f] sm:$0xfe] %vm1559_vm1, %v1500_v52  ;;  %v1890_v37 = vpop.permute.xlu2 %1889 }
 0x23b   : > { %1603 = vst.msk [vmem:[#allocation2 + $0x90] sm:$0x1] %vm1593_vm2, %v2891_v23 }
 0x23c   : > { %v1611_v27 = vpop.permute.xlu1 %1610 }
 0x23d   : > { %1701 = vst.msk [vmem:[#allocation2 + $0x1] sm:$0xff] %vm1700_vm5, %v1611_v27 }
 0x241   : > { %593 = vadd.xlane.f32.xlu0 %v592_v34  ;;  %v1506_v43 = vpop.permute.xlu0 %1505 }
 0x242   : > { %1582 = vst.msk [vmem:[#allocation2 + $0xa7] sm:$0xff] %vm1561_vm4, %v1506_v43  ;;  %v1617_v42 = vpop.permute.xlu2 %1616 }
 0x243   : > { %1705 = vst.msk [vmem:[#allocation2 + $0x19] sm:$0x7f] %vm1702_vm6, %v1617_v42 }
 0x244   : > { %v1746_v39 = vpop.permute.xlu1 %1745 }
 0x245   : > { %1835 = vst.msk [vmem:[#allocation2 + $0x8] sm:$0xff] %vm1833_vm8, %v1746_v39 }
 0x246   : > { %1873 = vst.msk [vmem:[#allocation2 + $0xf] sm:$0x1] %vm1872_vm7, %v2891_v23 }
 0x249   : > { %v1512_v40 = vpop.permute.xlu0 %1511 }
 0x24a   : > { %1585 = vst.msk [vmem:[#allocation2 + $0xbf] sm:$0xfe] %vm1559_vm1, %v1512_v40  ;;  %v1748_v45 = vpop.permute.xlu2 %1747 }
 0x24b   : > { %1606 = vst.msk [vmem:[#allocation2 + $0xc0] sm:$0x1] %vm1593_vm2, %v2891_v23 }
 0x24c   : > { %v1615_v44 = vpop.permute.xlu1 %1614 }
 0x24d   : > { %1704 = vst.msk [vmem:[#allocation2 + $0x11] sm:$0xff] %vm1700_vm5, %v1615_v44 }
 0x24e   : > { %1836 = vst.msk [vmem:[#allocation2 + $0x10] sm:$0xff] %vm1833_vm8, %v1748_v45 }
 0x251   : > { %v1518_v5 = vpop.permute.xlu0 %1517 }
 0x252   : > { %1588 = vst.msk [vmem:[#allocation2 + $0xd7] sm:$0xff] %vm1561_vm4, %v1518_v5  ;;  %v1762_v2 = vpop.permute.xlu2 %1761  ;;  %v4122_v5 = vld [vmem:[%s3026_s28 + $0xf8] sm:$0xff] }
 0x254   : > { %v1629_v48 = vpop.permute.xlu1 %1628 }
 0x255   : > { %1711 = vst.msk [vmem:[#allocation2 + $0x49] sm:$0x7f] %vm1702_vm6, %v1629_v48  ;;  %1923 = vrot.lane.b32.xlu0 %v3187_v57, %s4594_s18 }
 0x259   : > { %v1744_v50 = vpop.permute.xlu0 %1743 }
 0x25a   : > { %1834 = vst.msk [vmem:[#allocation2] sm:$0xff] %vm1833_vm8, %v1744_v50  ;;  %v1906_v10 = vpop.permute.xlu2 %1905  ;;  %v2775_v50 = vld [vmem:[%s3026_s28 + $0xf0] sm:$0xff] }
 0x25b   : > { %1980 = vst.msk [vmem:[#allocation2 - $0x1] sm:$0xfe] %vm1979_vm3, %v1890_v37 }
 0x25c   : > { %v1760_v51 = vpop.permute.xlu1 %1759 }
 0x25d   : > { %1630 = vrot.lane.b32.xlu0 %v3080_v14, %s2896_s30 }
 0x261   : > { %v1892_v53 = vpop.permute.xlu0 %1891 }
 0x262   : > { %1982 = vst.msk [vmem:[#allocation2 + $0x7] sm:$0xff] %vm1981_vm9, %v1892_v53  ;;  %v1645_v13 = vpop.permute.xlu2 %1644 }
 0x263   : > { %1719 = vst.msk [vmem:[#allocation2 + $0x89] sm:$0x7f] %vm1702_vm6, %v1645_v13  ;;  %v2575_v13 = vld [vmem:[%s4588_s6 + $0x14] sm:$0xf] }
 0x264   : > { %v1896_v54 = vpop.permute.xlu1 %1895 }
 0x265   : > { %1753 = vrot.lane.b32.xlu0 %v3112_v24, %s4595_s17 }
 0x269   : > { %v1627_v57 = vpop.permute.xlu0 %1626 }
 0x26a   : > { %1710 = vst.msk [vmem:[#allocation2 + $0x41] sm:$0xff] %vm1700_vm5, %v1627_v57  ;;  %v1922_v15 = vpop.permute.xlu2 %1921  ;;  %v2594_v57 = vld [vmem:[%s3026_s28 + $0xf8] sm:$0xff]  ;;  %s4604_s28 = smov 28  }
 0x26b   : > { %1842 = vst.msk [vmem:[#allocation2 + $0x40] sm:$0xff] %vm1833_vm8, %v1760_v51 }
 0x26c   : > { %1843 = vst.msk [vmem:[#allocation2 + $0x48] sm:$0xff] %vm1833_vm8, %v1762_v2  ;;  %v1643_v33 = vpop.permute.xlu1 %1642 }
 0x26d   : > { %1877 = vst.msk [vmem:[#allocation2 + $0x4f] sm:$0x1] %vm1872_vm7, %v2891_v23  ;;  %1897 = vrot.lane.b32.xlu0 %v3054_v6, %s4594_s18 }
 0x26e   : > { %1989 = vst.msk [vmem:[#allocation2 + $0x3f] sm:$0xfe] %vm1979_vm3, %v1906_v10 }
 0x26f   : > { %1718 = vst.msk [vmem:[#allocation2 + $0x81] sm:$0xff] %vm1700_vm5, %v1643_v33  ;;  %v4160_v33 = vmul.f32 0.0, %v2594_v57  ;;  %v2590_v57 = vld [vmem:[%s4588_s6 + $0x48] sm:$0xf] }
 0x271   : > { %v1750_v14 = vpop.permute.xlu0 %1749 }
 0x272   : > { %1837 = vst.msk [vmem:[#allocation2 + $0x18] sm:$0xff] %vm1833_vm8, %v1750_v14  ;;  %v1621_v17 = vpop.permute.xlu2 %1620  ;;  %v2580_v14 = vld [vmem:[%s4589_s7 + $0x1] sm:$0x1] }
 0x273   : > { %1874 = vst.msk [vmem:[#allocation2 + $0x1f] sm:$0x1] %vm1872_vm7, %v2891_v23 }
 0x274   : > { %1984 = vst.msk [vmem:[#allocation2 + $0x17] sm:$0xff] %vm1981_vm9, %v1896_v54 }
 0x275   : > { %1911 = vrot.lane.b32.xlu0 %v3153_v41, %s4594_s18  ;;  %1707 = vst.msk [vmem:[#allocation2 + $0x29] sm:$0x7f] %vm1702_vm6, %v1621_v17  ;;  %v2578_v17 = vld [vmem:[%s4588_s6 + $0x20] sm:$0xf] }
 0x279   : > { %v1894_v24 = vpop.permute.xlu0 %1893 }
 0x27a   : > { %1983 = vst.msk [vmem:[#allocation2 + $0xf] sm:$0xfe] %vm1979_vm3, %v1894_v24  ;;  %v1752_v20 = vpop.permute.xlu2 %1751 }
 0x27d   : > { %1658 = vrot.lane.b32.xlu0 %v3096_v18, %s2896_s30 }
 0x281   : > { %v1908_v6 = vpop.permute.xlu0 %1907 }
 0x282   : > { %1990 = vst.msk [vmem:[#allocation2 + $0x47] sm:$0xff] %vm1981_vm9, %v1908_v6  ;;  %v1766_v52 = vpop.permute.xlu2 %1765 }
 0x289   : > { %v1776_v55 = vpop.permute.xlu0 %1775 }
 0x28a   : > { %1850 = vst.msk [vmem:[#allocation2 + $0x80] sm:$0xff] %vm1833_vm8, %v1776_v55  ;;  %v1910_v26 = vpop.permute.xlu2 %1909 }
 0x28b   : > { %1997 = vst.msk [vmem:[#allocation2 + $0x7f] sm:$0xfe] %vm1979_vm3, %v1922_v15  ;;  %v2660_v15 = vld [vmem:[%s4588_s6 + $0x18] sm:$0xff]  }
 0x2b4   : > { %v594_v4 = vpop.xlane.xlu0 %593 }
 0x2b5   : > { %2772 = vrcp.f32 %v594_v4  ;;  %v606_v9 = vand.u32 2147483648, %v594_v4  ;;  %v604_v62 = vand.u32 2147483647, %v594_v4  ;;  %vm600_vm12 = vweird.f32 %v594_v4 }
 0x2b7   : > { %v607_v1 = vor.u32 1.1754944e-38, %v606_v9  ;;  %vm605_vm14 = vcmp.eq.f32.partialorder %v604_v62, 8.507059e+37 }
 0x2bb   : > { %v2773_v41 = vpop.eup %2772 }
 0x2bc   : > { %v596_v32 = vmul.f32 %v2773_v41, %v594_v4  ;;  %vm601_vm11 = vweird.f32 %v2773_v41  ;;  %v4184_v4 = vmul.f32 0.0, %v2593_v19 }
 0x2bd   : > { %vm602_vm13 = vmor %vm600_vm12, %vm601_vm11 }
 0x2be   : > { %v597_v59 = vsub.f32 1.0, %v596_v32  ;;  %v2592_v32 = vld [vmem:[%s4589_s7 + $0x3] sm:$0x1] }
 0x2c0   : > { %v598_v61 = vmul.f32 %v2773_v41, %v597_v59 }
 0x2c2   : > { %v599_v38 = vadd.f32 %v2773_v41, %v598_v61 }
 0x2c4   : > { %v603_v3 = vsel %vm602_vm13, %v2773_v41, %v599_v38 }
 0x2c5   : > { %v608_v7 = vsel %vm605_vm14, %v607_v1, %v603_v3 }
 0x2c6   : > { %v4007_v11 = vmul.f32 %v3958_v31, %v608_v7  ;;  %v1649_v31 = vpop.permute.xlu2 %1648  ;;  %v2626_v7 = vld [vmem:[%s4588_s6] sm:$0xff]  }
 0x2c7   : > { %v1924_v21 = vpop.permute.xlu0 %1923  ;;  %1721 = vst.msk [vmem:[#allocation2 + $0x99] sm:$0x7f] %vm1702_vm6, %v1649_v31  ;;  %v2635_v31 = vunpack.c.l.bf16 %v2660_v15 }
 0x2c8   : > { %698 = vperm.xlu0 %2762, %v4007_v11   ;;  %664 = vperm.xlu2 %2761, %v4007_v11   ;;  %2674 = vpush %v4007_v11 }
 0x2c9   : > { %631 = vperm.xlu1 %2760, %v4007_v11  }
 0x2d0   : > { %680 = vrot.lane.b32.xlu2 %v4007_v11, %s2902_s20  ;;  %1781 = vrot.lane.b32.xlu0 %v3203_v63, %s4595_s17 }
 0x2d1   : > { %646 = vrot.lane.b32.xlu1 %v4007_v11, %s2903_s22  ;;  %2763 = vset.pattern.permute.xlu2 %v2905_v25 }
 0x2d2   : > { %2764 = vset.pattern.permute.xlu0 %v2905_v25  ;;  %v2579_v25 = vld [vmem:[%s4588_s6 + $0x24] sm:$0x3] }
 0x2d8   : > { %1779 = vrot.lane.b32.xlu2 %v3089_v16, %s4595_s17  ;;  %1925 = vrot.lane.b32.xlu0 %v3089_v16, %s4594_s18  ;;  %v1778_v16 = vpop.permute.xlu1 %1777 }
 0x2d9   : > { %714 = vrot.lane.b32.xlu1 %v4007_v11, %s2904_s27  ;;  %1851 = vst.msk [vmem:[#allocation2 + $0x88] sm:$0xff] %vm1833_vm8, %v1778_v16  ;;  %v2628_v16 = vunpack.c.h.bf16 %v2626_v7  ;;  %s4606_s27 = sshll.u32 %s3018_s25, 8  ;;  %s4508_s25 = sand.u32 1, %s2870_s12  }
 0x2da   : > { %1881 = vst.msk [vmem:[#allocation2 + $0x8f] sm:$0x1] %vm1872_vm7, %v2891_v23 }
 0x2db   : > { %1998 = vst.msk [vmem:[#allocation2 + $0x87] sm:$0xff] %vm1981_vm9, %v1924_v21 }
 0x2e0   : > { %1793 = vrot.lane.b32.xlu2 %v3237_v30, %s4595_s17  ;;  %1939 = vrot.lane.b32.xlu0 %v3237_v30, %s4594_s18 }
 0x2e1   : > { %1660 = vrot.lane.b32.xlu1 %v3237_v30, %s2896_s30  ;;  %v1631_v30 = vpop.permute.xlu0 %1630 }
 0x2e2   : > { %1712 = vst.msk [vmem:[#allocation2 + $0x51] sm:$0xff] %vm1700_vm5, %v1631_v30 }
 0x2e8   : > { %1937 = vrot.lane.b32.xlu2 %v3096_v18, %s4594_s18  ;;  %1634 = vrot.lane.b32.xlu0 %v3073_v12, %s2896_s30 }
 0x2e9   : > { %1791 = vrot.lane.b32.xlu1 %v3096_v18, %s4595_s17  ;;  %v1619_v18 = vpop.permute.xlu1 %1618 }
 0x2ea   : > { %1706 = vst.msk [vmem:[#allocation2 + $0x21] sm:$0xff] %vm1700_vm5, %v1619_v18  ;;  %v614_v18 = vld [vmem:[%s4588_s6 + $0x10] sm:$0x3] }
 0x2eb   : > { %1838 = vst.msk [vmem:[#allocation2 + $0x20] sm:$0xff] %vm1833_vm8, %v1752_v20  ;;  %v2627_v20 = vunpack.c.l.bf16 %v2626_v7 }
 0x2f0   : > { %1624 = vrot.lane.b32.xlu2 %v3123_v29, %s2896_s30  ;;  %1757 = vrot.lane.b32.xlu0 %v3123_v29, %s4595_s17 }
 0x2f1   : > { %1927 = vrot.lane.b32.xlu1 %v3203_v63, %s4594_s18  ;;  %v1633_v27 = vpop.permute.xlu1 %1632  ;;  %v1754_v63 = vpop.permute.xlu0 %1753 }
 0x2f2   : > { %1713 = vst.msk [vmem:[#allocation2 + $0x59] sm:$0x7f] %vm1702_vm6, %v1633_v27 }
 0x2f3   : > { %1845 = vst.msk [vmem:[#allocation2 + $0x58] sm:$0xff] %vm1833_vm8, %v1766_v52 }
 0x2f4   : > { %1839 = vst.msk [vmem:[#allocation2 + $0x28] sm:$0xff] %vm1833_vm8, %v1754_v63 }
 0x2f5   : > { %1875 = vst.msk [vmem:[#allocation2 + $0x2f] sm:$0x1] %vm1872_vm7, %v2891_v23 }
 0x2f6   : > { %1878 = vst.msk [vmem:[#allocation2 + $0x5f] sm:$0x1] %vm1872_vm7, %v2891_v23 }
 0x2f8   : > { %1755 = vrot.lane.b32.xlu2 %v3029_v0, %s4595_s17  ;;  %1901 = vrot.lane.b32.xlu0 %v3029_v0, %s4594_s18 }
 0x2f9   : > { %1622 = vrot.lane.b32.xlu1 %v3029_v0, %s2896_s30  ;;  %v1764_v0 = vpop.permute.xlu1 %1763  ;;  %v1898_v34 = vpop.permute.xlu0 %1897  ;;  %s2675_s29 = spop %2674 }
 0x2fa   : > { %1844 = vst.msk [vmem:[#allocation2 + $0x50] sm:$0xff] %vm1833_vm8, %v1764_v0  ;;  %v622_v30 = vstv %s2675_s29  ;;  %v2636_v0 = vunpack.c.h.bf16 %v2660_v15  ;;  %s2411_s29 = scalar_lea.hbm %s4591_s9, %s2878_s14 }
 0x2fb   : > { %1991 = vst.msk [vmem:[#allocation2 + $0x4f] sm:$0xfe] %vm1979_vm3, %v1910_v26 }
 0x2fc   : > { %1985 = vst.msk [vmem:[#allocation2 + $0x1f] sm:$0xfe] %vm1979_vm3, %v1898_v34  ;;  %v641_v34 = vunpack.c.l.bf16 %v2575_v13 }
 0x300   : > { %1769 = vrot.lane.b32.xlu2 %v3162_v46, %s4595_s17  ;;  %1915 = vrot.lane.b32.xlu0 %v3162_v46, %s4594_s18 }
 0x301   : > { %1636 = vrot.lane.b32.xlu1 %v3162_v46, %s2896_s30  ;;  %v1900_v43 = vpop.permute.xlu1 %1899  ;;  %v1912_v46 = vpop.permute.xlu0 %1911 }
 0x302   : > { %1986 = vst.msk [vmem:[#allocation2 + $0x27] sm:$0xff] %vm1981_vm9, %v1900_v43  ;;  %v644_v43 = vunpack.c.l.bf16 %v2578_v17 }
 0x303   : > { %1992 = vst.msk [vmem:[#allocation2 + $0x57] sm:$0xff] %vm1981_vm9, %v1912_v46  ;;  %v2661_v46 = vld [vmem:[%s4588_s6 + $0x28] sm:$0xff]  }
 0x308   : > { %1913 = vrot.lane.b32.xlu2 %v3073_v12, %s4594_s18  ;;  %1662 = vrot.lane.b32.xlu0 %v3245_v36, %s2896_s30 }
 0x309   : > { %1767 = vrot.lane.b32.xlu1 %v3073_v12, %s4595_s17  ;;  %v1647_v37 = vpop.permute.xlu1 %1646  ;;  %v1659_v39 = vpop.permute.xlu0 %1658 }
 0x30a   : > { %1720 = vst.msk [vmem:[#allocation2 + $0x91] sm:$0xff] %vm1700_vm5, %v1647_v37  ;;  %v645_v37 = vunpack.c.l.bf16 %v2579_v25 }
 0x30b   : > { %1726 = vst.msk [vmem:[#allocation2 + $0xc1] sm:$0xff] %vm1700_vm5, %v1659_v39  ;;  %v619_v39 = vunpack.c.l.bf16 %v614_v18 }
 0x310   : > { %732 = vperm.xlu2 %2763, %v4007_v11   ;;  %1785 = vrot.lane.b32.xlu0 %v3184_v56, %s4595_s17  ;;  %v2659_v11 = vld [vmem:[%s4588_s6 + $0x8] sm:$0xff]  }
 0x311   : > { %1903 = vrot.lane.b32.xlu1 %v3123_v29, %s4594_s18  ;;  %v2631_v21 = vunpack.c.l.bf16 %v2659_v11  ;;  %v2632_v52 = vunpack.c.h.bf16 %v2659_v11 }
 0x318   : > { %1929 = vrot.lane.b32.xlu0 %v3208_v8, %s4594_s18  ;;  %1652 = vrot.lane.b32.xlu2 %v3184_v56, %s2896_s30 }
 0x319   : > { %1650 = vrot.lane.b32.xlu1 %v3208_v8, %s2896_s30 }
 0x320   : > { %1943 = vrot.lane.b32.xlu0 %v3234_v28, %s4594_s18  ;;  %1783 = vrot.lane.b32.xlu2 %v3208_v8, %s4595_s17 }
 0x321   : > { %1664 = vrot.lane.b32.xlu1 %v3234_v28, %s2896_s30 }
 0x322   : > { %v4100_v12 = vpop.permute.xlu2 %664 }
 0x328   : > { %1771 = vrot.lane.b32.xlu0 %v3167_v49, %s4595_s17  ;;  %1797 = vrot.lane.b32.xlu2 %v3234_v28, %s4595_s17 }
 0x329   : > { %1795 = vrot.lane.b32.xlu1 %v3245_v36, %s4595_s17 }
 0x32a   : > { %v681_v29 = vpop.permute.xlu2 %680 }
 0x330   : > { %1919 = vrot.lane.b32.xlu0 %v3137_v35, %s4594_s18  ;;  %1941 = vrot.lane.b32.xlu2 %v3245_v36, %s4594_s18 }
 0x331   : > { %1931 = vrot.lane.b32.xlu1 %v3184_v56, %s4594_s18 }
 0x332   : > { %v1780_v8 = vpop.permute.xlu2 %1779 }
 0x333   : > { %1852 = vst.msk [vmem:[#allocation2 + $0x90] sm:$0xff] %vm1833_vm8, %v1780_v8  ;;  %v626_v8 = vmul.f32 %v2631_v21, %v622_v30 }
 0x338   : > { %1654 = vrot.lane.b32.xlu0 %v3192_v60, %s2896_s30  ;;  %1640 = vrot.lane.b32.xlu2 %v3137_v35, %s2896_s30 }
 0x339   : > { %1638 = vrot.lane.b32.xlu1 %v3167_v49, %s2896_s30 }
 0x33a   : > { %v1794_v40 = vpop.permute.xlu2 %1793  ;;  %v699_v42 = vpop.permute.xlu0 %698 }
 0x33b   : > { %v632_v44 = vpop.permute.xlu1 %631  ;;  %v701_v59 = vmul.f32 %v2586_v58, %v699_v42  ;;  %v2585_v42 = vld [vmem:[%s4588_s6 + $0x38] sm:$0x3] }
 0x340   : > { %1668 = vrot.lane.b32.xlu0 %v4122_v5, %s2896_s30  ;;  %1917 = vrot.lane.b32.xlu2 %v3167_v49, %s4594_s18 }
 0x341   : > { %1773 = vrot.lane.b32.xlu1 %v3137_v35, %s4595_s17 }
 0x342   : > { %v1938_v56 = vpop.permute.xlu2 %1937  ;;  %v1782_v45 = vpop.permute.xlu0 %1781 }
 0x343   : > { %v647_v48 = vpop.permute.xlu1 %646  ;;  %1853 = vst.msk [vmem:[#allocation2 + $0x98] sm:$0xff] %vm1833_vm8, %v1782_v45  ;;  %v2640_v45 = vunpack.c.h.bf16 %v2661_v46 }
 0x344   : > { %2676 = vpush %v647_v48  ;;  %v2663_v48 = vld [vmem:[%s4588_s6 + $0x40] sm:$0xff]  }
 0x345   : > { %2678 = vpush %v681_v29  ;;  %v625_v29 = vmul.f32 %v2628_v16, %v622_v30  ;;  %v2648_v58 = vunpack.c.h.bf16 %v2663_v48 }
 0x346   : > { %1882 = vst.msk [vmem:[#allocation2 + $0x9f] sm:$0x1] %vm1872_vm7, %v2891_v23 }
 0x348   : > { %1799 = vrot.lane.b32.xlu0 %v2775_v50, %s4595_s17  ;;  %1521 = vrot.lane.b32.xlu2 %v3234_v28, %s2894_s1 }
 0x349   : > { %1519 = vrot.lane.b32.xlu1 %v3245_v36, %s2894_s1 }
 0x34a   : > { %v1625_v35 = vpop.permute.xlu2 %1624  ;;  %v1926_v49 = vpop.permute.xlu0 %1925 }
 0x34b   : > { %1709 = vst.msk [vmem:[#allocation2 + $0x39] sm:$0x7f] %vm1702_vm6, %v1625_v35  ;;  %v715_v51 = vpop.permute.xlu1 %714 }
 0x34c   : > { %2680 = vpush %v715_v51 }
 0x34d   : > { %1999 = vst.msk [vmem:[#allocation2 + $0x8f] sm:$0xfe] %vm1979_vm3, %v1926_v49 }
 0x350   : > { %1935 = vrot.lane.b32.xlu0 %v3225_v22, %s4594_s18  ;;  %1666 = vrot.lane.b32.xlu2 %v2775_v50, %s2896_s30 }
 0x351   : > { %1656 = vrot.lane.b32.xlu1 %v3225_v22, %s2896_s30 }
 0x352   : > { %v1756_v28 = vpop.permute.xlu2 %1755  ;;  %v1940_v53 = vpop.permute.xlu0 %1939 }
 0x353   : > { %v1661_v36 = vpop.permute.xlu1 %1660 }
 0x354   : > { %1727 = vst.msk [vmem:[#allocation2 + $0xc9] sm:$0x7f] %vm1702_vm6, %v1661_v36 }
 0x355   : > { %1859 = vst.msk [vmem:[#allocation2 + $0xc8] sm:$0xff] %vm1833_vm8, %v1794_v40  ;;  %v2662_v40 = vld [vmem:[%s4588_s6 + $0x30] sm:$0xff]  }
 0x356   : > { %1885 = vst.msk [vmem:[#allocation2 + $0xcf] sm:$0x1] %vm1872_vm7, %v2891_v23  ;;  %v2643_v36 = vunpack.c.l.bf16 %v2662_v40 }
 0x358   : > { %1789 = vrot.lane.b32.xlu2 %v3225_v22, %s4595_s17  ;;  %1523 = vrot.lane.b32.xlu0 %v2775_v50, %s2894_s1  ;;  %v629_v22 = vld [vmem:[%s4589_s7] sm:$0x1] }
 0x359   : > { %1787 = vrot.lane.b32.xlu1 %v3192_v60, %s4595_s17  ;;  %v634_v55 = vmul.f32 %v632_v44, %v629_v22  ;;  %v627_v44 = vmul.f32 %v2632_v52, %v622_v30  ;;  %v628_v22 = vmul.f32 %v622_v30, %v619_v39 }
 0x35a   : > { %v4155_v2 = vpop.permute.xlu2 %1769  ;;  %v1635_v54 = vpop.permute.xlu0 %1634 }
 0x35b   : > { %v1792_v10 = vpop.permute.xlu1 %1791  ;;  %1714 = vst.msk [vmem:[#allocation2 + $0x61] sm:$0xff] %vm1700_vm5, %v1635_v54 }
 0x35c   : > { %1858 = vst.msk [vmem:[#allocation2 + $0xc0] sm:$0xff] %vm1833_vm8, %v1792_v10  ;;  %v2591_v10 = vld [vmem:[%s4588_s6 + $0x4c] sm:$0x3] }
 0x35d   : > { %2005 = vst.msk [vmem:[#allocation2 + $0xbf] sm:$0xfe] %vm1979_vm3, %v1938_v56  ;;  %v2639_v56 = vunpack.c.l.bf16 %v2661_v46 }
 0x35e   : > { %2006 = vst.msk [vmem:[#allocation2 + $0xc7] sm:$0xff] %vm1981_vm9, %v1940_v53 }
 0x360   : > { %1933 = vrot.lane.b32.xlu2 %v3192_v60, %s4594_s18  ;;  %1736 = vrot.lane.b32.xlu0 %v4160_v33, %s2896_s30  ;;  %v667_v60 = vmul.f32 %v2580_v14, %v4100_v12  ;;  %v624_v12 = vmul.f32 %v2627_v20, %v622_v30 }
 0x361   : > { %1801 = vrot.lane.b32.xlu1 %v4122_v5, %s4595_s17  ;;  %s4521_s17 = sshll.u32 %s2411_s29, 4  ;;  %s2416_s17 = int_to_ptr.hbm [resolvable:$true] %s4521_s17 }
 0x362   : > { %v4176_v24 = vpop.permute.xlu2 %1913  ;;  %v1758_v6 = vpop.permute.xlu0 %1757  ;;  %v668_v41 = vadd.f32 %v667_v60, %v634_v55  ;;  %v2647_v55 = vunpack.c.l.bf16 %v2663_v48 }
 0x363   : > { %v1928_v47 = vpop.permute.xlu1 %1927 }
 0x364   : > { %2000 = vst.msk [vmem:[#allocation2 + $0x97] sm:$0xff] %vm1981_vm9, %v1928_v47  ;;  %v702_v62 = vadd.f32 %v701_v59, %v668_v41 }
 0x368   : > { %2011 = vrot.lane.b32.xlu0 %v4184_v4, %s4594_s18  ;;  %1947 = vrot.lane.b32.xlu2 %v4122_v5, %s4594_s18 }
 0x369   : > { %1945 = vrot.lane.b32.xlu1 %v2775_v50, %s4594_s18  ;;  %s386_s18 = scalar_lea.vmem [#allocation7], %s4508_s25 }
 0x36a   : > { %v733_v9 = vpop.permute.xlu2 %732  ;;  %v1902_v61 = vpop.permute.xlu0 %1901 }
 0x36b   : > { %v735_v38 = vmul.f32 %v2592_v32, %v733_v9  ;;  %v1623_v1 = vpop.permute.xlu1 %1622 }
 0x36c   : > { %1708 = vst.msk [vmem:[#allocation2 + $0x31] sm:$0xff] %vm1700_vm5, %v1623_v1 }
 0x36d   : > { %v736_v3 = vadd.f32 %v735_v38, %v702_v62  ;;  %1840 = vst.msk [vmem:[#allocation2 + $0x30] sm:$0xff] %vm1833_vm8, %v1756_v28  ;;  %v2587_v28 = vld [vmem:[%s4588_s6 + $0x3c] sm:$0xf]  ;;  %v712_v62 = vunpack.c.l.bf16 %v2590_v57  ;;  %v713_v38 = vunpack.c.l.bf16 %v2591_v10  ;;  %v2036_v10 = vld [vmem:[#allocation2 + $0x88] sm:$0xff] }
 0x36e   : > { %1841 = vst.msk [vmem:[#allocation2 + $0x38] sm:$0xff] %vm1833_vm8, %v1758_v6  ;;  %v679_v6 = vunpack.c.l.bf16 %v2585_v42 }
 0x36f   : > { %747 = vst [vmem:[#allocation4] sm:$0x1] %v736_v3 }
 0x370   : > { %1876 = vst.msk [vmem:[#allocation2 + $0x3f] sm:$0x1] %vm1872_vm7, %v2891_v23  ;;  %1734 = vrot.lane.b32.xlu2 %v4184_v4, %s2896_s30 }
 0x371   : > { %1525 = vrot.lane.b32.xlu1 %v4122_v5, %s2894_s1  ;;  %1987 = vst.msk [vmem:[#allocation2 + $0x2f] sm:$0xfe] %vm1979_vm3, %v1902_v61  ;;  %v709_v61 = vunpack.c.l.bf16 %v2587_v28  ;;  %s4345_s1 = scalar_lea.vmem %s4590_s8, %s4606_s27 }
 0x372   : > { %v4225_v26 = vpop.permute.xlu0 %1915  ;;  %v1653_v27 = vpop.permute.xlu2 %1652 }
 0x373   : > { %v1637_v63 = vpop.permute.xlu1 %1636  ;;  %1723 = vst.msk [vmem:[#allocation2 + $0xa9] sm:$0x7f] %vm1702_vm6, %v1653_v27 }
 0x374   : > { %1715 = vst.msk [vmem:[#allocation2 + $0x69] sm:$0x7f] %vm1702_vm6, %v1637_v63 }
 0x375   : > { %1847 = vst.msk [vmem:[#allocation2 + $0x68] sm:$0xff] %vm1833_vm8, %v4155_v2  ;;  %s2677_s2 = spop %2676  ;;  %v2644_v2 = vunpack.c.h.bf16 %v2662_v40 }
 0x376   : > { %1879 = vst.msk [vmem:[#allocation2 + $0x6f] sm:$0x1] %vm1872_vm7, %v2891_v23  ;;  %v649_v5 = vstv %s2677_s2  ;;  %s2679_s26 = spop %2678  ;;  %s2790_s2 = sshra.s32 %s2416_s17, 4  ;;  %s2791_s2 = int_to_ptr.hbm [resolvable:$true] %s2790_s2 }
 0x377   : > { %v651_v50 = vmul.f32 %v649_v5, %v641_v34  ;;  %v652_v35 = vmul.f32 %v2635_v31, %v649_v5  ;;  %v653_v49 = vmul.f32 %v2636_v0, %v649_v5  ;;  %v654_v51 = vmul.f32 %v649_v5, %v644_v43  ;;  %s2792_s29 = scalar_lea.hbm %s2791_s2, 1  ;;  %p2797_p1 = scmp.lt.s32.totalorder %s2791_s2, %s4591_s9 }
 0x378   : > { %v655_v53 = vmul.f32 %v649_v5, %v645_v37  ;;  %v683_v54 = vstv %s2679_s26  ;;  %1866 = vrot.lane.b32.xlu2 %v4160_v33, %s4604_s28  ;;  %s4605_s26 = smov 32   ;;  %p2793_p12 = scmp.ne.s32.totalorder %s2791_s2, %s2792_s29 }
 0x379   : > { %v656_v14 = vadd.f32 %v651_v50, %v624_v12  ;;  %1864 = vrot.lane.b32.xlu1 %v4184_v4, %s4604_s28  ;;  %v657_v47 = vadd.f32 %v652_v35, %v625_v29  ;;  %v658_v19 = vadd.f32 %v653_v49, %v626_v8  ;;  %v659_v60 = vadd.f32 %v654_v51, %v627_v44  ;;  %v2019_v35 = vld [vmem:[#allocation2] sm:$0xff]  ;;  %v2020_v49 = vld [vmem:[#allocation2 + $0x8] sm:$0xff] }
 0x37a   : > { %v1663_v41 = vpop.permute.xlu0 %1662  ;;  %v1784_v32 = vpop.permute.xlu2 %1783  ;;  %v685_v59 = vmul.f32 %v2639_v56, %v683_v54  ;;  %v660_v1 = vadd.f32 %v655_v53, %v628_v22  ;;  %v686_v3 = vmul.f32 %v2640_v45, %v683_v54  ;;  %v687_v7 = vmul.f32 %v2643_v36, %v683_v54  ;;  %v2027_v51 = vld [vmem:[#allocation2 + $0x40] sm:$0xff]  ;;  %v2028_v53 = vld [vmem:[#allocation2 + $0x48] sm:$0xff]  ;;  %p2794_p13 = pnand %p2793_p12, %p3001_p4 }
 0x37b   : > { %v1768_v9 = vpop.permute.xlu1 %1767  ;;  %1728 = vst.msk [vmem:[#allocation2 + $0xd1] sm:$0xff] %vm1700_vm5, %v1663_v41  ;;  %v688_v11 = vmul.f32 %v2644_v2, %v683_v54  ;;  %v689_v4 = vmul.f32 %v683_v54, %v679_v6  ;;  %v2035_v36 = vld [vmem:[#allocation2 + $0x80] sm:$0xff]  ;;  %v2051_v6 = vpack.c.bf16 %v2020_v49, %v2019_v35 }
 0x37c   : > { %1846 = vst.msk [vmem:[#allocation2 + $0x60] sm:$0xff] %vm1833_vm8, %v1768_v9  ;;  %v690_v13 = vadd.f32 %v685_v59, %v656_v14  ;;  %v691_v15 = vadd.f32 %v686_v3, %v657_v47  ;;  %v692_v17 = vadd.f32 %v687_v7, %v658_v19  ;;  %v2043_v22 = vld [vmem:[#allocation2 + $0xc0] sm:$0xff]  ;;  %v2044_v14 = vld [vmem:[#allocation2 + $0xc8] sm:$0xff]  ;;  %v2059_v47 = vpack.c.bf16 %v2036_v10, %v2035_v36  ;;  %v2037_v7 = vld [vmem:[#allocation2 + $0x90] sm:$0xff]  ;;  %p2795_p0 = pneg %p2794_p13 }
 0x37d   : > { %1993 = vst.msk [vmem:[#allocation2 + $0x5f] sm:$0xfe] %vm1979_vm3, %v4176_v24  ;;  %s2681_s22 = spop %2680  ;;  %v693_v20 = vadd.f32 %v688_v11, %v659_v60  ;;  %v694_v30 = vadd.f32 %v689_v4, %v660_v1  ;;  %v2063_v19 = vpack.c.bf16 %v2044_v14, %v2043_v22  ;;  %v2038_v11 = vld [vmem:[#allocation2 + $0x98] sm:$0xff] }
 0x37e   : > { %1994 = vst.msk [vmem:[#allocation2 + $0x67] sm:$0xff] %vm1981_vm9, %v4225_v26  ;;  %v717_v16 = vstv %s2681_s22  ;;  %s2424_s22 = scalar_lea.hbm %s4592_s10, %s2878_s14  ;;  %s2395_s14 = scalar_lea.sflag [#allocation6], %s4508_s25 }
 0x37f   : > { %v719_v21 = vmul.f32 %v717_v16, %v709_v61  ;;  %v720_v25 = vmul.f32 %v2647_v55, %v717_v16  ;;  %v721_v52 = vmul.f32 %v2648_v58, %v717_v16  ;;  %v722_v18 = vmul.f32 %v717_v16, %v712_v62  ;;  %v2021_v61 = vld [vmem:[#allocation2 + $0x10] sm:$0xff]  ;;  %s4526_s30 = sshll.u32 %s2424_s22, 4  ;;  %s2796_s22 = scalar_lea.hbm %s4591_s9, 2  ;;  %s2429_s30 = int_to_ptr.hbm [resolvable:$true] %s4526_s30 }
 0x380   : > { %v723_v27 = vmul.f32 %v717_v16, %v713_v38  ;;  %v2055_v55 = vpack.c.bf16 %v2028_v53, %v2027_v51  ;;  %v2029_v62 = vld [vmem:[#allocation2 + $0x50] sm:$0xff]  ;;  %v2030_v38 = vld [vmem:[#allocation2 + $0x58] sm:$0xff]  ;;  %p2798_p2 = scmp.lt.s32.totalorder %s2796_s22, %s2792_s29 }
 0x381   : > { %v724_v63 = vadd.f32 %v719_v21, %v690_v13  ;;  %v725_v31 = vadd.f32 %v720_v25, %v691_v15  ;;  %v726_v0 = vadd.f32 %v721_v52, %v692_v17  ;;  %v727_v34 = vadd.f32 %v722_v18, %v693_v20  ;;  %2013 = vrot.lane.b32.xlu1 %v4160_v33, %s4605_s26  ;;  %v2023_v25 = vld [vmem:[#allocation2 + $0x20] sm:$0xff]  ;;  %v2024_v52 = vld [vmem:[#allocation2 + $0x28] sm:$0xff]  ;;  %s380_s26 = scalar_lea.vmem [#allocation5], %s4508_s25 }
 0x382   : > { %v728_v24 = vadd.f32 %v723_v27, %v694_v30  ;;  %v1786_v43 = vpop.permute.xlu0 %1785  ;;  %v1798_v46 = vpop.permute.xlu2 %1797  ;;  %v2056_v15 = vpack.c.bf16 %v2030_v38, %v2029_v62  ;;  %v2060_v17 = vpack.c.bf16 %v2038_v11, %v2037_v7  ;;  %s4519_s27 = sshll.u32 %s380_s26, 4  ;;  %p2799_p3 = por %p2798_p2, %p2797_p1  ;;  %s2414_s27 = int_to_ptr.vmem [resolvable:$true] %s4519_s27 }
 0x383   : > { %v2652_v37 = vpack.c.bf16 %v725_v31, %v724_v63  ;;  %v2657_v39 = vpack.c.bf16 %v727_v34, %v726_v0  ;;  %v1904_v26 = vpop.permute.xlu1 %1903  ;;  %v2053_v34 = vpack.c.bf16 %v2024_v52, %v2023_v25 }
 0x384   : > { %v741_v12 = vpack.c.bf16 %v728_v24, %v728_v24  ;;  %1988 = vst.msk [vmem:[#allocation2 + $0x37] sm:$0xff] %vm1981_vm9, %v1904_v26  ;;  %p2800_p5 = pnand %p2799_p3, %p2795_p0 }
 0x385   : > { %2653 = vst [vmem:[#allocation3] sm:$0xff] %v2652_v37   ;;  %v2031_v18 = vld [vmem:[#allocation2 + $0x60] sm:$0xff]  ;;  %v2032_v30 = vld [vmem:[#allocation2 + $0x68] sm:$0xff] }
 0x386   : > { %2664 = vst [vmem:[#allocation3 + $0x8] sm:$0xff] %v2657_v39   ;;  %v2057_v24 = vpack.c.bf16 %v2032_v30, %v2031_v18 }
 0x387   : > { %746 = vst [vmem:[#allocation3 + $0x10] sm:$0x3] %v741_v12 }
 0x38a   : > { %v1930_v29 = vpop.permute.xlu0 %1929  ;;  %v1942_v8 = vpop.permute.xlu2 %1941 }
 0x38b   : > { %v1651_v40 = vpop.permute.xlu1 %1650  ;;  %v2025_v26 = vld [vmem:[#allocation2 + $0x30] sm:$0xff] }
 0x38c   : > { %1722 = vst.msk [vmem:[#allocation2 + $0xa1] sm:$0xff] %vm1700_vm5, %v1651_v40  ;;  %v2623_v28 = vld [vmem:[#allocation3] sm:$0xff] }
 0x38d   : > { %1854 = vst.msk [vmem:[#allocation2 + $0xa0] sm:$0xff] %vm1833_vm8, %v1784_v32  ;;  %v2624_v50 = vld [vmem:[#allocation3 + $0x8] sm:$0xff]  ;;  %v2022_v32 = vld [vmem:[#allocation2 + $0x18] sm:$0xff] }
 0x38e   : > { %1855 = vst.msk [vmem:[#allocation2 + $0xa8] sm:$0xff] %vm1833_vm8, %v1786_v43  ;;  %v2071_v33 = vld [vmem:[#allocation3 + $0x10] sm:$0x3]  ;;  %v2052_v13 = vpack.c.bf16 %v2022_v32, %v2021_v61 }
 0x38f   : > { %1883 = vst.msk [vmem:[#allocation2 + $0xaf] sm:$0x1] %vm1872_vm7, %v2891_v23  ;;  %v2085_v42 = vunpack.c.l.b16 %v2071_v33 }
 0x390   : > { %2001 = vst.msk [vmem:[#allocation2 + $0x9f] sm:$0xfe] %vm1979_vm3, %v1930_v29  ;;  %v2026_v29 = vld [vmem:[#allocation2 + $0x38] sm:$0xff] }
 0x391   : > { %v2088_v44 = vpack.c.b16 %v2085_v42, %v2085_v42 }
 0x392   : > { %v1944_v5 = vpop.permute.xlu0 %1943  ;;  %v1641_v56 = vpop.permute.xlu2 %1640 }
 0x393   : > { %v2142_v45 = vsel %vm553_vm10, %v2088_v44, 0  ;;  %v1665_v48 = vpop.permute.xlu1 %1664  ;;  %1717 = vst.msk [vmem:[#allocation2 + $0x79] sm:$0x7f] %vm1702_vm6, %v1641_v56  ;;  %vm2091_vm10 = vcmask 293888   ;;  %v2054_v44 = vpack.c.bf16 %v2026_v29, %v2025_v26 }
 0x394   : > { %2149 = vmatpush.bf16.msrb.mxu0 %v2142_v45  ;;  %2665 = vmatpush.bf16.msrb.mxu1 %v2142_v45  ;;  %1729 = vst.msk [vmem:[#allocation2 + $0xd9] sm:$0x7f] %vm1702_vm6, %v1665_v48 }
 0x395   : > { %2666 = vmatpush.bf16.msra.mxu2 %v2142_v45  ;;  %2667 = vmatpush.bf16.msra.mxu3 %v2142_v45  ;;  %1861 = vst.msk [vmem:[#allocation2 + $0xd8] sm:$0xff] %vm1833_vm8, %v1798_v46 }
 0x396   : > { %1886 = vst.msk [vmem:[#allocation2 + $0xdf] sm:$0x1] %vm1872_vm7, %v2891_v23 }
 0x398   : > { %2150 = vmatpush.bf16.msrb.mxu0 %v2624_v50  ;;  %2668 = vmatpush.bf16.msrb.mxu1 %v2624_v50 }
 0x399   : > { %2669 = vmatpush.bf16.msra.mxu2 %v2624_v50  ;;  %2670 = vmatpush.bf16.msra.mxu3 %v2624_v50 }
 0x39a   : > { %v1772_v2 = vpop.permute.xlu0 %1771  ;;  %v1918_v54 = vpop.permute.xlu2 %1917 }
 0x39b   : > { %v1796_v57 = vpop.permute.xlu1 %1795 }
 0x39c   : > { %2151 = vmatpush.bf16.msrb.mxu0 %v2623_v28  ;;  %2671 = vmatpush.bf16.msrb.mxu1 %v2623_v28  ;;  %1860 = vst.msk [vmem:[#allocation2 + $0xd0] sm:$0xff] %vm1833_vm8, %v1796_v57 }
 0x39d   : > { %2672 = vmatpush.bf16.msra.mxu2 %v2623_v28  ;;  %2673 = vmatpush.bf16.msra.mxu3 %v2623_v28  ;;  %2007 = vst.msk [vmem:[#allocation2 + $0xcf] sm:$0xfe] %vm1979_vm3, %v1942_v8 }
 0x39e   : > { %2008 = vst.msk [vmem:[#allocation2 + $0xd7] sm:$0xff] %vm1981_vm9, %v1944_v5 }
 0x39f   : > { %2603 = vmatmul.msk.bf16.vlgmr.msrb.gmra.mxu0 %vm2091_vm10, %v2051_v6  ;;  %2607 = vmatmul.msk.bf16.vlgmr.msrb.gmra.mxu1 %vm2091_vm10, %v2055_v55 }
 0x3a0   : > { %2611 = vmatmul.msk.bf16.vlgmr.msra.gmra.mxu2 %vm2091_vm10, %v2059_v47  ;;  %2615 = vmatmul.msk.bf16.vlgmr.msra.gmra.mxu3 %vm2091_vm10, %v2063_v19  ;;  %v4338_v19 = vld [vmem:[#allocation4] ss:$0 sm:$0xff] }
 0x3a2   : > { %v1920_v60 = vpop.permute.xlu0 %1919  ;;  %v1522_v58 = vpop.permute.xlu2 %1521 }
 0x3a3   : > { %v1932_v41 = vpop.permute.xlu1 %1931  ;;  %1590 = vst.msk [vmem:[#allocation2 + $0xe7] sm:$0xff] %vm1561_vm4, %v1522_v58 }
 0x3a4   : > { %2002 = vst.msk [vmem:[#allocation2 + $0xa7] sm:$0xff] %vm1981_vm9, %v1932_v41 }
 0x3a5   : > { %v2045_v59 = vld [vmem:[#allocation2 + $0xd0] sm:$0xff]  ;;  %v2046_v9 = vld [vmem:[#allocation2 + $0xd8] sm:$0xff] }
 0x3a6   : > { %v2064_v4 = vpack.c.bf16 %v2046_v9, %v2045_v59 }
 0x3aa   : > { %v1655_v1 = vpop.permute.xlu0 %1654  ;;  %v1667_v21 = vpop.permute.xlu2 %1666 }
 0x3ab   : > { %v1639_v3 = vpop.permute.xlu1 %1638  ;;  %1724 = vst.msk [vmem:[#allocation2 + $0xb1] sm:$0xff] %vm1700_vm5, %v1655_v1  ;;  %v2039_v31 = vld [vmem:[#allocation2 + $0xa0] sm:$0xff]  ;;  %v2040_v0 = vld [vmem:[#allocation2 + $0xa8] sm:$0xff] }
 0x3ac   : > { %1716 = vst.msk [vmem:[#allocation2 + $0x71] sm:$0xff] %vm1700_vm5, %v1639_v3  ;;  %v2061_v43 = vpack.c.bf16 %v2040_v0, %v2039_v31 }
 0x3ad   : > { %1848 = vst.msk [vmem:[#allocation2 + $0x70] sm:$0xff] %vm1833_vm8, %v1772_v2 }
 0x3ae   : > { %1995 = vst.msk [vmem:[#allocation2 + $0x6f] sm:$0xfe] %vm1979_vm3, %v1918_v54 }
 0x3af   : > { %2604 = vmatmul.msk.bf16.gmra.mxu0 %vm2091_vm10, %v2052_v13  ;;  %2608 = vmatmul.msk.bf16.gmra.mxu1 %vm2091_vm10, %v2056_v15 }
 0x3b0   : > { %2612 = vmatmul.msk.bf16.gmra.mxu2 %vm2091_vm10, %v2060_v17  ;;  %2616 = vmatmul.msk.bf16.gmra.mxu3 %vm2091_vm10, %v2064_v4 }
 0x3b2   : > { %v1669_v20 = vpop.permute.xlu0 %1668  ;;  %v1790_v46 = vpop.permute.xlu2 %1789 }
 0x3b3   : > { %v1774_v16 = vpop.permute.xlu1 %1773  ;;  %1731 = vst.msk [vmem:[#allocation2 + $0xe9] sm:$0x7f] %vm1702_vm6, %v1669_v20 }
 0x3b4   : > { %1849 = vst.msk [vmem:[#allocation2 + $0x78] sm:$0xff] %vm1833_vm8, %v1774_v16 }
 0x3b5   : > { %1880 = vst.msk [vmem:[#allocation2 + $0x7f] sm:$0x1] %vm1872_vm7, %v2891_v23 }
 0x3b6   : > { %1996 = vst.msk [vmem:[#allocation2 + $0x77] sm:$0xff] %vm1981_vm9, %v1920_v60 }
 0x3ba   : > { %v1800_v27 = vpop.permute.xlu0 %1799  ;;  %v1934_v12 = vpop.permute.xlu2 %1933 }
 0x3bb   : > { %v1520_v63 = vpop.permute.xlu1 %1519 }
 0x3bc   : > { %1589 = vst.msk [vmem:[#allocation2 + $0xdf] sm:$0xfe] %vm1559_vm1, %v1520_v63 }
 0x3bd   : > { %1608 = vst.msk [vmem:[#allocation2 + $0xe0] sm:$0x1] %vm1593_vm2, %v2891_v23  ;;  %v2033_v8 = vld [vmem:[#allocation2 + $0x70] sm:$0xff]  ;;  %v2034_v40 = vld [vmem:[#allocation2 + $0x78] sm:$0xff] }
 0x3be   : > { %1730 = vst.msk [vmem:[#allocation2 + $0xe1] sm:$0xff] %vm1700_vm5, %v1667_v21  ;;  %v2058_v5 = vpack.c.bf16 %v2034_v40, %v2033_v8 }
 0x3bf   : > { %2605 = vmatmul.msk.bf16.gmra.mxu0 %vm2091_vm10, %v2053_v34  ;;  %2609 = vmatmul.msk.bf16.gmra.mxu1 %vm2091_vm10, %v2057_v24  ;;  %1862 = vst.msk [vmem:[#allocation2 + $0xe0] sm:$0xff] %vm1833_vm8, %v1800_v27 }
 0x3c0   : > { %2613 = vmatmul.msk.bf16.gmra.mxu2 %vm2091_vm10, %v2061_v43 }
 0x3c2   : > { %v1936_v37 = vpop.permute.xlu0 %1935  ;;  %v1948_v56 = vpop.permute.xlu2 %1947 }
 0x3c3   : > { %v1657_v39 = vpop.permute.xlu1 %1656 }
 0x3c4   : > { %1725 = vst.msk [vmem:[#allocation2 + $0xb9] sm:$0x7f] %vm1702_vm6, %v1657_v39 }
 0x3c5   : > { %1857 = vst.msk [vmem:[#allocation2 + $0xb8] sm:$0xff] %vm1833_vm8, %v1790_v46 }
 0x3c6   : > { %1884 = vst.msk [vmem:[#allocation2 + $0xbf] sm:$0x1] %vm1872_vm7, %v2891_v23 }
 0x3ca   : > { %v1524_v33 = vpop.permute.xlu0 %1523  ;;  %v1735_v49 = vpop.permute.xlu2 %1734 }
 0x3cb   : > { %v1788_v42 = vpop.permute.xlu1 %1787  ;;  %1591 = vst.msk [vmem:[#allocation2 + $0xef] sm:$0xfe] %vm1559_vm1, %v1524_v33 }
 0x3cc   : > { %1856 = vst.msk [vmem:[#allocation2 + $0xb0] sm:$0xff] %vm1833_vm8, %v1788_v42 }
 0x3cd   : > { %2003 = vst.msk [vmem:[#allocation2 + $0xaf] sm:$0xfe] %vm1979_vm3, %v1934_v12 }
 0x3ce   : > { %2004 = vst.msk [vmem:[#allocation2 + $0xb7] sm:$0xff] %vm1981_vm9, %v1936_v37 }
 0x3cf   : > { %2606 = vmatmul.msk.bf16.gmra.mxu0 %vm2091_vm10, %v2054_v44  ;;  %2610 = vmatmul.msk.bf16.gmra.mxu1 %vm2091_vm10, %v2058_v5  ;;  %1609 = vst.msk [vmem:[#allocation2 + $0xf0] sm:$0x1] %vm1593_vm2, %v2891_v23 }
 0x3d2   : > { %v1737_v28 = vpop.permute.xlu0 %1736  ;;  %v1867_v57 = vpop.permute.xlu2 %1866 }
 0x3d3   : > { %v1802_v45 = vpop.permute.xlu1 %1801 }
 0x3d4   : > { %1863 = vst.msk [vmem:[#allocation2 + $0xe8] sm:$0xff] %vm1833_vm8, %v1802_v45 }
 0x3d5   : > { %1887 = vst.msk [vmem:[#allocation2 + $0xef] sm:$0x1] %vm1872_vm7, %v2891_v23  ;;  %v2041_v48 = vld [vmem:[#allocation2 + $0xb0] sm:$0xff]  ;;  %v2042_v50 = vld [vmem:[#allocation2 + $0xb8] sm:$0xff] }
 0x3d6   : > { %v2062_v35 = vpack.c.bf16 %v2042_v50, %v2041_v48  ;;  %2010 = vst.msk [vmem:[#allocation2 + $0xe7] sm:$0xff] %vm1981_vm9, %v1948_v56 }
 0x3d8   : > { %2614 = vmatmul.msk.bf16.gmra.mxu2 %vm2091_vm10, %v2062_v35 }
 0x3da   : > { %v2012_v10 = vpop.permute.xlu0 %2011 }
 0x3db   : > { %v1946_v51 = vpop.permute.xlu1 %1945 }
 0x3dc   : > { %2009 = vst.msk [vmem:[#allocation2 + $0xdf] sm:$0xfe] %vm1979_vm3, %v1946_v51 }
 0x3dd   : > { %v2048_v53 = vld [vmem:[#allocation2 + $0xe8] sm:$0xff] }
 0x3e3   : > { %v1526_v36 = vpop.permute.xlu1 %1525  ;;  %v2047_v2 = vld [vmem:[#allocation2 + $0xe0] sm:$0xff] }
 0x3e4   : > { %1592 = vst.msk [vmem:[#allocation2 + $0xf7] sm:$0xff] %vm1561_vm4, %v1526_v36  ;;  %v2065_v54 = vpack.c.bf16 %v2048_v53, %v2047_v2 }
 0x3e5   : > { %1741 = vst.msk [vmem:[#allocation2 + $0xf1] sm:$0xff] %vm1700_vm5, %v1735_v49 }
 0x3e6   : > { %2617 = vmatmul.msk.bf16.gmra.mxu3 %vm2091_vm10, %v2065_v54  ;;  %1742 = vst.msk [vmem:[#allocation2 + $0xf9] sm:$0x7f] %vm1702_vm6, %v1737_v28 }
 0x3e7   : > { %1871 = vst.msk [vmem:[#allocation2 + $0xf8] sm:$0xff] %vm1833_vm8, %v1867_v57 }
 0x3e8   : > { %1888 = vst.msk [vmem:[#allocation2 + $0xff] sm:$0x1] %vm1872_vm7, %v2891_v23 }
 0x3eb   : > { %v1865_v22 = vpop.permute.xlu1 %1864 }
 0x3ec   : > { %1870 = vst.msk [vmem:[#allocation2 + $0xf0] sm:$0xff] %vm1833_vm8, %v1865_v22 }
 0x3ed   : > { %2017 = vst.msk [vmem:[#allocation2 + $0xef] sm:$0xfe] %vm1979_vm3, %v2012_v10 }
 0x3f3   : > { %v2014_v14 = vpop.permute.xlu1 %2013 }
 0x3f4   : > { %2018 = vst.msk [vmem:[#allocation2 + $0xf7] sm:$0xff] %vm1981_vm9, %v2014_v14 }
 0x3fb   : > { %v2049_v6 = vld [vmem:[#allocation2 + $0xf0] sm:$0xff]  ;;  %v2050_v55 = vld [vmem:[#allocation2 + $0xf8] sm:$0xff] }
 0x3fc   : > { %v2066_v47 = vpack.c.bf16 %v2050_v55, %v2049_v6 }
 0x3fe   : > { %2618 = vmatmul.msk.bf16.gmra.mxu3 %vm2091_vm10, %v2066_v47 }
 0x41c   : > { %v2153_v23 = vpop.f32.mrf.mxu0  ;;  %v2173_v60 = vpop.f32.mrf.mxu1 }
 0x41d   : > { %v4348_v58 = vadd.f32 %v4338_v19, %v2153_v23  ;;  %v4351_v41 = vadd.f32 %v4338_v19, %v2173_v60 }
 0x41f   : > { %2233 = vst [vmem:[%s4345_s1] sm:$0xff] %v4348_v58  ;;  %v2302_v5 = vmul.f32 %v4348_v58, %v4348_v58 }
 0x420   : > { %2241 = vst [vmem:[%s4345_s1 + $0x40] sm:$0xff] %v4351_v41 }
 0x423   : > { %v2193_v32 = vpop.f32.mrf.mxu2  ;;  %v2213_v59 = vpop.f32.mrf.mxu3 }
 0x424   : > { %v4358_v9 = vadd.f32 %v4338_v19, %v2193_v32  ;;  %v4361_v61 = vadd.f32 %v4338_v19, %v2213_v59  ;;  %v2155_v62 = vpop.f32.mrf.mxu0  ;;  %v2175_v38 = vpop.f32.mrf.mxu1 }
 0x425   : > { %v2156_v1 = vadd.f32 %v4338_v19, %v2155_v62  ;;  %v4365_v3 = vadd.f32 %v4338_v19, %v2175_v38 }
 0x426   : > { %2249 = vst [vmem:[%s4345_s1 + $0x80] sm:$0xff] %v4358_v9 }
 0x427   : > { %2257 = vst [vmem:[%s4345_s1 + $0xc0] sm:$0xff] %v4361_v61  ;;  %v2303_v44 = vmul.f32 %v2156_v1, %v2156_v1  ;;  %v2265_v56 = vadd.f32 %v2156_v1, %v4348_v58 }
 0x428   : > { %2234 = vst [vmem:[%s4345_s1 + $0x8] sm:$0xff] %v2156_v1 }
 0x429   : > { %2242 = vst [vmem:[%s4345_s1 + $0x48] sm:$0xff] %v4365_v3  ;;  %v2334_v50 = vadd.f32 %v2303_v44, %v2302_v5 }
 0x42b   : > { %v2195_v7 = vpop.f32.mrf.mxu2  ;;  %v2215_v11 = vpop.f32.mrf.mxu3 }
 0x42c   : > { %v4375_v4 = vadd.f32 %v4338_v19, %v2195_v7  ;;  %v4378_v13 = vadd.f32 %v4338_v19, %v2215_v11  ;;  %v2158_v15 = vpop.f32.mrf.mxu0  ;;  %v2178_v17 = vpop.f32.mrf.mxu1 }
 0x42d   : > { %v2159_v20 = vadd.f32 %v4338_v19, %v2158_v15  ;;  %v4382_v16 = vadd.f32 %v4338_v19, %v2178_v17  ;;  %v2310_v15 = vmul.f32 %v4351_v41, %v4351_v41 }
 0x42e   : > { %2250 = vst [vmem:[%s4345_s1 + $0x88] sm:$0xff] %v4375_v4 }
 0x42f   : > { %2258 = vst [vmem:[%s4345_s1 + $0xc8] sm:$0xff] %v4378_v13  ;;  %v2304_v45 = vmul.f32 %v2159_v20, %v2159_v20  ;;  %v2266_v28 = vadd.f32 %v2265_v56, %v2159_v20 }
 0x430   : > { %2235 = vst [vmem:[%s4345_s1 + $0x10] sm:$0xff] %v2159_v20 }
 0x431   : > { %2243 = vst [vmem:[%s4345_s1 + $0x50] sm:$0xff] %v4382_v16  ;;  %v2335_v54 = vadd.f32 %v2334_v50, %v2304_v45 }
 0x433   : > { %v2198_v21 = vpop.f32.mrf.mxu2  ;;  %v2218_v25 = vpop.f32.mrf.mxu3 }
 0x434   : > { %v4392_v52 = vadd.f32 %v4338_v19, %v2198_v21  ;;  %v4395_v18 = vadd.f32 %v4338_v19, %v2218_v25  ;;  %v2160_v30 = vpop.f32.mrf.mxu0  ;;  %v2180_v27 = vpop.f32.mrf.mxu1  ;;  %v2311_v21 = vmul.f32 %v4365_v3, %v4365_v3 }
 0x435   : > { %v2161_v63 = vadd.f32 %v4338_v19, %v2160_v30  ;;  %v4399_v31 = vadd.f32 %v4338_v19, %v2180_v27 }
 0x436   : > { %2251 = vst [vmem:[%s4345_s1 + $0x90] sm:$0xff] %v4392_v52 }
 0x437   : > { %2259 = vst [vmem:[%s4345_s1 + $0xd0] sm:$0xff] %v4395_v18  ;;  %v2305_v53 = vmul.f32 %v2161_v63, %v2161_v63  ;;  %v2267_v57 = vadd.f32 %v2266_v28, %v2161_v63 }
 0x438   : > { %2236 = vst [vmem:[%s4345_s1 + $0x18] sm:$0xff] %v2161_v63 }
 0x439   : > { %2244 = vst [vmem:[%s4345_s1 + $0x58] sm:$0xff] %v4399_v31  ;;  %v2336_v22 = vadd.f32 %v2335_v54, %v2305_v53 }
 0x43b   : > { %v2200_v0 = vpop.f32.mrf.mxu2  ;;  %v2220_v34 = vpop.f32.mrf.mxu3 }
 0x43c   : > { %v4409_v24 = vadd.f32 %v4338_v19, %v2200_v0  ;;  %v4412_v43 = vadd.f32 %v4338_v19, %v2220_v34  ;;  %v2163_v46 = vpop.f32.mrf.mxu0  ;;  %v2183_v37 = vpop.f32.mrf.mxu1  ;;  %v2312_v0 = vmul.f32 %v4382_v16, %v4382_v16 }
 0x43d   : > { %v2164_v39 = vadd.f32 %v4338_v19, %v2163_v46  ;;  %v4416_v26 = vadd.f32 %v4338_v19, %v2183_v37 }
 0x43e   : > { %2252 = vst [vmem:[%s4345_s1 + $0x98] sm:$0xff] %v4409_v24 }
 0x43f   : > { %2260 = vst [vmem:[%s4345_s1 + $0xd8] sm:$0xff] %v4412_v43  ;;  %v2306_v10 = vmul.f32 %v2164_v39, %v2164_v39  ;;  %v2268_v14 = vadd.f32 %v2267_v57, %v2164_v39  ;;  %v2320_v57 = vmul.f32 %v4392_v52, %v4392_v52 }
 0x440   : > { %2237 = vst [vmem:[%s4345_s1 + $0x20] sm:$0xff] %v2164_v39 }
 0x441   : > { %2245 = vst [vmem:[%s4345_s1 + $0x60] sm:$0xff] %v4416_v26  ;;  %v2337_v55 = vadd.f32 %v2336_v22, %v2306_v10 }
 0x443   : > { %v2203_v12 = vpop.f32.mrf.mxu2 }
 0x444   : > { %v4426_v29 = vadd.f32 %v4338_v19, %v2203_v12  ;;  %v2165_v8 = vpop.f32.mrf.mxu0  ;;  %v2185_v40 = vpop.f32.mrf.mxu1 }
 0x445   : > { %v2166_v33 = vadd.f32 %v4338_v19, %v2165_v8  ;;  %v2186_v42 = vadd.f32 %v4338_v19, %v2185_v40 }
 0x446   : > { %2253 = vst [vmem:[%s4345_s1 + $0xa0] sm:$0xff] %v4426_v29 }
 0x447   : > { %2238 = vst [vmem:[%s4345_s1 + $0x28] sm:$0xff] %v2166_v33  ;;  %v2307_v6 = vmul.f32 %v2166_v33, %v2166_v33  ;;  %v2269_v47 = vadd.f32 %v2268_v14, %v2166_v33  ;;  %v2315_v40 = vmul.f32 %v2186_v42, %v2186_v42 }
 0x448   : > { %2246 = vst [vmem:[%s4345_s1 + $0x68] sm:$0xff] %v2186_v42 }
 0x449   : > { %v2338_v32 = vadd.f32 %v2337_v55, %v2307_v6  ;;  %v2322_v55 = vmul.f32 %v4426_v29, %v4426_v29 }
 0x44b   : > { %v2205_v48 = vpop.f32.mrf.mxu2 }
 0x44c   : > { %v4438_v35 = vadd.f32 %v4338_v19, %v2205_v48  ;;  %v2168_v49 = vpop.f32.mrf.mxu0  ;;  %v2188_v51 = vpop.f32.mrf.mxu1 }
 0x44d   : > { %v2169_v36 = vadd.f32 %v4338_v19, %v2168_v49  ;;  %v2189_v2 = vadd.f32 %v4338_v19, %v2188_v51  ;;  %v2318_v51 = vmul.f32 %v4358_v9, %v4358_v9 }
 0x44e   : > { %2254 = vst [vmem:[%s4345_s1 + $0xa8] sm:$0xff] %v4438_v35 }
 0x44f   : > { %2239 = vst [vmem:[%s4345_s1 + $0x30] sm:$0xff] %v2169_v36  ;;  %v2308_v23 = vmul.f32 %v2169_v36, %v2169_v36  ;;  %v2270_v59 = vadd.f32 %v2269_v47, %v2169_v36  ;;  %v2316_v56 = vmul.f32 %v2189_v2, %v2189_v2  ;;  %v2319_v36 = vmul.f32 %v4375_v4, %v4375_v4 }
 0x450   : > { %2247 = vst [vmem:[%s4345_s1 + $0x70] sm:$0xff] %v2189_v2 }
 0x451   : > { %v2339_v1 = vadd.f32 %v2338_v32, %v2308_v23 }
 0x454   : > { %v2170_v60 = vpop.f32.mrf.mxu0  ;;  %v2190_v58 = vpop.f32.mrf.mxu1 }
 0x455   : > { %v2171_v62 = vadd.f32 %v4338_v19, %v2170_v60  ;;  %v2191_v38 = vadd.f32 %v4338_v19, %v2190_v58  ;;  %v2323_v58 = vmul.f32 %v4438_v35, %v4438_v35 }
 0x457   : > { %2240 = vst [vmem:[%s4345_s1 + $0x38] sm:$0xff] %v2171_v62  ;;  %v2271_v7 = vadd.f32 %v2270_v59, %v2171_v62  ;;  %v2309_v11 = vmul.f32 %v2171_v62, %v2171_v62  ;;  %v2317_v49 = vmul.f32 %v2191_v38, %v2191_v38 }
 0x458   : > { %2248 = vst [vmem:[%s4345_s1 + $0x78] sm:$0xff] %v2191_v38 }
 0x459   : > { %v2272_v17 = vadd.f32 %v2271_v7, %v4351_v41  ;;  %v2340_v20 = vadd.f32 %v2339_v1, %v2309_v11  ;;  %v2313_v41 = vmul.f32 %v4399_v31, %v4399_v31 }
 0x45b   : > { %v2273_v25 = vadd.f32 %v2272_v17, %v4365_v3  ;;  %v2341_v30 = vadd.f32 %v2340_v20, %v2310_v15  ;;  %v2208_v27 = vpop.f32.mrf.mxu2  ;;  %v2314_v3 = vmul.f32 %v4416_v26, %v4416_v26  ;;  %v2327_v17 = vmul.f32 %v4378_v13, %v4378_v13 }
 0x45c   : > { %v2209_v63 = vadd.f32 %v4338_v19, %v2208_v27  ;;  %v2329_v27 = vmul.f32 %v4412_v43, %v4412_v43 }
 0x45d   : > { %v2274_v34 = vadd.f32 %v2273_v25, %v4382_v16  ;;  %v2342_v46 = vadd.f32 %v2341_v30, %v2311_v21  ;;  %v2328_v21 = vmul.f32 %v4395_v18, %v4395_v18 }
 0x45e   : > { %2255 = vst [vmem:[%s4345_s1 + $0xb0] sm:$0xff] %v2209_v63  ;;  %v2324_v62 = vmul.f32 %v2209_v63, %v2209_v63 }
 0x45f   : > { %v2343_v37 = vadd.f32 %v2342_v46, %v2312_v0  ;;  %v2275_v39 = vadd.f32 %v2274_v34, %v4399_v31 }
 0x461   : > { %v2276_v12 = vadd.f32 %v2275_v39, %v4416_v26  ;;  %v2344_v8 = vadd.f32 %v2343_v37, %v2313_v41 }
 0x463   : > { %v2277_v33 = vadd.f32 %v2276_v12, %v2186_v42  ;;  %v2345_v44 = vadd.f32 %v2344_v8, %v2314_v3  ;;  %v2210_v5 = vpop.f32.mrf.mxu2 }
 0x464   : > { %v2211_v16 = vadd.f32 %v4338_v19, %v2210_v5 }
 0x465   : > { %v2278_v45 = vadd.f32 %v2277_v33, %v2189_v2  ;;  %v2346_v48 = vadd.f32 %v2345_v44, %v2315_v40 }
 0x466   : > { %2256 = vst [vmem:[%s4345_s1 + $0xb8] sm:$0xff] %v2211_v16  ;;  %v2325_v7 = vmul.f32 %v2211_v16, %v2211_v16 }
 0x467   : > { %v2279_v50 = vadd.f32 %v2278_v45, %v2191_v38  ;;  %v2347_v31 = vadd.f32 %v2346_v48, %v2316_v56 }
 0x469   : > { %v2280_v26 = vadd.f32 %v2279_v50, %v4358_v9  ;;  %v2348_v28 = vadd.f32 %v2347_v31, %v2317_v49  ;;  %v2223_v53 = vpop.f32.mrf.mxu3  ;;  %v2321_v9 = vmul.f32 %v4409_v24, %v4409_v24 }
 0x46a   : > { %v2224_v42 = vadd.f32 %v4338_v19, %v2223_v53 }
 0x46b   : > { %v2281_v54 = vadd.f32 %v2280_v26, %v4375_v4  ;;  %v2349_v2 = vadd.f32 %v2348_v28, %v2318_v51 }
 0x46c   : > { %2261 = vst [vmem:[%s4345_s1 + $0xe0] sm:$0xff] %v2224_v42  ;;  %v2330_v41 = vmul.f32 %v2224_v42, %v2224_v42 }
 0x46d   : > { %v2282_v10 = vadd.f32 %v2281_v54, %v4392_v52  ;;  %v2350_v22 = vadd.f32 %v2349_v2, %v2319_v36 }
 0x46f   : > { %v2351_v14 = vadd.f32 %v2350_v22, %v2320_v57  ;;  %v2283_v6 = vadd.f32 %v2282_v10, %v4409_v24 }
 0x471   : > { %v2284_v4 = vadd.f32 %v2283_v6, %v4426_v29  ;;  %v2352_v47 = vadd.f32 %v2351_v14, %v2321_v9  ;;  %v2225_v23 = vpop.f32.mrf.mxu3  ;;  %v2326_v29 = vmul.f32 %v4361_v61, %v4361_v61 }
 0x472   : > { %v2226_v60 = vadd.f32 %v4338_v19, %v2225_v23 }
 0x473   : > { %v2285_v52 = vadd.f32 %v2284_v4, %v4438_v35  ;;  %v2353_v32 = vadd.f32 %v2352_v47, %v2322_v55 }
 0x474   : > { %2262 = vst [vmem:[%s4345_s1 + $0xe8] sm:$0xff] %v2226_v60  ;;  %v2331_v3 = vmul.f32 %v2226_v60, %v2226_v60 }
 0x475   : > { %v2286_v59 = vadd.f32 %v2285_v52, %v2209_v63  ;;  %v2354_v38 = vadd.f32 %v2353_v32, %v2323_v58 }
 0x477   : > { %v2355_v24 = vadd.f32 %v2354_v38, %v2324_v62  ;;  %v2287_v1 = vadd.f32 %v2286_v59, %v2211_v16 }
 0x479   : > { %v2288_v11 = vadd.f32 %v2287_v1, %v4361_v61  ;;  %v2356_v15 = vadd.f32 %v2355_v24, %v2325_v7 }
 0x47b   : > { %v2289_v35 = vadd.f32 %v2288_v11, %v4378_v13  ;;  %v2357_v20 = vadd.f32 %v2356_v15, %v2326_v29 }
 0x47d   : > { %v2358_v25 = vadd.f32 %v2357_v20, %v2327_v17  ;;  %v2290_v30 = vadd.f32 %v2289_v35, %v4395_v18 }
 0x47f   : > { %v2291_v63 = vadd.f32 %v2290_v30, %v4412_v43  ;;  %v2359_v61 = vadd.f32 %v2358_v25, %v2328_v21 }
 0x481   : > { %v2360_v0 = vadd.f32 %v2359_v61, %v2329_v27  ;;  %v2228_v34 = vpop.f32.mrf.mxu3  ;;  %v2292_v46 = vadd.f32 %v2291_v63, %v2224_v42 }
 0x482   : > { %v2229_v13 = vadd.f32 %v4338_v19, %v2228_v34 }
 0x483   : > { %v2361_v37 = vadd.f32 %v2360_v0, %v2330_v41  ;;  %v2293_v39 = vadd.f32 %v2292_v46, %v2226_v60 }
 0x484   : > { %2263 = vst [vmem:[%s4345_s1 + $0xf0] sm:$0xff] %v2229_v13  ;;  %v2332_v18 = vmul.f32 %v2229_v13, %v2229_v13 }
 0x485   : > { %v2362_v12 = vadd.f32 %v2361_v37, %v2331_v3  ;;  %v2294_v40 = vadd.f32 %v2293_v39, %v2229_v13 }
 0x487   : > { %v2363_v33 = vadd.f32 %v2362_v12, %v2332_v18 }
 0x489   : > { %v2230_v8 = vpop.f32.mrf.mxu3 }
 0x48a   : > { %v2231_v43 = vadd.f32 %v4338_v19, %v2230_v8 }
 0x48c   : > { %2264 = vst [vmem:[%s4345_s1 + $0xf8] sm:$0xff] %v2231_v43  ;;  %v2295_v44 = vadd.f32 %v2294_v40, %v2231_v43  ;;  %v2333_v5 = vmul.f32 %v2231_v43, %v2231_v43  ;;  %s4524_s1 = sshll.u32 %s386_s18, 4 }
 0x48d   : > { %4607 = sst [smem:[#allocation11_spill]] %s4524_s1 }
 0x48e   : > { %v2296_v16 = vrot.slane %v2295_v44, 4  ;;  %v2364_v56 = vadd.f32 %v2363_v33, %v2333_v5 }
 0x490   : > { %v2297_v45 = vadd.f32 %v2296_v16, %v2295_v44  ;;  %v2365_v48 = vrot.slane %v2364_v56, 4 }
 0x492   : > { %v2298_v50 = vrot.slane %v2297_v45, 2  ;;  %v2366_v49 = vadd.f32 %v2365_v48, %v2364_v56 }
 0x494   : > { %v2299_v31 = vadd.f32 %v2298_v50, %v2297_v45  ;;  %v2367_v19 = vrot.slane %v2366_v49, 2 }
 0x496   : > { %v2300_v51 = vrot.slane %v2299_v31, 1  ;;  %v2368_v26 = vadd.f32 %v2367_v19, %v2366_v49 }
 0x498   : > { %v2301_v28 = vadd.f32 %v2300_v51, %v2299_v31  ;;  %v2369_v53 = vrot.slane %v2368_v26, 1 }
 0x49a   : > { %2374 = vst [vmem:[%s380_s26] sm:$0x1] %v2301_v28  ;;  %v2370_v42 = vadd.f32 %v2369_v53, %v2368_v26 }
 0x49b   : > { %2803 = shalt.err (!%p2800_p5)
}
 0x49c   : > { %2682 = dma.vmem_to_hbm [thread:$0]  (%p3001_p4), %s2414_s27, 16, %s2416_s17, %s2395_s14   ;;  %2375 = vst [vmem:[%s386_s18] sm:$0x1] %v2370_v42 }
 0x49d   : > { %s2399_s26 = scalar_lea.sflag [#allocation8], %s4508_s25  ;;  %s2818_s1 = sshra.s32 %s2429_s30, 4  ;;  %s2819_s1 = int_to_ptr.hbm [resolvable:$true] %s2818_s1 }
 0x49e   : > { %s2820_s20 = scalar_lea.hbm %s2819_s1, 1  ;;  %s2824_s2 = scalar_lea.hbm %s4592_s10, 2 }
 0x49f   : > { %p2821_p6 = scmp.ne.s32.totalorder %s2819_s1, %s2820_s20  ;;  %p2825_p10 = scmp.lt.s32.totalorder %s2819_s1, %s4592_s10 }
 0x4a0   : > { %p2826_p11 = scmp.lt.s32.totalorder %s2824_s2, %s2820_s20 }
 0x4a1   : > { %p2822_p7 = pnand %p2821_p6, %p3001_p4 }
 0x4a2   : > { %p2827_p12 = por %p2826_p11, %p2825_p10 }
 0x4a3   : > { %p2823_p9 = pneg %p2822_p7 }
 0x4a5   : > { %p2828_p13 = pnand %p2827_p12, %p2823_p9 }
 0x4a7   : > { %2831 = shalt.err (!%p2828_p13)
}
 0x4a8   : > { %s4608_s25 = sld [smem:[#allocation11_spill]] }
 0x4ae   : > { %s4609_s27 = int_to_ptr.vmem [resolvable:$true] %s4608_s25 }
 0x4af   : > { %2683 = dma.vmem_to_hbm [thread:$0]  (%p3001_p4), %s4609_s27, 16, %s2429_s30, %s2399_s26  }
 0x4b0 PF: > { %p2693_p0 = scmp.ge.s32.totalorder %s2886_s16, 2  ;;  %s2452_s17 = sand.u32 1, %s2866_s11  }
 0x4b1   : > { %s2453_s18 = scalar_lea.sflag [#allocation6], %s2452_s17 }
 0x4b2   : > { %p2687_p1 = pnand %p2693_p0, %p3008_p8 }
 0x4b4   : > { %p2688_p2 = pneg %p2687_p1 }
 0x4b6   : > { %2857 = dma.done.wait (%p2688_p2), %s2453_s18, 16  }
 0x4b7   : > { %2859 = vsyncadd (%p2688_p2), %s2453_s18, 4294967280  ;;  %s2462_s1 = scalar_lea.sflag [#allocation8], %s2452_s17 }
 0x4b8   : > { %2861 = dma.done.wait (%p2688_p2), %s2462_s1, 16  }
 0x4b9   : > { %2863 = vsyncadd (%p2688_p2), %s2462_s1, 4294967280  ;;  %s27_s16 = sadd.s32 1, %s2886_s16   ;;  %s4610_s11 = smov %s2870_s12 }
 0x4ba   : > { %p24_p3 = scmp.ge.s32.totalorder %s27_s16, 4   ;;  %s4611_s12 = smov %s2874_s13 }
 0x4bb   : > { %s4612_s13 = smov %s3014_s24  ;;  %s4613_s14 = smov %s2882_s15 }
 0x4bc   : > { %s4614_s15 = smov %s4616_s19  ;;  %26 = sbr.rel (!%p24_p3) target bundleno = 9 (0x9), region = 139 }
 0x4c1   :  { %2467 = vsyncpa [#allocation6], 1 }
 0x4c2   :  { %2469 = vsyncpa [#allocation6 + $0x1], 1 }
 0x4c3   :  { %2470 = vsyncpa [#allocation8], 1 }
 0x4c4   :  { %2472 = vsyncpa [#allocation8 + $0x1], 1 }

</bundles_post_ra>
